<compile_context>
chip_gen: v7x
topology: tpu7x:2x2x1
jax: 0.10.0
libtpu: 0.0.40
codegen_flags: <defaults>
</compile_context>

<pallas_src>
import functools

import jax
import jax.numpy as jnp
from jax.experimental import pallas as pl
from jax.experimental.pallas import tpu as pltpu


_MIB = 1024 * 1024


def _pick_chunk(k):
    """Largest convenient time-chunk dividing K (multiple of 8, else K itself)."""
    for c in (32, 16, 8):
        if k % c == 0:
            return c
    return k


def _mosaic_params(semantics, est_vmem_bytes):
    limit = int(min(max(2 * est_vmem_bytes, 16 * _MIB), 64 * _MIB))
    return pltpu.CompilerParams(dimension_semantics=semantics,
                                vmem_limit_bytes=limit)


# ---------------------------------------------------------------------------
# Kernels
# ---------------------------------------------------------------------------

def ln_pregate_kernel(x_ref, g_ref, beta_ref, w_ref, b_ref, o_ref):
    """LayerNorm(N) fused with the layer-0 input projection.

    x_ref    : (B, Tc, N)   f32   input chunk (batch-major, like the module input)
    g_ref    : (1, 1, N)    f32   LayerNorm gamma
    beta_ref : (1, 1, N)    f32   LayerNorm beta
    w_ref    : (N, 4H)      bf16  layer-0 W_ih (transposed)
    b_ref    : (1, 1, 4H)   f32   b_ih0 + b_hh0
    o_ref    : (B, Tc, 4H)  f32   layer-0 pre-gates
    """
    x = x_ref[...]
    mu = jnp.mean(x, axis=-1, keepdims=True)
    var = jnp.mean((x - mu) * (x - mu), axis=-1, keepdims=True)
    xn = (x - mu) * jax.lax.rsqrt(var + 1e-5)
    xn = xn * g_ref[...] + beta_ref[...]
    o_ref[...] = jax.lax.dot_general(
        xn.astype(jnp.bfloat16), w_ref[...], (((2,), (0,)), ((), ())),
        preferred_element_type=jnp.float32) + b_ref[...]


def lstm_chunk_kernel(*refs, hidden, t_chunk, project_next):
    """Runs T_CHUNK LSTM steps; optionally fuses the next layer's input proj.

    pre_ref : (B, Tc, 4H)  f32   pre-computed x @ W_ih + b for this layer
    whh_ref : (H, 4H)      bf16  recurrent weights (transposed)
    [wn_ref : (H, Dn)      bf16  next-layer W_ih          -- only if project_next]
    [bn_ref : (1, 1, Dn)   f32   next-layer fused bias    -- only if project_next]
    out_ref : (B, Tc, Dn)  f32   Dn == 4H_next if projecting else H
    scratch : [hbuf (B,Tc,H) if project_next], h_scr (B,H), c_scr (B,H)
    PyTorch gate order: i, f, g, o.
    """
    if project_next:
        pre_ref, whh_ref, wn_ref, bn_ref, out_ref, hbuf, h_scr, c_scr = refs
        dst = hbuf
    else:
        pre_ref, whh_ref, out_ref, h_scr, c_scr = refs
        dst = out_ref

    @pl.when(pl.program_id(0) == 0)
    def _():
        h_scr[...] = jnp.zeros_like(h_scr)
        c_scr[...] = jnp.zeros_like(c_scr)

    whh = whh_ref[...]                                   # (H, 4H) bf16, loaded once

    # Static Python unroll -> every per-step slice offset is a compile-time
    # constant (cheap strided loads/stores, no dynamic-index relayouts).
    for t in range(t_chunk):
        gates = pre_ref[:, t, :] + jnp.dot(
            h_scr[...].astype(jnp.bfloat16), whh,
            preferred_element_type=jnp.float32)          # (B, 4H) f32
        i = jax.nn.sigmoid(gates[:, 0 * hidden:1 * hidden])
        f = jax.nn.sigmoid(gates[:, 1 * hidden:2 * hidden])
        g = jnp.tanh(gates[:, 2 * hidden:3 * hidden])
        o = jax.nn.sigmoid(gates[:, 3 * hidden:4 * hidden])
        c_new = f * c_scr[...] + i * g
        h_new = o * jnp.tanh(c_new)
        c_scr[...] = c_new
        h_scr[...] = h_new
        dst[:, t, :] = h_new

    if project_next:
        # One MXU-friendly (B*Tc, H) x (H, Dn) matmul per chunk: the next
        # layer's pre-gates are written straight to HBM, h_seq never leaves VMEM.
        out_ref[...] = jax.lax.dot_general(
            hbuf[...].astype(jnp.bfloat16), wn_ref[...],
            (((2,), (0,)), ((), ())),
            preferred_element_type=jnp.float32) + bn_ref[...]


def fc_softmax_kernel(h_ref, len_ref, w_ref, b_ref, o_ref, *, nspk, N, t_chunk):
    """pad_packed-style masking + Linear(H -> nspk*N) + softmax over nspk.

    h_ref   : (B, Tc, H)       f32   last LSTM layer outputs
    len_ref : (B, 1)           i32   sequence lengths
    w_ref   : (H, nspk*N)      bf16  FC weight (transposed)
    b_ref   : (1, 1, nspk*N)   f32   FC bias
    o_ref   : (B, Tc, nspk*N)  f32   softmax-normalized masks (grouped by speaker)
    """
    kblk = pl.program_id(0)
    h = h_ref[...]
    bsz, tc = h.shape[0], h.shape[1]

    # Zero outputs at t >= length (pack_padded/pad_packed behaviour).
    t_abs = kblk * t_chunk + jax.lax.broadcasted_iota(jnp.int32, (bsz, tc), 1)
    mask = (t_abs < len_ref[...]).astype(h.dtype)[:, :, None]
    hm = (h * mask).astype(jnp.bfloat16)

    score = jax.lax.dot_general(
        hm, w_ref[...], (((2,), (0,)), ((), ())),
        preferred_element_type=jnp.float32) + b_ref[...]          # (B, Tc, nspk*N)

    # Grouped softmax over the nspk chunks of the last dim; each normalized
    # chunk is stored straight into its slot (no concatenate temporaries).
    parts = [score[:, :, s * N:(s + 1) * N] for s in range(nspk)]
    m = parts[0]
    for p in parts[1:]:
        m = jnp.maximum(m, p)
    exps = [jnp.exp(p - m) for p in parts]
    den = exps[0]
    for e in exps[1:]:
        den = den + e
    inv = 1.0 / den
    for s in range(nspk):
        o_ref[:, :, s * N:(s + 1) * N] = exps[s] * inv


# ---------------------------------------------------------------------------
# Wrappers
# ---------------------------------------------------------------------------

def run_ln_pregate(x, gamma, beta, w_ih0_t, b0, t_chunk):
    B, K, N = x.shape
    G4 = w_ih0_t.shape[1]
    est = (2 * B * t_chunk * N * 4 + 2 * B * t_chunk * G4 * 4
           + N * G4 * 2 + G4 * 4 + 2 * N * 4)
    return pl.pallas_call(
        ln_pregate_kernel,
        out_shape=jax.ShapeDtypeStruct((B, K, G4), jnp.float32),
        grid=(K // t_chunk,),
        in_specs=[
            pl.BlockSpec((B, t_chunk, N), lambda k: (0, k, 0)),
            pl.BlockSpec((1, 1, N), lambda k: (0, 0, 0)),
            pl.BlockSpec((1, 1, N), lambda k: (0, 0, 0)),
            pl.BlockSpec((N, G4), lambda k: (0, 0)),
            pl.BlockSpec((1, 1, G4), lambda k: (0, 0, 0)),
        ],
        out_specs=pl.BlockSpec((B, t_chunk, G4), lambda k: (0, k, 0)),
        compiler_params=_mosaic_params(("parallel",), est),
    )(x, gamma.reshape(1, 1, N), beta.reshape(1, 1, N), w_ih0_t,
      b0.reshape(1, 1, G4))


def run_lstm_layer(pre_gates, w_hh_t, w_next_t=None, b_next=None, *, t_chunk):
    B, K, G4 = pre_gates.shape
    H = G4 // 4
    project = w_next_t is not None
    Dn = w_next_t.shape[1] if project else H

    in_specs = [
        pl.BlockSpec((B, t_chunk, G4), lambda k: (0, k, 0)),
        pl.BlockSpec((H, G4), lambda k: (0, 0)),
    ]
    args = [pre_gates, w_hh_t]
    scratch = []
    if project:
        in_specs += [pl.BlockSpec((H, Dn), lambda k: (0, 0)),
                     pl.BlockSpec((1, 1, Dn), lambda k: (0, 0, 0))]
        args += [w_next_t, b_next.reshape(1, 1, Dn)]
        scratch.append(pltpu.VMEM((B, t_chunk, H), jnp.float32))
    scratch += [pltpu.VMEM((B, H), jnp.float32),
                pltpu.VMEM((B, H), jnp.float32)]

    est = (2 * B * t_chunk * G4 * 4 + 2 * B * t_chunk * Dn * 4
           + H * G4 * 2 + (H * Dn * 2 if project else 0)
           + (B * t_chunk * H * 4 if project else 0) + 2 * B * H * 4)

    return pl.pallas_call(
        functools.partial(lstm_chunk_kernel, hidden=H, t_chunk=t_chunk,
                          project_next=project),
        out_shape=jax.ShapeDtypeStruct((B, K, Dn), jnp.float32),
        grid=(K // t_chunk,),
        in_specs=in_specs,
        out_specs=pl.BlockSpec((B, t_chunk, Dn), lambda k: (0, k, 0)),
        scratch_shapes=scratch,
        compiler_params=_mosaic_params(("arbitrary",), est),
    )(*args)


def run_fc_softmax(h_seq, lengths, w_fc_t, b_fc, nspk, N, t_chunk):
    B, K, H = h_seq.shape
    NS = nspk * N
    est = (2 * B * t_chunk * H * 4 + 2 * B * t_chunk * NS * 4
           + H * NS * 2 + NS * 4 + B * 4 + 3 * B * t_chunk * NS * 4)
    out = pl.pallas_call(
        functools.partial(fc_softmax_kernel, nspk=nspk, N=N, t_chunk=t_chunk),
        out_shape=jax.ShapeDtypeStruct((B, K, NS), jnp.float32),
        grid=(K // t_chunk,),
        in_specs=[
            pl.BlockSpec((B, t_chunk, H), lambda k: (0, k, 0)),
            pl.BlockSpec((B, 1), lambda k: (0, 0)),
            pl.BlockSpec((H, NS), lambda k: (0, 0)),
            pl.BlockSpec((1, 1, NS), lambda k: (0, 0, 0)),
        ],
        out_specs=pl.BlockSpec((B, t_chunk, NS), lambda k: (0, k, 0)),
        compiler_params=_mosaic_params(("parallel",), est),
    )(h_seq, lengths.astype(jnp.int32).reshape(B, 1), w_fc_t,
      b_fc.reshape(1, 1, NS))
    # Trailing-dim split only: metadata reshape in XLA (no transpose/HBM pass).
    return out.reshape(B, K, nspk, N)


def separator_forward(params, mixture_w, mixture_lengths, *, nspk):
    """mixture_w: [B, K, N] f32, mixture_lengths: [B] int -> est_mask [B, K, nspk, N]."""
    B, K, N = mixture_w.shape
    t_chunk = _pick_chunk(K)
    lstm = params["lstm"]
    num_layers = len(lstm)

    # Stage 1: LayerNorm + layer-0 input projection (hoisted out of recurrence).
    pre = run_ln_pregate(mixture_w, params["ln_gamma"], params["ln_beta"],
                         lstm[0]["w_ih_t"], lstm[0]["b"], t_chunk)

    # Stage 2: recurrent layers; intermediate layers emit the NEXT layer's
    # pre-gates directly (hidden sequence never round-trips through HBM).
    h_seq = None
    for l in range(num_layers):
        if l + 1 < num_layers:
            pre = run_lstm_layer(pre, lstm[l]["w_hh_t"],
                                 lstm[l + 1]["w_ih_t"], lstm[l + 1]["b"],
                                 t_chunk=t_chunk)
        else:
            h_seq = run_lstm_layer(pre, lstm[l]["w_hh_t"], t_chunk=t_chunk)

    # Stage 3: pad_packed-style masking + FC + softmax over the nspk dim.
    return run_fc_softmax(h_seq, mixture_lengths, params["w_fc_t"],
                          params["b_fc"], nspk, N, t_chunk)


def init_params(key, N, hidden_size, num_layers, nspk):
    ks = jax.random.split(key, 2 + 4 * num_layers)
    ki = iter(ks)
    scale = 1.0 / jnp.sqrt(jnp.float32(hidden_size))
    params = {
        "ln_gamma": jnp.ones((N,), jnp.float32),
        "ln_beta": jnp.zeros((N,), jnp.float32),
        "lstm": [],
    }
    in_dim = N
    for _ in range(num_layers):
        w_ih = jax.random.normal(next(ki), (4 * hidden_size, in_dim), jnp.float32) * scale
        w_hh = jax.random.normal(next(ki), (4 * hidden_size, hidden_size), jnp.float32) * scale
        b_ih = jax.random.normal(next(ki), (4 * hidden_size,), jnp.float32) * scale
        b_hh = jax.random.normal(next(ki), (4 * hidden_size,), jnp.float32) * scale
        params["lstm"].append({
            "w_ih_t": w_ih.T.astype(jnp.bfloat16),    # (in_dim, 4H) bf16 MXU operand
            "w_hh_t": w_hh.T.astype(jnp.bfloat16),    # (H, 4H)
            "b": (b_ih + b_hh).astype(jnp.float32),   # (4H,) fused bias, f32
        })
        in_dim = hidden_size
    w_fc = jax.random.normal(next(ki), (nspk * N, hidden_size), jnp.float32) * scale
    b_fc = jax.random.normal(next(ki), (nspk * N,), jnp.float32) * scale
    params["w_fc_t"] = w_fc.T.astype(jnp.bfloat16)    # (H, nspk*N)
    params["b_fc"] = b_fc
    return params


if __name__ == "__main__":
    # Small, deterministic example consistent with the module's forward.
    B, K, N = 2, 8, 16
    hidden_size, num_layers, nspk = 32, 2, 2

    key = jax.random.PRNGKey(0)
    k_param, k_data = jax.random.split(key)

    params = init_params(k_param, N, hidden_size, num_layers, nspk)
    mixture_w = jax.random.normal(k_data, (B, K, N), jnp.float32)
    mixture_lengths = jnp.array([8, 6], dtype=jnp.int32)  # sorted desc, like pack_padded

    fwd = jax.jit(functools.partial(separator_forward, nspk=nspk))
    est_mask = fwd(params, mixture_w, mixture_lengths)
    est_mask = jax.block_until_ready(est_mask)

    assert est_mask.shape == (B, K, nspk, N)
    # softmax over the nspk axis must sum to 1 everywhere
    assert jnp.allclose(est_mask.sum(axis=2), 1.0, atol=1e-5)
    print("KERNEL_OK")
</pallas_src>

<mosaic_0001>
module attributes {stable_mosaic.version = 11 : i64} {
  func.func @ln_pregate_kernel(%arg0: i32, %arg1: memref<2x8x16xf32, #tpu.memory_space<vmem>>, %arg2: memref<1x1x16xf32, #tpu.memory_space<vmem>>, %arg3: memref<1x1x16xf32, #tpu.memory_space<vmem>>, %arg4: memref<16x128xbf16, #tpu.memory_space<vmem>>, %arg5: memref<1x1x128xf32, #tpu.memory_space<vmem>>, %arg6: memref<2x8x128xf32, #tpu.memory_space<vmem>>) attributes {dimension_semantics = [#tpu.dimension_semantics<parallel>], iteration_bounds = array<i64: 1>, scalar_prefetch = 0 : i64, scratch_operands = 0 : i64, tpu.core_type = #tpu.core_type<tc>, window_params = [{transform_indices = @transform_0, window_bounds = array<i64: 2, 8, 16>}, {pipeline_mode = #tpu.pipeline_mode<synchronous>, transform_indices = @transform_1, window_bounds = array<i64: 1, 1, 16>}, {pipeline_mode = #tpu.pipeline_mode<synchronous>, transform_indices = @transform_2, window_bounds = array<i64: 1, 1, 16>}, {pipeline_mode = #tpu.pipeline_mode<synchronous>, transform_indices = @transform_3, window_bounds = array<i64: 16, 128>}, {pipeline_mode = #tpu.pipeline_mode<synchronous>, transform_indices = @transform_4, window_bounds = array<i64: 1, 1, 128>}, {transform_indices = @transform_5, window_bounds = array<i64: 2, 8, 128>}]} {
    %c0 = arith.constant 0 : index
    %c0_0 = arith.constant 0 : index
    %c0_1 = arith.constant 0 : index
    %0 = vector.load %arg1[%c0, %c0_0, %c0_1] : memref<2x8x16xf32, #tpu.memory_space<vmem>>, vector<2x8x16xf32>
    %cst = arith.constant dense<0.000000e+00> : vector<2x8xf32>
    %1 = vector.multi_reduction <add>, %0, %cst [2] : vector<2x8x16xf32> to vector<2x8xf32>
    %2 = vector.shape_cast %1 : vector<2x8xf32> to vector<2x8x1xf32>
    %cst_2 = arith.constant 1.600000e+01 : f32
    %3 = vector.broadcast %cst_2 : f32 to vector<2x8x1xf32>
    %4 = arith.divf %2, %3 : vector<2x8x1xf32>
    %5 = vector.broadcast %4 : vector<2x8x1xf32> to vector<2x8x16xf32>
    %6 = arith.subf %0, %5 : vector<2x8x16xf32>
    %7 = vector.broadcast %4 : vector<2x8x1xf32> to vector<2x8x16xf32>
    %8 = arith.subf %0, %7 : vector<2x8x16xf32>
    %9 = arith.mulf %6, %8 : vector<2x8x16xf32>
    %cst_3 = arith.constant dense<0.000000e+00> : vector<2x8xf32>
    %10 = vector.multi_reduction <add>, %9, %cst_3 [2] : vector<2x8x16xf32> to vector<2x8xf32>
    %11 = vector.shape_cast %10 : vector<2x8xf32> to vector<2x8x1xf32>
    %cst_4 = arith.constant 1.600000e+01 : f32
    %12 = vector.broadcast %cst_4 : f32 to vector<2x8x1xf32>
    %13 = arith.divf %11, %12 : vector<2x8x1xf32>
    %14 = vector.broadcast %4 : vector<2x8x1xf32> to vector<2x8x16xf32>
    %15 = arith.subf %0, %14 : vector<2x8x16xf32>
    %cst_5 = arith.constant 9.99999974E-6 : f32
    %16 = vector.broadcast %cst_5 : f32 to vector<2x8x1xf32>
    %17 = arith.addf %13, %16 : vector<2x8x1xf32>
    %18 = math.rsqrt %17 : vector<2x8x1xf32>
    %19 = vector.broadcast %18 : vector<2x8x1xf32> to vector<2x8x16xf32>
    %20 = arith.mulf %15, %19 : vector<2x8x16xf32>
    %c0_6 = arith.constant 0 : index
    %c0_7 = arith.constant 0 : index
    %c0_8 = arith.constant 0 : index
    %21 = vector.load %arg2[%c0_6, %c0_7, %c0_8] : memref<1x1x16xf32, #tpu.memory_space<vmem>>, vector<1x1x16xf32>
    %22 = vector.broadcast %21 : vector<1x1x16xf32> to vector<2x8x16xf32>
    %23 = arith.mulf %20, %22 : vector<2x8x16xf32>
    %c0_9 = arith.constant 0 : index
    %c0_10 = arith.constant 0 : index
    %c0_11 = arith.constant 0 : index
    %24 = vector.load %arg3[%c0_9, %c0_10, %c0_11] : memref<1x1x16xf32, #tpu.memory_space<vmem>>, vector<1x1x16xf32>
    %25 = vector.broadcast %24 : vector<1x1x16xf32> to vector<2x8x16xf32>
    %26 = arith.addf %23, %25 : vector<2x8x16xf32>
    %27 = arith.truncf %26 : vector<2x8x16xf32> to vector<2x8x16xbf16>
    %c0_12 = arith.constant 0 : index
    %c0_13 = arith.constant 0 : index
    %28 = vector.load %arg4[%c0_12, %c0_13] : memref<16x128xbf16, #tpu.memory_space<vmem>>, vector<16x128xbf16>
    %cst_14 = arith.constant dense<0.000000e+00> : vector<2x8x128xf32>
    %29 = tpu.matmul %27, %28, %cst_14 {dimension_numbers = #tpu.dot_dimension_numbers<[2], [0], [0, 1], [1], [0, 0, 0, 1, 1, 1], [], []>} : vector<2x8x16xbf16>, vector<16x128xbf16>, vector<2x8x128xf32> -> vector<2x8x128xf32>
    %c0_15 = arith.constant 0 : index
    %c0_16 = arith.constant 0 : index
    %c0_17 = arith.constant 0 : index
    %30 = vector.load %arg5[%c0_15, %c0_16, %c0_17] : memref<1x1x128xf32, #tpu.memory_space<vmem>>, vector<1x1x128xf32>
    %31 = vector.broadcast %30 : vector<1x1x128xf32> to vector<2x8x128xf32>
    %32 = arith.addf %29, %31 : vector<2x8x128xf32>
    %c0_18 = arith.constant 0 : index
    %c0_19 = arith.constant 0 : index
    %c0_20 = arith.constant 0 : index
    %33 = vector.load %arg6[%c0_18, %c0_19, %c0_20] : memref<2x8x128xf32, #tpu.memory_space<vmem>>, vector<2x8x128xf32>
    tpu.vector_store %arg6[%c0_18, %c0_19, %c0_20], %32 {strides = array<i32>} : memref<2x8x128xf32, #tpu.memory_space<vmem>>, vector<2x8x128xf32>,
    return
  }
  func.func @transform_0(%arg0: i32) -> (i32, i32, i32) {
    %c0_i32 = arith.constant 0 : i32
    %c0_i32_0 = arith.constant 0 : i32
    %c0_i32_1 = arith.constant 0 : i32
    return %c0_i32, %arg0, %c0_i32_0 : i32, i32, i32
  }
  func.func @transform_1(%arg0: i32) -> (i32, i32, i32) {
    %c0_i32 = arith.constant 0 : i32
    %c0_i32_0 = arith.constant 0 : i32
    %c0_i32_1 = arith.constant 0 : i32
    %c0_i32_2 = arith.constant 0 : i32
    return %c0_i32, %c0_i32_0, %c0_i32_1 : i32, i32, i32
  }
  func.func @transform_2(%arg0: i32) -> (i32, i32, i32) {
    %c0_i32 = arith.constant 0 : i32
    %c0_i32_0 = arith.constant 0 : i32
    %c0_i32_1 = arith.constant 0 : i32
    %c0_i32_2 = arith.constant 0 : i32
    return %c0_i32, %c0_i32_0, %c0_i32_1 : i32, i32, i32
  }
  func.func @transform_3(%arg0: i32) -> (i32, i32) {
    %c0_i32 = arith.constant 0 : i32
    %c0_i32_0 = arith.constant 0 : i32
    %c0_i32_1 = arith.constant 0 : i32
    return %c0_i32, %c0_i32_0 : i32, i32
  }
  func.func @transform_4(%arg0: i32) -> (i32, i32, i32) {
    %c0_i32 = arith.constant 0 : i32
    %c0_i32_0 = arith.constant 0 : i32
    %c0_i32_1 = arith.constant 0 : i32
    %c0_i32_2 = arith.constant 0 : i32
    return %c0_i32, %c0_i32_0, %c0_i32_1 : i32, i32, i32
  }
  func.func @transform_5(%arg0: i32) -> (i32, i32, i32) {
    %c0_i32 = arith.constant 0 : i32
    %c0_i32_0 = arith.constant 0 : i32
    %c0_i32_1 = arith.constant 0 : i32
    return %c0_i32, %arg0, %c0_i32_0 : i32, i32, i32
  }
}

module attributes {stable_mosaic.version = 11 : i64} {
  func.func @lstm_chunk_kernel(%arg0: i32, %arg1: memref<2x8x128xf32, #tpu.memory_space<vmem>>, %arg2: memref<32x128xbf16, #tpu.memory_space<vmem>>, %arg3: memref<32x128xbf16, #tpu.memory_space<vmem>>, %arg4: memref<1x1x128xf32, #tpu.memory_space<vmem>>, %arg5: memref<2x8x128xf32, #tpu.memory_space<vmem>>, %arg6: memref<2x8x32xf32, #tpu.memory_space<vmem>>, %arg7: memref<2x32xf32, #tpu.memory_space<vmem>>, %arg8: memref<2x32xf32, #tpu.memory_space<vmem>>) attributes {dimension_semantics = [#tpu.dimension_semantics<arbitrary>], iteration_bounds = array<i64: 1>, scalar_prefetch = 0 : i64, scratch_operands = 3 : i64, tpu.core_type = #tpu.core_type<tc>, window_params = [{transform_indices = @transform_0, window_bounds = array<i64: 2, 8, 128>}, {pipeline_mode = #tpu.pipeline_mode<synchronous>, transform_indices = @transform_1, window_bounds = array<i64: 32, 128>}, {pipeline_mode = #tpu.pipeline_mode<synchronous>, transform_indices = @transform_2, window_bounds = array<i64: 32, 128>}, {pipeline_mode = #tpu.pipeline_mode<synchronous>, transform_indices = @transform_3, window_bounds = array<i64: 1, 1, 128>}, {transform_indices = @transform_4, window_bounds = array<i64: 2, 8, 128>}]} {
    %c0_i32 = arith.constant 0 : i32
    %0 = arith.cmpi eq, %arg0, %c0_i32 : i32
    %1 = arith.extui %0 : i1 to i32
    %c0_i32_0 = arith.constant 0 : i32
    %2 = arith.cmpi ne, %1, %c0_i32_0 : i32
    scf.if %2 {
      %cst_150 = arith.constant 0.000000e+00 : f32
      %308 = vector.broadcast %cst_150 : f32 to vector<2x32xf32>
      %c0_151 = arith.constant 0 : index
      %c0_152 = arith.constant 0 : index
      %309 = vector.load %arg7[%c0_151, %c0_152] : memref<2x32xf32, #tpu.memory_space<vmem>>, vector<2x32xf32>
      tpu.vector_store %arg7[%c0_151, %c0_152], %308 {strides = array<i32>} : memref<2x32xf32, #tpu.memory_space<vmem>>, vector<2x32xf32>,
      %cst_153 = arith.constant 0.000000e+00 : f32
      %310 = vector.broadcast %cst_153 : f32 to vector<2x32xf32>
      %c0_154 = arith.constant 0 : index
      %c0_155 = arith.constant 0 : index
      %311 = vector.load %arg8[%c0_154, %c0_155] : memref<2x32xf32, #tpu.memory_space<vmem>>, vector<2x32xf32>
      tpu.vector_store %arg8[%c0_154, %c0_155], %310 {strides = array<i32>} : memref<2x32xf32, #tpu.memory_space<vmem>>, vector<2x32xf32>,
    } else {
    }
    %c0 = arith.constant 0 : index
    %c0_1 = arith.constant 0 : index
    %3 = vector.load %arg2[%c0, %c0_1] : memref<32x128xbf16, #tpu.memory_space<vmem>>, vector<32x128xbf16>
    %c0_2 = arith.constant 0 : index
    %c0_3 = arith.constant 0 : index
    %c0_4 = arith.constant 0 : index
    %4 = vector.load %arg1[%c0_2, %c0_3, %c0_4] : memref<2x8x128xf32, #tpu.memory_space<vmem>>, vector<2x1x128xf32>
    %5 = vector.shape_cast %4 : vector<2x1x128xf32> to vector<2x128xf32>
    %c0_5 = arith.constant 0 : index
    %c0_6 = arith.constant 0 : index
    %6 = vector.load %arg7[%c0_5, %c0_6] : memref<2x32xf32, #tpu.memory_space<vmem>>, vector<2x32xf32>
    %7 = arith.truncf %6 : vector<2x32xf32> to vector<2x32xbf16>
    %cst = arith.constant dense<0.000000e+00> : vector<2x128xf32>
    %8 = tpu.matmul %7, %3, %cst {dimension_numbers = #tpu.dot_dimension_numbers<[1], [0], [0], [1], [0, 0, 1, 1], [], []>} : vector<2x32xbf16>, vector<32x128xbf16>, vector<2x128xf32> -> vector<2x128xf32>
    %9 = arith.addf %5, %8 : vector<2x128xf32>
    %10 = vector.extract_strided_slice %9 {offsets = [0, 0], sizes = [2, 32], strides = [1, 1]} : vector<2x128xf32> to vector<2x32xf32>
    %11 = arith.negf %10 : vector<2x32xf32>
    %12 = math.exp %11 : vector<2x32xf32>
    %cst_7 = arith.constant 1.000000e+00 : f32
    %13 = vector.broadcast %cst_7 : f32 to vector<2x32xf32>
    %14 = arith.addf %13, %12 : vector<2x32xf32>
    %15 = arith.divf %13, %14 : vector<2x32xf32>
    %16 = vector.extract_strided_slice %9 {offsets = [0, 32], sizes = [2, 32], strides = [1, 1]} : vector<2x128xf32> to vector<2x32xf32>
    %17 = arith.negf %16 : vector<2x32xf32>
    %18 = math.exp %17 : vector<2x32xf32>
    %cst_8 = arith.constant 1.000000e+00 : f32
    %19 = vector.broadcast %cst_8 : f32 to vector<2x32xf32>
    %20 = arith.addf %19, %18 : vector<2x32xf32>
    %21 = arith.divf %19, %20 : vector<2x32xf32>
    %22 = vector.extract_strided_slice %9 {offsets = [0, 64], sizes = [2, 32], strides = [1, 1]} : vector<2x128xf32> to vector<2x32xf32>
    %23 = math.tanh %22 : vector<2x32xf32>
    %24 = vector.extract_strided_slice %9 {offsets = [0, 96], sizes = [2, 32], strides = [1, 1]} : vector<2x128xf32> to vector<2x32xf32>
    %25 = arith.negf %24 : vector<2x32xf32>
    %26 = math.exp %25 : vector<2x32xf32>
    %cst_9 = arith.constant 1.000000e+00 : f32
    %27 = vector.broadcast %cst_9 : f32 to vector<2x32xf32>
    %28 = arith.addf %27, %26 : vector<2x32xf32>
    %29 = arith.divf %27, %28 : vector<2x32xf32>
    %c0_10 = arith.constant 0 : index
    %c0_11 = arith.constant 0 : index
    %30 = vector.load %arg8[%c0_10, %c0_11] : memref<2x32xf32, #tpu.memory_space<vmem>>, vector<2x32xf32>
    %31 = arith.mulf %21, %30 : vector<2x32xf32>
    %32 = arith.mulf %15, %23 : vector<2x32xf32>
    %33 = arith.addf %31, %32 : vector<2x32xf32>
    %34 = math.tanh %33 : vector<2x32xf32>
    %35 = arith.mulf %29, %34 : vector<2x32xf32>
    %c0_12 = arith.constant 0 : index
    %c0_13 = arith.constant 0 : index
    %36 = vector.load %arg8[%c0_12, %c0_13] : memref<2x32xf32, #tpu.memory_space<vmem>>, vector<2x32xf32>
    tpu.vector_store %arg8[%c0_12, %c0_13], %33 {strides = array<i32>} : memref<2x32xf32, #tpu.memory_space<vmem>>, vector<2x32xf32>,
    %c0_14 = arith.constant 0 : index
    %c0_15 = arith.constant 0 : index
    %37 = vector.load %arg7[%c0_14, %c0_15] : memref<2x32xf32, #tpu.memory_space<vmem>>, vector<2x32xf32>
    tpu.vector_store %arg7[%c0_14, %c0_15], %35 {strides = array<i32>} : memref<2x32xf32, #tpu.memory_space<vmem>>, vector<2x32xf32>,
    %c0_16 = arith.constant 0 : index
    %c0_17 = arith.constant 0 : index
    %c0_18 = arith.constant 0 : index
    %38 = vector.load %arg6[%c0_16, %c0_17, %c0_18] : memref<2x8x32xf32, #tpu.memory_space<vmem>>, vector<2x1x32xf32>
    %39 = vector.shape_cast %38 : vector<2x1x32xf32> to vector<2x32xf32>
    %40 = vector.shape_cast %35 : vector<2x32xf32> to vector<2x1x32xf32>
    tpu.vector_store %arg6[%c0_16, %c0_17, %c0_18], %40 {strides = array<i32>} : memref<2x8x32xf32, #tpu.memory_space<vmem>>, vector<2x1x32xf32>,
    %c0_19 = arith.constant 0 : index
    %c1 = arith.constant 1 : index
    %c0_20 = arith.constant 0 : index
    %41 = vector.load %arg1[%c0_19, %c1, %c0_20] : memref<2x8x128xf32, #tpu.memory_space<vmem>>, vector<2x1x128xf32>
    %42 = vector.shape_cast %41 : vector<2x1x128xf32> to vector<2x128xf32>
    %c0_21 = arith.constant 0 : index
    %c0_22 = arith.constant 0 : index
    %43 = vector.load %arg7[%c0_21, %c0_22] : memref<2x32xf32, #tpu.memory_space<vmem>>, vector<2x32xf32>
    %44 = arith.truncf %43 : vector<2x32xf32> to vector<2x32xbf16>
    %cst_23 = arith.constant dense<0.000000e+00> : vector<2x128xf32>
    %45 = tpu.matmul %44, %3, %cst_23 {dimension_numbers = #tpu.dot_dimension_numbers<[1], [0], [0], [1], [0, 0, 1, 1], [], []>} : vector<2x32xbf16>, vector<32x128xbf16>, vector<2x128xf32> -> vector<2x128xf32>
    %46 = arith.addf %42, %45 : vector<2x128xf32>
    %47 = vector.extract_strided_slice %46 {offsets = [0, 0], sizes = [2, 32], strides = [1, 1]} : vector<2x128xf32> to vector<2x32xf32>
    %48 = arith.negf %47 : vector<2x32xf32>
    %49 = math.exp %48 : vector<2x32xf32>
    %cst_24 = arith.constant 1.000000e+00 : f32
    %50 = vector.broadcast %cst_24 : f32 to vector<2x32xf32>
    %51 = arith.addf %50, %49 : vector<2x32xf32>
    %52 = arith.divf %50, %51 : vector<2x32xf32>
    %53 = vector.extract_strided_slice %46 {offsets = [0, 32], sizes = [2, 32], strides = [1, 1]} : vector<2x128xf32> to vector<2x32xf32>
    %54 = arith.negf %53 : vector<2x32xf32>
    %55 = math.exp %54 : vector<2x32xf32>
    %cst_25 = arith.constant 1.000000e+00 : f32
    %56 = vector.broadcast %cst_25 : f32 to vector<2x32xf32>
    %57 = arith.addf %56, %55 : vector<2x32xf32>
    %58 = arith.divf %56, %57 : vector<2x32xf32>
    %59 = vector.extract_strided_slice %46 {offsets = [0, 64], sizes = [2, 32], strides = [1, 1]} : vector<2x128xf32> to vector<2x32xf32>
    %60 = math.tanh %59 : vector<2x32xf32>
    %61 = vector.extract_strided_slice %46 {offsets = [0, 96], sizes = [2, 32], strides = [1, 1]} : vector<2x128xf32> to vector<2x32xf32>
    %62 = arith.negf %61 : vector<2x32xf32>
    %63 = math.exp %62 : vector<2x32xf32>
    %cst_26 = arith.constant 1.000000e+00 : f32
    %64 = vector.broadcast %cst_26 : f32 to vector<2x32xf32>
    %65 = arith.addf %64, %63 : vector<2x32xf32>
    %66 = arith.divf %64, %65 : vector<2x32xf32>
    %c0_27 = arith.constant 0 : index
    %c0_28 = arith.constant 0 : index
    %67 = vector.load %arg8[%c0_27, %c0_28] : memref<2x32xf32, #tpu.memory_space<vmem>>, vector<2x32xf32>
    %68 = arith.mulf %58, %67 : vector<2x32xf32>
    %69 = arith.mulf %52, %60 : vector<2x32xf32>
    %70 = arith.addf %68, %69 : vector<2x32xf32>
    %71 = math.tanh %70 : vector<2x32xf32>
    %72 = arith.mulf %66, %71 : vector<2x32xf32>
    %c0_29 = arith.constant 0 : index
    %c0_30 = arith.constant 0 : index
    %73 = vector.load %arg8[%c0_29, %c0_30] : memref<2x32xf32, #tpu.memory_space<vmem>>, vector<2x32xf32>
    tpu.vector_store %arg8[%c0_29, %c0_30], %70 {strides = array<i32>} : memref<2x32xf32, #tpu.memory_space<vmem>>, vector<2x32xf32>,
    %c0_31 = arith.constant 0 : index
    %c0_32 = arith.constant 0 : index
    %74 = vector.load %arg7[%c0_31, %c0_32] : memref<2x32xf32, #tpu.memory_space<vmem>>, vector<2x32xf32>
    tpu.vector_store %arg7[%c0_31, %c0_32], %72 {strides = array<i32>} : memref<2x32xf32, #tpu.memory_space<vmem>>, vector<2x32xf32>,
    %c0_33 = arith.constant 0 : index
    %c1_34 = arith.constant 1 : index
    %c0_35 = arith.constant 0 : index
    %75 = vector.load %arg6[%c0_33, %c1_34, %c0_35] : memref<2x8x32xf32, #tpu.memory_space<vmem>>, vector<2x1x32xf32>
    %76 = vector.shape_cast %75 : vector<2x1x32xf32> to vector<2x32xf32>
    %77 = vector.shape_cast %72 : vector<2x32xf32> to vector<2x1x32xf32>
    tpu.vector_store %arg6[%c0_33, %c1_34, %c0_35], %77 {strides = array<i32>} : memref<2x8x32xf32, #tpu.memory_space<vmem>>, vector<2x1x32xf32>,
    %c0_36 = arith.constant 0 : index
    %c2 = arith.constant 2 : index
    %c0_37 = arith.constant 0 : index
    %78 = vector.load %arg1[%c0_36, %c2, %c0_37] : memref<2x8x128xf32, #tpu.memory_space<vmem>>, vector<2x1x128xf32>
    %79 = vector.shape_cast %78 : vector<2x1x128xf32> to vector<2x128xf32>
    %c0_38 = arith.constant 0 : index
    %c0_39 = arith.constant 0 : index
    %80 = vector.load %arg7[%c0_38, %c0_39] : memref<2x32xf32, #tpu.memory_space<vmem>>, vector<2x32xf32>
    %81 = arith.truncf %80 : vector<2x32xf32> to vector<2x32xbf16>
    %cst_40 = arith.constant dense<0.000000e+00> : vector<2x128xf32>
    %82 = tpu.matmul %81, %3, %cst_40 {dimension_numbers = #tpu.dot_dimension_numbers<[1], [0], [0], [1], [0, 0, 1, 1], [], []>} : vector<2x32xbf16>, vector<32x128xbf16>, vector<2x128xf32> -> vector<2x128xf32>
    %83 = arith.addf %79, %82 : vector<2x128xf32>
    %84 = vector.extract_strided_slice %83 {offsets = [0, 0], sizes = [2, 32], strides = [1, 1]} : vector<2x128xf32> to vector<2x32xf32>
    %85 = arith.negf %84 : vector<2x32xf32>
    %86 = math.exp %85 : vector<2x32xf32>
    %cst_41 = arith.constant 1.000000e+00 : f32
    %87 = vector.broadcast %cst_41 : f32 to vector<2x32xf32>
    %88 = arith.addf %87, %86 : vector<2x32xf32>
    %89 = arith.divf %87, %88 : vector<2x32xf32>
    %90 = vector.extract_strided_slice %83 {offsets = [0, 32], sizes = [2, 32], strides = [1, 1]} : vector<2x128xf32> to vector<2x32xf32>
    %91 = arith.negf %90 : vector<2x32xf32>
    %92 = math.exp %91 : vector<2x32xf32>
    %cst_42 = arith.constant 1.000000e+00 : f32
    %93 = vector.broadcast %cst_42 : f32 to vector<2x32xf32>
    %94 = arith.addf %93, %92 : vector<2x32xf32>
    %95 = arith.divf %93, %94 : vector<2x32xf32>
    %96 = vector.extract_strided_slice %83 {offsets = [0, 64], sizes = [2, 32], strides = [1, 1]} : vector<2x128xf32> to vector<2x32xf32>
    %97 = math.tanh %96 : vector<2x32xf32>
    %98 = vector.extract_strided_slice %83 {offsets = [0, 96], sizes = [2, 32], strides = [1, 1]} : vector<2x128xf32> to vector<2x32xf32>
    %99 = arith.negf %98 : vector<2x32xf32>
    %100 = math.exp %99 : vector<2x32xf32>
    %cst_43 = arith.constant 1.000000e+00 : f32
    %101 = vector.broadcast %cst_43 : f32 to vector<2x32xf32>
    %102 = arith.addf %101, %100 : vector<2x32xf32>
    %103 = arith.divf %101, %102 : vector<2x32xf32>
    %c0_44 = arith.constant 0 : index
    %c0_45 = arith.constant 0 : index
    %104 = vector.load %arg8[%c0_44, %c0_45] : memref<2x32xf32, #tpu.memory_space<vmem>>, vector<2x32xf32>
    %105 = arith.mulf %95, %104 : vector<2x32xf32>
    %106 = arith.mulf %89, %97 : vector<2x32xf32>
    %107 = arith.addf %105, %106 : vector<2x32xf32>
    %108 = math.tanh %107 : vector<2x32xf32>
    %109 = arith.mulf %103, %108 : vector<2x32xf32>
    %c0_46 = arith.constant 0 : index
    %c0_47 = arith.constant 0 : index
    %110 = vector.load %arg8[%c0_46, %c0_47] : memref<2x32xf32, #tpu.memory_space<vmem>>, vector<2x32xf32>
    tpu.vector_store %arg8[%c0_46, %c0_47], %107 {strides = array<i32>} : memref<2x32xf32, #tpu.memory_space<vmem>>, vector<2x32xf32>,
    %c0_48 = arith.constant 0 : index
    %c0_49 = arith.constant 0 : index
    %111 = vector.load %arg7[%c0_48, %c0_49] : memref<2x32xf32, #tpu.memory_space<vmem>>, vector<2x32xf32>
    tpu.vector_store %arg7[%c0_48, %c0_49], %109 {strides = array<i32>} : memref<2x32xf32, #tpu.memory_space<vmem>>, vector<2x32xf32>,
    %c0_50 = arith.constant 0 : index
    %c2_51 = arith.constant 2 : index
    %c0_52 = arith.constant 0 : index
    %112 = vector.load %arg6[%c0_50, %c2_51, %c0_52] : memref<2x8x32xf32, #tpu.memory_space<vmem>>, vector<2x1x32xf32>
    %113 = vector.shape_cast %112 : vector<2x1x32xf32> to vector<2x32xf32>
    %114 = vector.shape_cast %109 : vector<2x32xf32> to vector<2x1x32xf32>
    tpu.vector_store %arg6[%c0_50, %c2_51, %c0_52], %114 {strides = array<i32>} : memref<2x8x32xf32, #tpu.memory_space<vmem>>, vector<2x1x32xf32>,
    %c0_53 = arith.constant 0 : index
    %c3 = arith.constant 3 : index
    %c0_54 = arith.constant 0 : index
    %115 = vector.load %arg1[%c0_53, %c3, %c0_54] : memref<2x8x128xf32, #tpu.memory_space<vmem>>, vector<2x1x128xf32>
    %116 = vector.shape_cast %115 : vector<2x1x128xf32> to vector<2x128xf32>
    %c0_55 = arith.constant 0 : index
    %c0_56 = arith.constant 0 : index
    %117 = vector.load %arg7[%c0_55, %c0_56] : memref<2x32xf32, #tpu.memory_space<vmem>>, vector<2x32xf32>
    %118 = arith.truncf %117 : vector<2x32xf32> to vector<2x32xbf16>
    %cst_57 = arith.constant dense<0.000000e+00> : vector<2x128xf32>
    %119 = tpu.matmul %118, %3, %cst_57 {dimension_numbers = #tpu.dot_dimension_numbers<[1], [0], [0], [1], [0, 0, 1, 1], [], []>} : vector<2x32xbf16>, vector<32x128xbf16>, vector<2x128xf32> -> vector<2x128xf32>
    %120 = arith.addf %116, %119 : vector<2x128xf32>
    %121 = vector.extract_strided_slice %120 {offsets = [0, 0], sizes = [2, 32], strides = [1, 1]} : vector<2x128xf32> to vector<2x32xf32>
    %122 = arith.negf %121 : vector<2x32xf32>
    %123 = math.exp %122 : vector<2x32xf32>
    %cst_58 = arith.constant 1.000000e+00 : f32
    %124 = vector.broadcast %cst_58 : f32 to vector<2x32xf32>
    %125 = arith.addf %124, %123 : vector<2x32xf32>
    %126 = arith.divf %124, %125 : vector<2x32xf32>
    %127 = vector.extract_strided_slice %120 {offsets = [0, 32], sizes = [2, 32], strides = [1, 1]} : vector<2x128xf32> to vector<2x32xf32>
    %128 = arith.negf %127 : vector<2x32xf32>
    %129 = math.exp %128 : vector<2x32xf32>
    %cst_59 = arith.constant 1.000000e+00 : f32
    %130 = vector.broadcast %cst_59 : f32 to vector<2x32xf32>
    %131 = arith.addf %130, %129 : vector<2x32xf32>
    %132 = arith.divf %130, %131 : vector<2x32xf32>
    %133 = vector.extract_strided_slice %120 {offsets = [0, 64], sizes = [2, 32], strides = [1, 1]} : vector<2x128xf32> to vector<2x32xf32>
    %134 = math.tanh %133 : vector<2x32xf32>
    %135 = vector.extract_strided_slice %120 {offsets = [0, 96], sizes = [2, 32], strides = [1, 1]} : vector<2x128xf32> to vector<2x32xf32>
    %136 = arith.negf %135 : vector<2x32xf32>
    %137 = math.exp %136 : vector<2x32xf32>
    %cst_60 = arith.constant 1.000000e+00 : f32
    %138 = vector.broadcast %cst_60 : f32 to vector<2x32xf32>
    %139 = arith.addf %138, %137 : vector<2x32xf32>
    %140 = arith.divf %138, %139 : vector<2x32xf32>
    %c0_61 = arith.constant 0 : index
    %c0_62 = arith.constant 0 : index
    %141 = vector.load %arg8[%c0_61, %c0_62] : memref<2x32xf32, #tpu.memory_space<vmem>>, vector<2x32xf32>
    %142 = arith.mulf %132, %141 : vector<2x32xf32>
    %143 = arith.mulf %126, %134 : vector<2x32xf32>
    %144 = arith.addf %142, %143 : vector<2x32xf32>
    %145 = math.tanh %144 : vector<2x32xf32>
    %146 = arith.mulf %140, %145 : vector<2x32xf32>
    %c0_63 = arith.constant 0 : index
    %c0_64 = arith.constant 0 : index
    %147 = vector.load %arg8[%c0_63, %c0_64] : memref<2x32xf32, #tpu.memory_space<vmem>>, vector<2x32xf32>
    tpu.vector_store %arg8[%c0_63, %c0_64], %144 {strides = array<i32>} : memref<2x32xf32, #tpu.memory_space<vmem>>, vector<2x32xf32>,
    %c0_65 = arith.constant 0 : index
    %c0_66 = arith.constant 0 : index
    %148 = vector.load %arg7[%c0_65, %c0_66] : memref<2x32xf32, #tpu.memory_space<vmem>>, vector<2x32xf32>
    tpu.vector_store %arg7[%c0_65, %c0_66], %146 {strides = array<i32>} : memref<2x32xf32, #tpu.memory_space<vmem>>, vector<2x32xf32>,
    %c0_67 = arith.constant 0 : index
    %c3_68 = arith.constant 3 : index
    %c0_69 = arith.constant 0 : index
    %149 = vector.load %arg6[%c0_67, %c3_68, %c0_69] : memref<2x8x32xf32, #tpu.memory_space<vmem>>, vector<2x1x32xf32>
    %150 = vector.shape_cast %149 : vector<2x1x32xf32> to vector<2x32xf32>
    %151 = vector.shape_cast %146 : vector<2x32xf32> to vector<2x1x32xf32>
    tpu.vector_store %arg6[%c0_67, %c3_68, %c0_69], %151 {strides = array<i32>} : memref<2x8x32xf32, #tpu.memory_space<vmem>>, vector<2x1x32xf32>,
    %c0_70 = arith.constant 0 : index
    %c4 = arith.constant 4 : index
    %c0_71 = arith.constant 0 : index
    %152 = vector.load %arg1[%c0_70, %c4, %c0_71] : memref<2x8x128xf32, #tpu.memory_space<vmem>>, vector<2x1x128xf32>
    %153 = vector.shape_cast %152 : vector<2x1x128xf32> to vector<2x128xf32>
    %c0_72 = arith.constant 0 : index
    %c0_73 = arith.constant 0 : index
    %154 = vector.load %arg7[%c0_72, %c0_73] : memref<2x32xf32, #tpu.memory_space<vmem>>, vector<2x32xf32>
    %155 = arith.truncf %154 : vector<2x32xf32> to vector<2x32xbf16>
    %cst_74 = arith.constant dense<0.000000e+00> : vector<2x128xf32>
    %156 = tpu.matmul %155, %3, %cst_74 {dimension_numbers = #tpu.dot_dimension_numbers<[1], [0], [0], [1], [0, 0, 1, 1], [], []>} : vector<2x32xbf16>, vector<32x128xbf16>, vector<2x128xf32> -> vector<2x128xf32>
    %157 = arith.addf %153, %156 : vector<2x128xf32>
    %158 = vector.extract_strided_slice %157 {offsets = [0, 0], sizes = [2, 32], strides = [1, 1]} : vector<2x128xf32> to vector<2x32xf32>
    %159 = arith.negf %158 : vector<2x32xf32>
    %160 = math.exp %159 : vector<2x32xf32>
    %cst_75 = arith.constant 1.000000e+00 : f32
    %161 = vector.broadcast %cst_75 : f32 to vector<2x32xf32>
    %162 = arith.addf %161, %160 : vector<2x32xf32>
    %163 = arith.divf %161, %162 : vector<2x32xf32>
    %164 = vector.extract_strided_slice %157 {offsets = [0, 32], sizes = [2, 32], strides = [1, 1]} : vector<2x128xf32> to vector<2x32xf32>
    %165 = arith.negf %164 : vector<2x32xf32>
    %166 = math.exp %165 : vector<2x32xf32>
    %cst_76 = arith.constant 1.000000e+00 : f32
    %167 = vector.broadcast %cst_76 : f32 to vector<2x32xf32>
    %168 = arith.addf %167, %166 : vector<2x32xf32>
    %169 = arith.divf %167, %168 : vector<2x32xf32>
    %170 = vector.extract_strided_slice %157 {offsets = [0, 64], sizes = [2, 32], strides = [1, 1]} : vector<2x128xf32> to vector<2x32xf32>
    %171 = math.tanh %170 : vector<2x32xf32>
    %172 = vector.extract_strided_slice %157 {offsets = [0, 96], sizes = [2, 32], strides = [1, 1]} : vector<2x128xf32> to vector<2x32xf32>
    %173 = arith.negf %172 : vector<2x32xf32>
    %174 = math.exp %173 : vector<2x32xf32>
    %cst_77 = arith.constant 1.000000e+00 : f32
    %175 = vector.broadcast %cst_77 : f32 to vector<2x32xf32>
    %176 = arith.addf %175, %174 : vector<2x32xf32>
    %177 = arith.divf %175, %176 : vector<2x32xf32>
    %c0_78 = arith.constant 0 : index
    %c0_79 = arith.constant 0 : index
    %178 = vector.load %arg8[%c0_78, %c0_79] : memref<2x32xf32, #tpu.memory_space<vmem>>, vector<2x32xf32>
    %179 = arith.mulf %169, %178 : vector<2x32xf32>
    %180 = arith.mulf %163, %171 : vector<2x32xf32>
    %181 = arith.addf %179, %180 : vector<2x32xf32>
    %182 = math.tanh %181 : vector<2x32xf32>
    %183 = arith.mulf %177, %182 : vector<2x32xf32>
    %c0_80 = arith.constant 0 : index
    %c0_81 = arith.constant 0 : index
    %184 = vector.load %arg8[%c0_80, %c0_81] : memref<2x32xf32, #tpu.memory_space<vmem>>, vector<2x32xf32>
    tpu.vector_store %arg8[%c0_80, %c0_81], %181 {strides = array<i32>} : memref<2x32xf32, #tpu.memory_space<vmem>>, vector<2x32xf32>,
    %c0_82 = arith.constant 0 : index
    %c0_83 = arith.constant 0 : index
    %185 = vector.load %arg7[%c0_82, %c0_83] : memref<2x32xf32, #tpu.memory_space<vmem>>, vector<2x32xf32>
    tpu.vector_store %arg7[%c0_82, %c0_83], %183 {strides = array<i32>} : memref<2x32xf32, #tpu.memory_space<vmem>>, vector<2x32xf32>,
    %c0_84 = arith.constant 0 : index
    %c4_85 = arith.constant 4 : index
    %c0_86 = arith.constant 0 : index
    %186 = vector.load %arg6[%c0_84, %c4_85, %c0_86] : memref<2x8x32xf32, #tpu.memory_space<vmem>>, vector<2x1x32xf32>
    %187 = vector.shape_cast %186 : vector<2x1x32xf32> to vector<2x32xf32>
    %188 = vector.shape_cast %183 : vector<2x32xf32> to vector<2x1x32xf32>
    tpu.vector_store %arg6[%c0_84, %c4_85, %c0_86], %188 {strides = array<i32>} : memref<2x8x32xf32, #tpu.memory_space<vmem>>, vector<2x1x32xf32>,
    %c0_87 = arith.constant 0 : index
    %c5 = arith.constant 5 : index
    %c0_88 = arith.constant 0 : index
    %189 = vector.load %arg1[%c0_87, %c5, %c0_88] : memref<2x8x128xf32, #tpu.memory_space<vmem>>, vector<2x1x128xf32>
    %190 = vector.shape_cast %189 : vector<2x1x128xf32> to vector<2x128xf32>
    %c0_89 = arith.constant 0 : index
    %c0_90 = arith.constant 0 : index
    %191 = vector.load %arg7[%c0_89, %c0_90] : memref<2x32xf32, #tpu.memory_space<vmem>>, vector<2x32xf32>
    %192 = arith.truncf %191 : vector<2x32xf32> to vector<2x32xbf16>
    %cst_91 = arith.constant dense<0.000000e+00> : vector<2x128xf32>
    %193 = tpu.matmul %192, %3, %cst_91 {dimension_numbers = #tpu.dot_dimension_numbers<[1], [0], [0], [1], [0, 0, 1, 1], [], []>} : vector<2x32xbf16>, vector<32x128xbf16>, vector<2x128xf32> -> vector<2x128xf32>
    %194 = arith.addf %190, %193 : vector<2x128xf32>
    %195 = vector.extract_strided_slice %194 {offsets = [0, 0], sizes = [2, 32], strides = [1, 1]} : vector<2x128xf32> to vector<2x32xf32>
    %196 = arith.negf %195 : vector<2x32xf32>
    %197 = math.exp %196 : vector<2x32xf32>
    %cst_92 = arith.constant 1.000000e+00 : f32
    %198 = vector.broadcast %cst_92 : f32 to vector<2x32xf32>
    %199 = arith.addf %198, %197 : vector<2x32xf32>
    %200 = arith.divf %198, %199 : vector<2x32xf32>
    %201 = vector.extract_strided_slice %194 {offsets = [0, 32], sizes = [2, 32], strides = [1, 1]} : vector<2x128xf32> to vector<2x32xf32>
    %202 = arith.negf %201 : vector<2x32xf32>
    %203 = math.exp %202 : vector<2x32xf32>
    %cst_93 = arith.constant 1.000000e+00 : f32
    %204 = vector.broadcast %cst_93 : f32 to vector<2x32xf32>
    %205 = arith.addf %204, %203 : vector<2x32xf32>
    %206 = arith.divf %204, %205 : vector<2x32xf32>
    %207 = vector.extract_strided_slice %194 {offsets = [0, 64], sizes = [2, 32], strides = [1, 1]} : vector<2x128xf32> to vector<2x32xf32>
    %208 = math.tanh %207 : vector<2x32xf32>
    %209 = vector.extract_strided_slice %194 {offsets = [0, 96], sizes = [2, 32], strides = [1, 1]} : vector<2x128xf32> to vector<2x32xf32>
    %210 = arith.negf %209 : vector<2x32xf32>
    %211 = math.exp %210 : vector<2x32xf32>
    %cst_94 = arith.constant 1.000000e+00 : f32
    %212 = vector.broadcast %cst_94 : f32 to vector<2x32xf32>
    %213 = arith.addf %212, %211 : vector<2x32xf32>
    %214 = arith.divf %212, %213 : vector<2x32xf32>
    %c0_95 = arith.constant 0 : index
    %c0_96 = arith.constant 0 : index
    %215 = vector.load %arg8[%c0_95, %c0_96] : memref<2x32xf32, #tpu.memory_space<vmem>>, vector<2x32xf32>
    %216 = arith.mulf %206, %215 : vector<2x32xf32>
    %217 = arith.mulf %200, %208 : vector<2x32xf32>
    %218 = arith.addf %216, %217 : vector<2x32xf32>
    %219 = math.tanh %218 : vector<2x32xf32>
    %220 = arith.mulf %214, %219 : vector<2x32xf32>
    %c0_97 = arith.constant 0 : index
    %c0_98 = arith.constant 0 : index
    %221 = vector.load %arg8[%c0_97, %c0_98] : memref<2x32xf32, #tpu.memory_space<vmem>>, vector<2x32xf32>
    tpu.vector_store %arg8[%c0_97, %c0_98], %218 {strides = array<i32>} : memref<2x32xf32, #tpu.memory_space<vmem>>, vector<2x32xf32>,
    %c0_99 = arith.constant 0 : index
    %c0_100 = arith.constant 0 : index
    %222 = vector.load %arg7[%c0_99, %c0_100] : memref<2x32xf32, #tpu.memory_space<vmem>>, vector<2x32xf32>
    tpu.vector_store %arg7[%c0_99, %c0_100], %220 {strides = array<i32>} : memref<2x32xf32, #tpu.memory_space<vmem>>, vector<2x32xf32>,
    %c0_101 = arith.constant 0 : index
    %c5_102 = arith.constant 5 : index
    %c0_103 = arith.constant 0 : index
    %223 = vector.load %arg6[%c0_101, %c5_102, %c0_103] : memref<2x8x32xf32, #tpu.memory_space<vmem>>, vector<2x1x32xf32>
    %224 = vector.shape_cast %223 : vector<2x1x32xf32> to vector<2x32xf32>
    %225 = vector.shape_cast %220 : vector<2x32xf32> to vector<2x1x32xf32>
    tpu.vector_store %arg6[%c0_101, %c5_102, %c0_103], %225 {strides = array<i32>} : memref<2x8x32xf32, #tpu.memory_space<vmem>>, vector<2x1x32xf32>,
    %c0_104 = arith.constant 0 : index
    %c6 = arith.constant 6 : index
    %c0_105 = arith.constant 0 : index
    %226 = vector.load %arg1[%c0_104, %c6, %c0_105] : memref<2x8x128xf32, #tpu.memory_space<vmem>>, vector<2x1x128xf32>
    %227 = vector.shape_cast %226 : vector<2x1x128xf32> to vector<2x128xf32>
    %c0_106 = arith.constant 0 : index
    %c0_107 = arith.constant 0 : index
    %228 = vector.load %arg7[%c0_106, %c0_107] : memref<2x32xf32, #tpu.memory_space<vmem>>, vector<2x32xf32>
    %229 = arith.truncf %228 : vector<2x32xf32> to vector<2x32xbf16>
    %cst_108 = arith.constant dense<0.000000e+00> : vector<2x128xf32>
    %230 = tpu.matmul %229, %3, %cst_108 {dimension_numbers = #tpu.dot_dimension_numbers<[1], [0], [0], [1], [0, 0, 1, 1], [], []>} : vector<2x32xbf16>, vector<32x128xbf16>, vector<2x128xf32> -> vector<2x128xf32>
    %231 = arith.addf %227, %230 : vector<2x128xf32>
    %232 = vector.extract_strided_slice %231 {offsets = [0, 0], sizes = [2, 32], strides = [1, 1]} : vector<2x128xf32> to vector<2x32xf32>
    %233 = arith.negf %232 : vector<2x32xf32>
    %234 = math.exp %233 : vector<2x32xf32>
    %cst_109 = arith.constant 1.000000e+00 : f32
    %235 = vector.broadcast %cst_109 : f32 to vector<2x32xf32>
    %236 = arith.addf %235, %234 : vector<2x32xf32>
    %237 = arith.divf %235, %236 : vector<2x32xf32>
    %238 = vector.extract_strided_slice %231 {offsets = [0, 32], sizes = [2, 32], strides = [1, 1]} : vector<2x128xf32> to vector<2x32xf32>
    %239 = arith.negf %238 : vector<2x32xf32>
    %240 = math.exp %239 : vector<2x32xf32>
    %cst_110 = arith.constant 1.000000e+00 : f32
    %241 = vector.broadcast %cst_110 : f32 to vector<2x32xf32>
    %242 = arith.addf %241, %240 : vector<2x32xf32>
    %243 = arith.divf %241, %242 : vector<2x32xf32>
    %244 = vector.extract_strided_slice %231 {offsets = [0, 64], sizes = [2, 32], strides = [1, 1]} : vector<2x128xf32> to vector<2x32xf32>
    %245 = math.tanh %244 : vector<2x32xf32>
    %246 = vector.extract_strided_slice %231 {offsets = [0, 96], sizes = [2, 32], strides = [1, 1]} : vector<2x128xf32> to vector<2x32xf32>
    %247 = arith.negf %246 : vector<2x32xf32>
    %248 = math.exp %247 : vector<2x32xf32>
    %cst_111 = arith.constant 1.000000e+00 : f32
    %249 = vector.broadcast %cst_111 : f32 to vector<2x32xf32>
    %250 = arith.addf %249, %248 : vector<2x32xf32>
    %251 = arith.divf %249, %250 : vector<2x32xf32>
    %c0_112 = arith.constant 0 : index
    %c0_113 = arith.constant 0 : index
    %252 = vector.load %arg8[%c0_112, %c0_113] : memref<2x32xf32, #tpu.memory_space<vmem>>, vector<2x32xf32>
    %253 = arith.mulf %243, %252 : vector<2x32xf32>
    %254 = arith.mulf %237, %245 : vector<2x32xf32>
    %255 = arith.addf %253, %254 : vector<2x32xf32>
    %256 = math.tanh %255 : vector<2x32xf32>
    %257 = arith.mulf %251, %256 : vector<2x32xf32>
    %c0_114 = arith.constant 0 : index
    %c0_115 = arith.constant 0 : index
    %258 = vector.load %arg8[%c0_114, %c0_115] : memref<2x32xf32, #tpu.memory_space<vmem>>, vector<2x32xf32>
    tpu.vector_store %arg8[%c0_114, %c0_115], %255 {strides = array<i32>} : memref<2x32xf32, #tpu.memory_space<vmem>>, vector<2x32xf32>,
    %c0_116 = arith.constant 0 : index
    %c0_117 = arith.constant 0 : index
    %259 = vector.load %arg7[%c0_116, %c0_117] : memref<2x32xf32, #tpu.memory_space<vmem>>, vector<2x32xf32>
    tpu.vector_store %arg7[%c0_116, %c0_117], %257 {strides = array<i32>} : memref<2x32xf32, #tpu.memory_space<vmem>>, vector<2x32xf32>,
    %c0_118 = arith.constant 0 : index
    %c6_119 = arith.constant 6 : index
    %c0_120 = arith.constant 0 : index
    %260 = vector.load %arg6[%c0_118, %c6_119, %c0_120] : memref<2x8x32xf32, #tpu.memory_space<vmem>>, vector<2x1x32xf32>
    %261 = vector.shape_cast %260 : vector<2x1x32xf32> to vector<2x32xf32>
    %262 = vector.shape_cast %257 : vector<2x32xf32> to vector<2x1x32xf32>
    tpu.vector_store %arg6[%c0_118, %c6_119, %c0_120], %262 {strides = array<i32>} : memref<2x8x32xf32, #tpu.memory_space<vmem>>, vector<2x1x32xf32>,
    %c0_121 = arith.constant 0 : index
    %c7 = arith.constant 7 : index
    %c0_122 = arith.constant 0 : index
    %263 = vector.load %arg1[%c0_121, %c7, %c0_122] : memref<2x8x128xf32, #tpu.memory_space<vmem>>, vector<2x1x128xf32>
    %264 = vector.shape_cast %263 : vector<2x1x128xf32> to vector<2x128xf32>
    %c0_123 = arith.constant 0 : index
    %c0_124 = arith.constant 0 : index
    %265 = vector.load %arg7[%c0_123, %c0_124] : memref<2x32xf32, #tpu.memory_space<vmem>>, vector<2x32xf32>
    %266 = arith.truncf %265 : vector<2x32xf32> to vector<2x32xbf16>
    %cst_125 = arith.constant dense<0.000000e+00> : vector<2x128xf32>
    %267 = tpu.matmul %266, %3, %cst_125 {dimension_numbers = #tpu.dot_dimension_numbers<[1], [0], [0], [1], [0, 0, 1, 1], [], []>} : vector<2x32xbf16>, vector<32x128xbf16>, vector<2x128xf32> -> vector<2x128xf32>
    %268 = arith.addf %264, %267 : vector<2x128xf32>
    %269 = vector.extract_strided_slice %268 {offsets = [0, 0], sizes = [2, 32], strides = [1, 1]} : vector<2x128xf32> to vector<2x32xf32>
    %270 = arith.negf %269 : vector<2x32xf32>
    %271 = math.exp %270 : vector<2x32xf32>
    %cst_126 = arith.constant 1.000000e+00 : f32
    %272 = vector.broadcast %cst_126 : f32 to vector<2x32xf32>
    %273 = arith.addf %272, %271 : vector<2x32xf32>
    %274 = arith.divf %272, %273 : vector<2x32xf32>
    %275 = vector.extract_strided_slice %268 {offsets = [0, 32], sizes = [2, 32], strides = [1, 1]} : vector<2x128xf32> to vector<2x32xf32>
    %276 = arith.negf %275 : vector<2x32xf32>
    %277 = math.exp %276 : vector<2x32xf32>
    %cst_127 = arith.constant 1.000000e+00 : f32
    %278 = vector.broadcast %cst_127 : f32 to vector<2x32xf32>
    %279 = arith.addf %278, %277 : vector<2x32xf32>
    %280 = arith.divf %278, %279 : vector<2x32xf32>
    %281 = vector.extract_strided_slice %268 {offsets = [0, 64], sizes = [2, 32], strides = [1, 1]} : vector<2x128xf32> to vector<2x32xf32>
    %282 = math.tanh %281 : vector<2x32xf32>
    %283 = vector.extract_strided_slice %268 {offsets = [0, 96], sizes = [2, 32], strides = [1, 1]} : vector<2x128xf32> to vector<2x32xf32>
    %284 = arith.negf %283 : vector<2x32xf32>
    %285 = math.exp %284 : vector<2x32xf32>
    %cst_128 = arith.constant 1.000000e+00 : f32
    %286 = vector.broadcast %cst_128 : f32 to vector<2x32xf32>
    %287 = arith.addf %286, %285 : vector<2x32xf32>
    %288 = arith.divf %286, %287 : vector<2x32xf32>
    %c0_129 = arith.constant 0 : index
    %c0_130 = arith.constant 0 : index
    %289 = vector.load %arg8[%c0_129, %c0_130] : memref<2x32xf32, #tpu.memory_space<vmem>>, vector<2x32xf32>
    %290 = arith.mulf %280, %289 : vector<2x32xf32>
    %291 = arith.mulf %274, %282 : vector<2x32xf32>
    %292 = arith.addf %290, %291 : vector<2x32xf32>
    %293 = math.tanh %292 : vector<2x32xf32>
    %294 = arith.mulf %288, %293 : vector<2x32xf32>
    %c0_131 = arith.constant 0 : index
    %c0_132 = arith.constant 0 : index
    %295 = vector.load %arg8[%c0_131, %c0_132] : memref<2x32xf32, #tpu.memory_space<vmem>>, vector<2x32xf32>
    tpu.vector_store %arg8[%c0_131, %c0_132], %292 {strides = array<i32>} : memref<2x32xf32, #tpu.memory_space<vmem>>, vector<2x32xf32>,
    %c0_133 = arith.constant 0 : index
    %c0_134 = arith.constant 0 : index
    %296 = vector.load %arg7[%c0_133, %c0_134] : memref<2x32xf32, #tpu.memory_space<vmem>>, vector<2x32xf32>
    tpu.vector_store %arg7[%c0_133, %c0_134], %294 {strides = array<i32>} : memref<2x32xf32, #tpu.memory_space<vmem>>, vector<2x32xf32>,
    %c0_135 = arith.constant 0 : index
    %c7_136 = arith.constant 7 : index
    %c0_137 = arith.constant 0 : index
    %297 = vector.load %arg6[%c0_135, %c7_136, %c0_137] : memref<2x8x32xf32, #tpu.memory_space<vmem>>, vector<2x1x32xf32>
    %298 = vector.shape_cast %297 : vector<2x1x32xf32> to vector<2x32xf32>
    %299 = vector.shape_cast %294 : vector<2x32xf32> to vector<2x1x32xf32>
    tpu.vector_store %arg6[%c0_135, %c7_136, %c0_137], %299 {strides = array<i32>} : memref<2x8x32xf32, #tpu.memory_space<vmem>>, vector<2x1x32xf32>,
    %c0_138 = arith.constant 0 : index
    %c0_139 = arith.constant 0 : index
    %c0_140 = arith.constant 0 : index
    %300 = vector.load %arg6[%c0_138, %c0_139, %c0_140] : memref<2x8x32xf32, #tpu.memory_space<vmem>>, vector<2x8x32xf32>
    %301 = arith.truncf %300 : vector<2x8x32xf32> to vector<2x8x32xbf16>
    %c0_141 = arith.constant 0 : index
    %c0_142 = arith.constant 0 : index
    %302 = vector.load %arg3[%c0_141, %c0_142] : memref<32x128xbf16, #tpu.memory_space<vmem>>, vector<32x128xbf16>
    %cst_143 = arith.constant dense<0.000000e+00> : vector<2x8x128xf32>
    %303 = tpu.matmul %301, %302, %cst_143 {dimension_numbers = #tpu.dot_dimension_numbers<[2], [0], [0, 1], [1], [0, 0, 0, 1, 1, 1], [], []>} : vector<2x8x32xbf16>, vector<32x128xbf16>, vector<2x8x128xf32> -> vector<2x8x128xf32>
    %c0_144 = arith.constant 0 : index
    %c0_145 = arith.constant 0 : index
    %c0_146 = arith.constant 0 : index
    %304 = vector.load %arg4[%c0_144, %c0_145, %c0_146] : memref<1x1x128xf32, #tpu.memory_space<vmem>>, vector<1x1x128xf32>
    %305 = vector.broadcast %304 : vector<1x1x128xf32> to vector<2x8x128xf32>
    %306 = arith.addf %303, %305 : vector<2x8x128xf32>
    %c0_147 = arith.constant 0 : index
    %c0_148 = arith.constant 0 : index
    %c0_149 = arith.constant 0 : index
    %307 = vector.load %arg5[%c0_147, %c0_148, %c0_149] : memref<2x8x128xf32, #tpu.memory_space<vmem>>, vector<2x8x128xf32>
    tpu.vector_store %arg5[%c0_147, %c0_148, %c0_149], %306 {strides = array<i32>} : memref<2x8x128xf32, #tpu.memory_space<vmem>>, vector<2x8x128xf32>,
    return
  }
  func.func @transform_0(%arg0: i32) -> (i32, i32, i32) {
    %c0_i32 = arith.constant 0 : i32
    %c0_i32_0 = arith.constant 0 : i32
    %c0_i32_1 = arith.constant 0 : i32
    return %c0_i32, %arg0, %c0_i32_0 : i32, i32, i32
  }
  func.func @transform_1(%arg0: i32) -> (i32, i32) {
    %c0_i32 = arith.constant 0 : i32
    %c0_i32_0 = arith.constant 0 : i32
    %c0_i32_1 = arith.constant 0 : i32
    return %c0_i32, %c0_i32_0 : i32, i32
  }
  func.func @transform_2(%arg0: i32) -> (i32, i32) {
    %c0_i32 = arith.constant 0 : i32
    %c0_i32_0 = arith.constant 0 : i32
    %c0_i32_1 = arith.constant 0 : i32
    return %c0_i32, %c0_i32_0 : i32, i32
  }
  func.func @transform_3(%arg0: i32) -> (i32, i32, i32) {
    %c0_i32 = arith.constant 0 : i32
    %c0_i32_0 = arith.constant 0 : i32
    %c0_i32_1 = arith.constant 0 : i32
    %c0_i32_2 = arith.constant 0 : i32
    return %c0_i32, %c0_i32_0, %c0_i32_1 : i32, i32, i32
  }
  func.func @transform_4(%arg0: i32) -> (i32, i32, i32) {
    %c0_i32 = arith.constant 0 : i32
    %c0_i32_0 = arith.constant 0 : i32
    %c0_i32_1 = arith.constant 0 : i32
    return %c0_i32, %arg0, %c0_i32_0 : i32, i32, i32
  }
}

module attributes {stable_mosaic.version = 11 : i64} {
  func.func @lstm_chunk_kernel(%arg0: i32, %arg1: memref<2x8x128xf32, #tpu.memory_space<vmem>>, %arg2: memref<32x128xbf16, #tpu.memory_space<vmem>>, %arg3: memref<2x8x32xf32, #tpu.memory_space<vmem>>, %arg4: memref<2x32xf32, #tpu.memory_space<vmem>>, %arg5: memref<2x32xf32, #tpu.memory_space<vmem>>) attributes {dimension_semantics = [#tpu.dimension_semantics<arbitrary>], iteration_bounds = array<i64: 1>, scalar_prefetch = 0 : i64, scratch_operands = 2 : i64, tpu.core_type = #tpu.core_type<tc>, window_params = [{transform_indices = @transform_0, window_bounds = array<i64: 2, 8, 128>}, {pipeline_mode = #tpu.pipeline_mode<synchronous>, transform_indices = @transform_1, window_bounds = array<i64: 32, 128>}, {transform_indices = @transform_2, window_bounds = array<i64: 2, 8, 32>}]} {
    %c0_i32 = arith.constant 0 : i32
    %0 = arith.cmpi eq, %arg0, %c0_i32 : i32
    %1 = arith.extui %0 : i1 to i32
    %c0_i32_0 = arith.constant 0 : i32
    %2 = arith.cmpi ne, %1, %c0_i32_0 : i32
    scf.if %2 {
      %cst_138 = arith.constant 0.000000e+00 : f32
      %300 = vector.broadcast %cst_138 : f32 to vector<2x32xf32>
      %c0_139 = arith.constant 0 : index
      %c0_140 = arith.constant 0 : index
      %301 = vector.load %arg4[%c0_139, %c0_140] : memref<2x32xf32, #tpu.memory_space<vmem>>, vector<2x32xf32>
      tpu.vector_store %arg4[%c0_139, %c0_140], %300 {strides = array<i32>} : memref<2x32xf32, #tpu.memory_space<vmem>>, vector<2x32xf32>,
      %cst_141 = arith.constant 0.000000e+00 : f32
      %302 = vector.broadcast %cst_141 : f32 to vector<2x32xf32>
      %c0_142 = arith.constant 0 : index
      %c0_143 = arith.constant 0 : index
      %303 = vector.load %arg5[%c0_142, %c0_143] : memref<2x32xf32, #tpu.memory_space<vmem>>, vector<2x32xf32>
      tpu.vector_store %arg5[%c0_142, %c0_143], %302 {strides = array<i32>} : memref<2x32xf32, #tpu.memory_space<vmem>>, vector<2x32xf32>,
    } else {
    }
    %c0 = arith.constant 0 : index
    %c0_1 = arith.constant 0 : index
    %3 = vector.load %arg2[%c0, %c0_1] : memref<32x128xbf16, #tpu.memory_space<vmem>>, vector<32x128xbf16>
    %c0_2 = arith.constant 0 : index
    %c0_3 = arith.constant 0 : index
    %c0_4 = arith.constant 0 : index
    %4 = vector.load %arg1[%c0_2, %c0_3, %c0_4] : memref<2x8x128xf32, #tpu.memory_space<vmem>>, vector<2x1x128xf32>
    %5 = vector.shape_cast %4 : vector<2x1x128xf32> to vector<2x128xf32>
    %c0_5 = arith.constant 0 : index
    %c0_6 = arith.constant 0 : index
    %6 = vector.load %arg4[%c0_5, %c0_6] : memref<2x32xf32, #tpu.memory_space<vmem>>, vector<2x32xf32>
    %7 = arith.truncf %6 : vector<2x32xf32> to vector<2x32xbf16>
    %cst = arith.constant dense<0.000000e+00> : vector<2x128xf32>
    %8 = tpu.matmul %7, %3, %cst {dimension_numbers = #tpu.dot_dimension_numbers<[1], [0], [0], [1], [0, 0, 1, 1], [], []>} : vector<2x32xbf16>, vector<32x128xbf16>, vector<2x128xf32> -> vector<2x128xf32>
    %9 = arith.addf %5, %8 : vector<2x128xf32>
    %10 = vector.extract_strided_slice %9 {offsets = [0, 0], sizes = [2, 32], strides = [1, 1]} : vector<2x128xf32> to vector<2x32xf32>
    %11 = arith.negf %10 : vector<2x32xf32>
    %12 = math.exp %11 : vector<2x32xf32>
    %cst_7 = arith.constant 1.000000e+00 : f32
    %13 = vector.broadcast %cst_7 : f32 to vector<2x32xf32>
    %14 = arith.addf %13, %12 : vector<2x32xf32>
    %15 = arith.divf %13, %14 : vector<2x32xf32>
    %16 = vector.extract_strided_slice %9 {offsets = [0, 32], sizes = [2, 32], strides = [1, 1]} : vector<2x128xf32> to vector<2x32xf32>
    %17 = arith.negf %16 : vector<2x32xf32>
    %18 = math.exp %17 : vector<2x32xf32>
    %cst_8 = arith.constant 1.000000e+00 : f32
    %19 = vector.broadcast %cst_8 : f32 to vector<2x32xf32>
    %20 = arith.addf %19, %18 : vector<2x32xf32>
    %21 = arith.divf %19, %20 : vector<2x32xf32>
    %22 = vector.extract_strided_slice %9 {offsets = [0, 64], sizes = [2, 32], strides = [1, 1]} : vector<2x128xf32> to vector<2x32xf32>
    %23 = math.tanh %22 : vector<2x32xf32>
    %24 = vector.extract_strided_slice %9 {offsets = [0, 96], sizes = [2, 32], strides = [1, 1]} : vector<2x128xf32> to vector<2x32xf32>
    %25 = arith.negf %24 : vector<2x32xf32>
    %26 = math.exp %25 : vector<2x32xf32>
    %cst_9 = arith.constant 1.000000e+00 : f32
    %27 = vector.broadcast %cst_9 : f32 to vector<2x32xf32>
    %28 = arith.addf %27, %26 : vector<2x32xf32>
    %29 = arith.divf %27, %28 : vector<2x32xf32>
    %c0_10 = arith.constant 0 : index
    %c0_11 = arith.constant 0 : index
    %30 = vector.load %arg5[%c0_10, %c0_11] : memref<2x32xf32, #tpu.memory_space<vmem>>, vector<2x32xf32>
    %31 = arith.mulf %21, %30 : vector<2x32xf32>
    %32 = arith.mulf %15, %23 : vector<2x32xf32>
    %33 = arith.addf %31, %32 : vector<2x32xf32>
    %34 = math.tanh %33 : vector<2x32xf32>
    %35 = arith.mulf %29, %34 : vector<2x32xf32>
    %c0_12 = arith.constant 0 : index
    %c0_13 = arith.constant 0 : index
    %36 = vector.load %arg5[%c0_12, %c0_13] : memref<2x32xf32, #tpu.memory_space<vmem>>, vector<2x32xf32>
    tpu.vector_store %arg5[%c0_12, %c0_13], %33 {strides = array<i32>} : memref<2x32xf32, #tpu.memory_space<vmem>>, vector<2x32xf32>,
    %c0_14 = arith.constant 0 : index
    %c0_15 = arith.constant 0 : index
    %37 = vector.load %arg4[%c0_14, %c0_15] : memref<2x32xf32, #tpu.memory_space<vmem>>, vector<2x32xf32>
    tpu.vector_store %arg4[%c0_14, %c0_15], %35 {strides = array<i32>} : memref<2x32xf32, #tpu.memory_space<vmem>>, vector<2x32xf32>,
    %c0_16 = arith.constant 0 : index
    %c0_17 = arith.constant 0 : index
    %c0_18 = arith.constant 0 : index
    %38 = vector.load %arg3[%c0_16, %c0_17, %c0_18] : memref<2x8x32xf32, #tpu.memory_space<vmem>>, vector<2x1x32xf32>
    %39 = vector.shape_cast %38 : vector<2x1x32xf32> to vector<2x32xf32>
    %40 = vector.shape_cast %35 : vector<2x32xf32> to vector<2x1x32xf32>
    tpu.vector_store %arg3[%c0_16, %c0_17, %c0_18], %40 {strides = array<i32>} : memref<2x8x32xf32, #tpu.memory_space<vmem>>, vector<2x1x32xf32>,
    %c0_19 = arith.constant 0 : index
    %c1 = arith.constant 1 : index
    %c0_20 = arith.constant 0 : index
    %41 = vector.load %arg1[%c0_19, %c1, %c0_20] : memref<2x8x128xf32, #tpu.memory_space<vmem>>, vector<2x1x128xf32>
    %42 = vector.shape_cast %41 : vector<2x1x128xf32> to vector<2x128xf32>
    %c0_21 = arith.constant 0 : index
    %c0_22 = arith.constant 0 : index
    %43 = vector.load %arg4[%c0_21, %c0_22] : memref<2x32xf32, #tpu.memory_space<vmem>>, vector<2x32xf32>
    %44 = arith.truncf %43 : vector<2x32xf32> to vector<2x32xbf16>
    %cst_23 = arith.constant dense<0.000000e+00> : vector<2x128xf32>
    %45 = tpu.matmul %44, %3, %cst_23 {dimension_numbers = #tpu.dot_dimension_numbers<[1], [0], [0], [1], [0, 0, 1, 1], [], []>} : vector<2x32xbf16>, vector<32x128xbf16>, vector<2x128xf32> -> vector<2x128xf32>
    %46 = arith.addf %42, %45 : vector<2x128xf32>
    %47 = vector.extract_strided_slice %46 {offsets = [0, 0], sizes = [2, 32], strides = [1, 1]} : vector<2x128xf32> to vector<2x32xf32>
    %48 = arith.negf %47 : vector<2x32xf32>
    %49 = math.exp %48 : vector<2x32xf32>
    %cst_24 = arith.constant 1.000000e+00 : f32
    %50 = vector.broadcast %cst_24 : f32 to vector<2x32xf32>
    %51 = arith.addf %50, %49 : vector<2x32xf32>
    %52 = arith.divf %50, %51 : vector<2x32xf32>
    %53 = vector.extract_strided_slice %46 {offsets = [0, 32], sizes = [2, 32], strides = [1, 1]} : vector<2x128xf32> to vector<2x32xf32>
    %54 = arith.negf %53 : vector<2x32xf32>
    %55 = math.exp %54 : vector<2x32xf32>
    %cst_25 = arith.constant 1.000000e+00 : f32
    %56 = vector.broadcast %cst_25 : f32 to vector<2x32xf32>
    %57 = arith.addf %56, %55 : vector<2x32xf32>
    %58 = arith.divf %56, %57 : vector<2x32xf32>
    %59 = vector.extract_strided_slice %46 {offsets = [0, 64], sizes = [2, 32], strides = [1, 1]} : vector<2x128xf32> to vector<2x32xf32>
    %60 = math.tanh %59 : vector<2x32xf32>
    %61 = vector.extract_strided_slice %46 {offsets = [0, 96], sizes = [2, 32], strides = [1, 1]} : vector<2x128xf32> to vector<2x32xf32>
    %62 = arith.negf %61 : vector<2x32xf32>
    %63 = math.exp %62 : vector<2x32xf32>
    %cst_26 = arith.constant 1.000000e+00 : f32
    %64 = vector.broadcast %cst_26 : f32 to vector<2x32xf32>
    %65 = arith.addf %64, %63 : vector<2x32xf32>
    %66 = arith.divf %64, %65 : vector<2x32xf32>
    %c0_27 = arith.constant 0 : index
    %c0_28 = arith.constant 0 : index
    %67 = vector.load %arg5[%c0_27, %c0_28] : memref<2x32xf32, #tpu.memory_space<vmem>>, vector<2x32xf32>
    %68 = arith.mulf %58, %67 : vector<2x32xf32>
    %69 = arith.mulf %52, %60 : vector<2x32xf32>
    %70 = arith.addf %68, %69 : vector<2x32xf32>
    %71 = math.tanh %70 : vector<2x32xf32>
    %72 = arith.mulf %66, %71 : vector<2x32xf32>
    %c0_29 = arith.constant 0 : index
    %c0_30 = arith.constant 0 : index
    %73 = vector.load %arg5[%c0_29, %c0_30] : memref<2x32xf32, #tpu.memory_space<vmem>>, vector<2x32xf32>
    tpu.vector_store %arg5[%c0_29, %c0_30], %70 {strides = array<i32>} : memref<2x32xf32, #tpu.memory_space<vmem>>, vector<2x32xf32>,
    %c0_31 = arith.constant 0 : index
    %c0_32 = arith.constant 0 : index
    %74 = vector.load %arg4[%c0_31, %c0_32] : memref<2x32xf32, #tpu.memory_space<vmem>>, vector<2x32xf32>
    tpu.vector_store %arg4[%c0_31, %c0_32], %72 {strides = array<i32>} : memref<2x32xf32, #tpu.memory_space<vmem>>, vector<2x32xf32>,
    %c0_33 = arith.constant 0 : index
    %c1_34 = arith.constant 1 : index
    %c0_35 = arith.constant 0 : index
    %75 = vector.load %arg3[%c0_33, %c1_34, %c0_35] : memref<2x8x32xf32, #tpu.memory_space<vmem>>, vector<2x1x32xf32>
    %76 = vector.shape_cast %75 : vector<2x1x32xf32> to vector<2x32xf32>
    %77 = vector.shape_cast %72 : vector<2x32xf32> to vector<2x1x32xf32>
    tpu.vector_store %arg3[%c0_33, %c1_34, %c0_35], %77 {strides = array<i32>} : memref<2x8x32xf32, #tpu.memory_space<vmem>>, vector<2x1x32xf32>,
    %c0_36 = arith.constant 0 : index
    %c2 = arith.constant 2 : index
    %c0_37 = arith.constant 0 : index
    %78 = vector.load %arg1[%c0_36, %c2, %c0_37] : memref<2x8x128xf32, #tpu.memory_space<vmem>>, vector<2x1x128xf32>
    %79 = vector.shape_cast %78 : vector<2x1x128xf32> to vector<2x128xf32>
    %c0_38 = arith.constant 0 : index
    %c0_39 = arith.constant 0 : index
    %80 = vector.load %arg4[%c0_38, %c0_39] : memref<2x32xf32, #tpu.memory_space<vmem>>, vector<2x32xf32>
    %81 = arith.truncf %80 : vector<2x32xf32> to vector<2x32xbf16>
    %cst_40 = arith.constant dense<0.000000e+00> : vector<2x128xf32>
    %82 = tpu.matmul %81, %3, %cst_40 {dimension_numbers = #tpu.dot_dimension_numbers<[1], [0], [0], [1], [0, 0, 1, 1], [], []>} : vector<2x32xbf16>, vector<32x128xbf16>, vector<2x128xf32> -> vector<2x128xf32>
    %83 = arith.addf %79, %82 : vector<2x128xf32>
    %84 = vector.extract_strided_slice %83 {offsets = [0, 0], sizes = [2, 32], strides = [1, 1]} : vector<2x128xf32> to vector<2x32xf32>
    %85 = arith.negf %84 : vector<2x32xf32>
    %86 = math.exp %85 : vector<2x32xf32>
    %cst_41 = arith.constant 1.000000e+00 : f32
    %87 = vector.broadcast %cst_41 : f32 to vector<2x32xf32>
    %88 = arith.addf %87, %86 : vector<2x32xf32>
    %89 = arith.divf %87, %88 : vector<2x32xf32>
    %90 = vector.extract_strided_slice %83 {offsets = [0, 32], sizes = [2, 32], strides = [1, 1]} : vector<2x128xf32> to vector<2x32xf32>
    %91 = arith.negf %90 : vector<2x32xf32>
    %92 = math.exp %91 : vector<2x32xf32>
    %cst_42 = arith.constant 1.000000e+00 : f32
    %93 = vector.broadcast %cst_42 : f32 to vector<2x32xf32>
    %94 = arith.addf %93, %92 : vector<2x32xf32>
    %95 = arith.divf %93, %94 : vector<2x32xf32>
    %96 = vector.extract_strided_slice %83 {offsets = [0, 64], sizes = [2, 32], strides = [1, 1]} : vector<2x128xf32> to vector<2x32xf32>
    %97 = math.tanh %96 : vector<2x32xf32>
    %98 = vector.extract_strided_slice %83 {offsets = [0, 96], sizes = [2, 32], strides = [1, 1]} : vector<2x128xf32> to vector<2x32xf32>
    %99 = arith.negf %98 : vector<2x32xf32>
    %100 = math.exp %99 : vector<2x32xf32>
    %cst_43 = arith.constant 1.000000e+00 : f32
    %101 = vector.broadcast %cst_43 : f32 to vector<2x32xf32>
    %102 = arith.addf %101, %100 : vector<2x32xf32>
    %103 = arith.divf %101, %102 : vector<2x32xf32>
    %c0_44 = arith.constant 0 : index
    %c0_45 = arith.constant 0 : index
    %104 = vector.load %arg5[%c0_44, %c0_45] : memref<2x32xf32, #tpu.memory_space<vmem>>, vector<2x32xf32>
    %105 = arith.mulf %95, %104 : vector<2x32xf32>
    %106 = arith.mulf %89, %97 : vector<2x32xf32>
    %107 = arith.addf %105, %106 : vector<2x32xf32>
    %108 = math.tanh %107 : vector<2x32xf32>
    %109 = arith.mulf %103, %108 : vector<2x32xf32>
    %c0_46 = arith.constant 0 : index
    %c0_47 = arith.constant 0 : index
    %110 = vector.load %arg5[%c0_46, %c0_47] : memref<2x32xf32, #tpu.memory_space<vmem>>, vector<2x32xf32>
    tpu.vector_store %arg5[%c0_46, %c0_47], %107 {strides = array<i32>} : memref<2x32xf32, #tpu.memory_space<vmem>>, vector<2x32xf32>,
    %c0_48 = arith.constant 0 : index
    %c0_49 = arith.constant 0 : index
    %111 = vector.load %arg4[%c0_48, %c0_49] : memref<2x32xf32, #tpu.memory_space<vmem>>, vector<2x32xf32>
    tpu.vector_store %arg4[%c0_48, %c0_49], %109 {strides = array<i32>} : memref<2x32xf32, #tpu.memory_space<vmem>>, vector<2x32xf32>,
    %c0_50 = arith.constant 0 : index
    %c2_51 = arith.constant 2 : index
    %c0_52 = arith.constant 0 : index
    %112 = vector.load %arg3[%c0_50, %c2_51, %c0_52] : memref<2x8x32xf32, #tpu.memory_space<vmem>>, vector<2x1x32xf32>
    %113 = vector.shape_cast %112 : vector<2x1x32xf32> to vector<2x32xf32>
    %114 = vector.shape_cast %109 : vector<2x32xf32> to vector<2x1x32xf32>
    tpu.vector_store %arg3[%c0_50, %c2_51, %c0_52], %114 {strides = array<i32>} : memref<2x8x32xf32, #tpu.memory_space<vmem>>, vector<2x1x32xf32>,
    %c0_53 = arith.constant 0 : index
    %c3 = arith.constant 3 : index
    %c0_54 = arith.constant 0 : index
    %115 = vector.load %arg1[%c0_53, %c3, %c0_54] : memref<2x8x128xf32, #tpu.memory_space<vmem>>, vector<2x1x128xf32>
    %116 = vector.shape_cast %115 : vector<2x1x128xf32> to vector<2x128xf32>
    %c0_55 = arith.constant 0 : index
    %c0_56 = arith.constant 0 : index
    %117 = vector.load %arg4[%c0_55, %c0_56] : memref<2x32xf32, #tpu.memory_space<vmem>>, vector<2x32xf32>
    %118 = arith.truncf %117 : vector<2x32xf32> to vector<2x32xbf16>
    %cst_57 = arith.constant dense<0.000000e+00> : vector<2x128xf32>
    %119 = tpu.matmul %118, %3, %cst_57 {dimension_numbers = #tpu.dot_dimension_numbers<[1], [0], [0], [1], [0, 0, 1, 1], [], []>} : vector<2x32xbf16>, vector<32x128xbf16>, vector<2x128xf32> -> vector<2x128xf32>
    %120 = arith.addf %116, %119 : vector<2x128xf32>
    %121 = vector.extract_strided_slice %120 {offsets = [0, 0], sizes = [2, 32], strides = [1, 1]} : vector<2x128xf32> to vector<2x32xf32>
    %122 = arith.negf %121 : vector<2x32xf32>
    %123 = math.exp %122 : vector<2x32xf32>
    %cst_58 = arith.constant 1.000000e+00 : f32
    %124 = vector.broadcast %cst_58 : f32 to vector<2x32xf32>
    %125 = arith.addf %124, %123 : vector<2x32xf32>
    %126 = arith.divf %124, %125 : vector<2x32xf32>
    %127 = vector.extract_strided_slice %120 {offsets = [0, 32], sizes = [2, 32], strides = [1, 1]} : vector<2x128xf32> to vector<2x32xf32>
    %128 = arith.negf %127 : vector<2x32xf32>
    %129 = math.exp %128 : vector<2x32xf32>
    %cst_59 = arith.constant 1.000000e+00 : f32
    %130 = vector.broadcast %cst_59 : f32 to vector<2x32xf32>
    %131 = arith.addf %130, %129 : vector<2x32xf32>
    %132 = arith.divf %130, %131 : vector<2x32xf32>
    %133 = vector.extract_strided_slice %120 {offsets = [0, 64], sizes = [2, 32], strides = [1, 1]} : vector<2x128xf32> to vector<2x32xf32>
    %134 = math.tanh %133 : vector<2x32xf32>
    %135 = vector.extract_strided_slice %120 {offsets = [0, 96], sizes = [2, 32], strides = [1, 1]} : vector<2x128xf32> to vector<2x32xf32>
    %136 = arith.negf %135 : vector<2x32xf32>
    %137 = math.exp %136 : vector<2x32xf32>
    %cst_60 = arith.constant 1.000000e+00 : f32
    %138 = vector.broadcast %cst_60 : f32 to vector<2x32xf32>
    %139 = arith.addf %138, %137 : vector<2x32xf32>
    %140 = arith.divf %138, %139 : vector<2x32xf32>
    %c0_61 = arith.constant 0 : index
    %c0_62 = arith.constant 0 : index
    %141 = vector.load %arg5[%c0_61, %c0_62] : memref<2x32xf32, #tpu.memory_space<vmem>>, vector<2x32xf32>
    %142 = arith.mulf %132, %141 : vector<2x32xf32>
    %143 = arith.mulf %126, %134 : vector<2x32xf32>
    %144 = arith.addf %142, %143 : vector<2x32xf32>
    %145 = math.tanh %144 : vector<2x32xf32>
    %146 = arith.mulf %140, %145 : vector<2x32xf32>
    %c0_63 = arith.constant 0 : index
    %c0_64 = arith.constant 0 : index
    %147 = vector.load %arg5[%c0_63, %c0_64] : memref<2x32xf32, #tpu.memory_space<vmem>>, vector<2x32xf32>
    tpu.vector_store %arg5[%c0_63, %c0_64], %144 {strides = array<i32>} : memref<2x32xf32, #tpu.memory_space<vmem>>, vector<2x32xf32>,
    %c0_65 = arith.constant 0 : index
    %c0_66 = arith.constant 0 : index
    %148 = vector.load %arg4[%c0_65, %c0_66] : memref<2x32xf32, #tpu.memory_space<vmem>>, vector<2x32xf32>
    tpu.vector_store %arg4[%c0_65, %c0_66], %146 {strides = array<i32>} : memref<2x32xf32, #tpu.memory_space<vmem>>, vector<2x32xf32>,
    %c0_67 = arith.constant 0 : index
    %c3_68 = arith.constant 3 : index
    %c0_69 = arith.constant 0 : index
    %149 = vector.load %arg3[%c0_67, %c3_68, %c0_69] : memref<2x8x32xf32, #tpu.memory_space<vmem>>, vector<2x1x32xf32>
    %150 = vector.shape_cast %149 : vector<2x1x32xf32> to vector<2x32xf32>
    %151 = vector.shape_cast %146 : vector<2x32xf32> to vector<2x1x32xf32>
    tpu.vector_store %arg3[%c0_67, %c3_68, %c0_69], %151 {strides = array<i32>} : memref<2x8x32xf32, #tpu.memory_space<vmem>>, vector<2x1x32xf32>,
    %c0_70 = arith.constant 0 : index
    %c4 = arith.constant 4 : index
    %c0_71 = arith.constant 0 : index
    %152 = vector.load %arg1[%c0_70, %c4, %c0_71] : memref<2x8x128xf32, #tpu.memory_space<vmem>>, vector<2x1x128xf32>
    %153 = vector.shape_cast %152 : vector<2x1x128xf32> to vector<2x128xf32>
    %c0_72 = arith.constant 0 : index
    %c0_73 = arith.constant 0 : index
    %154 = vector.load %arg4[%c0_72, %c0_73] : memref<2x32xf32, #tpu.memory_space<vmem>>, vector<2x32xf32>
    %155 = arith.truncf %154 : vector<2x32xf32> to vector<2x32xbf16>
    %cst_74 = arith.constant dense<0.000000e+00> : vector<2x128xf32>
    %156 = tpu.matmul %155, %3, %cst_74 {dimension_numbers = #tpu.dot_dimension_numbers<[1], [0], [0], [1], [0, 0, 1, 1], [], []>} : vector<2x32xbf16>, vector<32x128xbf16>, vector<2x128xf32> -> vector<2x128xf32>
    %157 = arith.addf %153, %156 : vector<2x128xf32>
    %158 = vector.extract_strided_slice %157 {offsets = [0, 0], sizes = [2, 32], strides = [1, 1]} : vector<2x128xf32> to vector<2x32xf32>
    %159 = arith.negf %158 : vector<2x32xf32>
    %160 = math.exp %159 : vector<2x32xf32>
    %cst_75 = arith.constant 1.000000e+00 : f32
    %161 = vector.broadcast %cst_75 : f32 to vector<2x32xf32>
    %162 = arith.addf %161, %160 : vector<2x32xf32>
    %163 = arith.divf %161, %162 : vector<2x32xf32>
    %164 = vector.extract_strided_slice %157 {offsets = [0, 32], sizes = [2, 32], strides = [1, 1]} : vector<2x128xf32> to vector<2x32xf32>
    %165 = arith.negf %164 : vector<2x32xf32>
    %166 = math.exp %165 : vector<2x32xf32>
    %cst_76 = arith.constant 1.000000e+00 : f32
    %167 = vector.broadcast %cst_76 : f32 to vector<2x32xf32>
    %168 = arith.addf %167, %166 : vector<2x32xf32>
    %169 = arith.divf %167, %168 : vector<2x32xf32>
    %170 = vector.extract_strided_slice %157 {offsets = [0, 64], sizes = [2, 32], strides = [1, 1]} : vector<2x128xf32> to vector<2x32xf32>
    %171 = math.tanh %170 : vector<2x32xf32>
    %172 = vector.extract_strided_slice %157 {offsets = [0, 96], sizes = [2, 32], strides = [1, 1]} : vector<2x128xf32> to vector<2x32xf32>
    %173 = arith.negf %172 : vector<2x32xf32>
    %174 = math.exp %173 : vector<2x32xf32>
    %cst_77 = arith.constant 1.000000e+00 : f32
    %175 = vector.broadcast %cst_77 : f32 to vector<2x32xf32>
    %176 = arith.addf %175, %174 : vector<2x32xf32>
    %177 = arith.divf %175, %176 : vector<2x32xf32>
    %c0_78 = arith.constant 0 : index
    %c0_79 = arith.constant 0 : index
    %178 = vector.load %arg5[%c0_78, %c0_79] : memref<2x32xf32, #tpu.memory_space<vmem>>, vector<2x32xf32>
    %179 = arith.mulf %169, %178 : vector<2x32xf32>
    %180 = arith.mulf %163, %171 : vector<2x32xf32>
    %181 = arith.addf %179, %180 : vector<2x32xf32>
    %182 = math.tanh %181 : vector<2x32xf32>
    %183 = arith.mulf %177, %182 : vector<2x32xf32>
    %c0_80 = arith.constant 0 : index
    %c0_81 = arith.constant 0 : index
    %184 = vector.load %arg5[%c0_80, %c0_81] : memref<2x32xf32, #tpu.memory_space<vmem>>, vector<2x32xf32>
    tpu.vector_store %arg5[%c0_80, %c0_81], %181 {strides = array<i32>} : memref<2x32xf32, #tpu.memory_space<vmem>>, vector<2x32xf32>,
    %c0_82 = arith.constant 0 : index
    %c0_83 = arith.constant 0 : index
    %185 = vector.load %arg4[%c0_82, %c0_83] : memref<2x32xf32, #tpu.memory_space<vmem>>, vector<2x32xf32>
    tpu.vector_store %arg4[%c0_82, %c0_83], %183 {strides = array<i32>} : memref<2x32xf32, #tpu.memory_space<vmem>>, vector<2x32xf32>,
    %c0_84 = arith.constant 0 : index
    %c4_85 = arith.constant 4 : index
    %c0_86 = arith.constant 0 : index
    %186 = vector.load %arg3[%c0_84, %c4_85, %c0_86] : memref<2x8x32xf32, #tpu.memory_space<vmem>>, vector<2x1x32xf32>
    %187 = vector.shape_cast %186 : vector<2x1x32xf32> to vector<2x32xf32>
    %188 = vector.shape_cast %183 : vector<2x32xf32> to vector<2x1x32xf32>
    tpu.vector_store %arg3[%c0_84, %c4_85, %c0_86], %188 {strides = array<i32>} : memref<2x8x32xf32, #tpu.memory_space<vmem>>, vector<2x1x32xf32>,
    %c0_87 = arith.constant 0 : index
    %c5 = arith.constant 5 : index
    %c0_88 = arith.constant 0 : index
    %189 = vector.load %arg1[%c0_87, %c5, %c0_88] : memref<2x8x128xf32, #tpu.memory_space<vmem>>, vector<2x1x128xf32>
    %190 = vector.shape_cast %189 : vector<2x1x128xf32> to vector<2x128xf32>
    %c0_89 = arith.constant 0 : index
    %c0_90 = arith.constant 0 : index
    %191 = vector.load %arg4[%c0_89, %c0_90] : memref<2x32xf32, #tpu.memory_space<vmem>>, vector<2x32xf32>
    %192 = arith.truncf %191 : vector<2x32xf32> to vector<2x32xbf16>
    %cst_91 = arith.constant dense<0.000000e+00> : vector<2x128xf32>
    %193 = tpu.matmul %192, %3, %cst_91 {dimension_numbers = #tpu.dot_dimension_numbers<[1], [0], [0], [1], [0, 0, 1, 1], [], []>} : vector<2x32xbf16>, vector<32x128xbf16>, vector<2x128xf32> -> vector<2x128xf32>
    %194 = arith.addf %190, %193 : vector<2x128xf32>
    %195 = vector.extract_strided_slice %194 {offsets = [0, 0], sizes = [2, 32], strides = [1, 1]} : vector<2x128xf32> to vector<2x32xf32>
    %196 = arith.negf %195 : vector<2x32xf32>
    %197 = math.exp %196 : vector<2x32xf32>
    %cst_92 = arith.constant 1.000000e+00 : f32
    %198 = vector.broadcast %cst_92 : f32 to vector<2x32xf32>
    %199 = arith.addf %198, %197 : vector<2x32xf32>
    %200 = arith.divf %198, %199 : vector<2x32xf32>
    %201 = vector.extract_strided_slice %194 {offsets = [0, 32], sizes = [2, 32], strides = [1, 1]} : vector<2x128xf32> to vector<2x32xf32>
    %202 = arith.negf %201 : vector<2x32xf32>
    %203 = math.exp %202 : vector<2x32xf32>
    %cst_93 = arith.constant 1.000000e+00 : f32
    %204 = vector.broadcast %cst_93 : f32 to vector<2x32xf32>
    %205 = arith.addf %204, %203 : vector<2x32xf32>
    %206 = arith.divf %204, %205 : vector<2x32xf32>
    %207 = vector.extract_strided_slice %194 {offsets = [0, 64], sizes = [2, 32], strides = [1, 1]} : vector<2x128xf32> to vector<2x32xf32>
    %208 = math.tanh %207 : vector<2x32xf32>
    %209 = vector.extract_strided_slice %194 {offsets = [0, 96], sizes = [2, 32], strides = [1, 1]} : vector<2x128xf32> to vector<2x32xf32>
    %210 = arith.negf %209 : vector<2x32xf32>
    %211 = math.exp %210 : vector<2x32xf32>
    %cst_94 = arith.constant 1.000000e+00 : f32
    %212 = vector.broadcast %cst_94 : f32 to vector<2x32xf32>
    %213 = arith.addf %212, %211 : vector<2x32xf32>
    %214 = arith.divf %212, %213 : vector<2x32xf32>
    %c0_95 = arith.constant 0 : index
    %c0_96 = arith.constant 0 : index
    %215 = vector.load %arg5[%c0_95, %c0_96] : memref<2x32xf32, #tpu.memory_space<vmem>>, vector<2x32xf32>
    %216 = arith.mulf %206, %215 : vector<2x32xf32>
    %217 = arith.mulf %200, %208 : vector<2x32xf32>
    %218 = arith.addf %216, %217 : vector<2x32xf32>
    %219 = math.tanh %218 : vector<2x32xf32>
    %220 = arith.mulf %214, %219 : vector<2x32xf32>
    %c0_97 = arith.constant 0 : index
    %c0_98 = arith.constant 0 : index
    %221 = vector.load %arg5[%c0_97, %c0_98] : memref<2x32xf32, #tpu.memory_space<vmem>>, vector<2x32xf32>
    tpu.vector_store %arg5[%c0_97, %c0_98], %218 {strides = array<i32>} : memref<2x32xf32, #tpu.memory_space<vmem>>, vector<2x32xf32>,
    %c0_99 = arith.constant 0 : index
    %c0_100 = arith.constant 0 : index
    %222 = vector.load %arg4[%c0_99, %c0_100] : memref<2x32xf32, #tpu.memory_space<vmem>>, vector<2x32xf32>
    tpu.vector_store %arg4[%c0_99, %c0_100], %220 {strides = array<i32>} : memref<2x32xf32, #tpu.memory_space<vmem>>, vector<2x32xf32>,
    %c0_101 = arith.constant 0 : index
    %c5_102 = arith.constant 5 : index
    %c0_103 = arith.constant 0 : index
    %223 = vector.load %arg3[%c0_101, %c5_102, %c0_103] : memref<2x8x32xf32, #tpu.memory_space<vmem>>, vector<2x1x32xf32>
    %224 = vector.shape_cast %223 : vector<2x1x32xf32> to vector<2x32xf32>
    %225 = vector.shape_cast %220 : vector<2x32xf32> to vector<2x1x32xf32>
    tpu.vector_store %arg3[%c0_101, %c5_102, %c0_103], %225 {strides = array<i32>} : memref<2x8x32xf32, #tpu.memory_space<vmem>>, vector<2x1x32xf32>,
    %c0_104 = arith.constant 0 : index
    %c6 = arith.constant 6 : index
    %c0_105 = arith.constant 0 : index
    %226 = vector.load %arg1[%c0_104, %c6, %c0_105] : memref<2x8x128xf32, #tpu.memory_space<vmem>>, vector<2x1x128xf32>
    %227 = vector.shape_cast %226 : vector<2x1x128xf32> to vector<2x128xf32>
    %c0_106 = arith.constant 0 : index
    %c0_107 = arith.constant 0 : index
    %228 = vector.load %arg4[%c0_106, %c0_107] : memref<2x32xf32, #tpu.memory_space<vmem>>, vector<2x32xf32>
    %229 = arith.truncf %228 : vector<2x32xf32> to vector<2x32xbf16>
    %cst_108 = arith.constant dense<0.000000e+00> : vector<2x128xf32>
    %230 = tpu.matmul %229, %3, %cst_108 {dimension_numbers = #tpu.dot_dimension_numbers<[1], [0], [0], [1], [0, 0, 1, 1], [], []>} : vector<2x32xbf16>, vector<32x128xbf16>, vector<2x128xf32> -> vector<2x128xf32>
    %231 = arith.addf %227, %230 : vector<2x128xf32>
    %232 = vector.extract_strided_slice %231 {offsets = [0, 0], sizes = [2, 32], strides = [1, 1]} : vector<2x128xf32> to vector<2x32xf32>
    %233 = arith.negf %232 : vector<2x32xf32>
    %234 = math.exp %233 : vector<2x32xf32>
    %cst_109 = arith.constant 1.000000e+00 : f32
    %235 = vector.broadcast %cst_109 : f32 to vector<2x32xf32>
    %236 = arith.addf %235, %234 : vector<2x32xf32>
    %237 = arith.divf %235, %236 : vector<2x32xf32>
    %238 = vector.extract_strided_slice %231 {offsets = [0, 32], sizes = [2, 32], strides = [1, 1]} : vector<2x128xf32> to vector<2x32xf32>
    %239 = arith.negf %238 : vector<2x32xf32>
    %240 = math.exp %239 : vector<2x32xf32>
    %cst_110 = arith.constant 1.000000e+00 : f32
    %241 = vector.broadcast %cst_110 : f32 to vector<2x32xf32>
    %242 = arith.addf %241, %240 : vector<2x32xf32>
    %243 = arith.divf %241, %242 : vector<2x32xf32>
    %244 = vector.extract_strided_slice %231 {offsets = [0, 64], sizes = [2, 32], strides = [1, 1]} : vector<2x128xf32> to vector<2x32xf32>
    %245 = math.tanh %244 : vector<2x32xf32>
    %246 = vector.extract_strided_slice %231 {offsets = [0, 96], sizes = [2, 32], strides = [1, 1]} : vector<2x128xf32> to vector<2x32xf32>
    %247 = arith.negf %246 : vector<2x32xf32>
    %248 = math.exp %247 : vector<2x32xf32>
    %cst_111 = arith.constant 1.000000e+00 : f32
    %249 = vector.broadcast %cst_111 : f32 to vector<2x32xf32>
    %250 = arith.addf %249, %248 : vector<2x32xf32>
    %251 = arith.divf %249, %250 : vector<2x32xf32>
    %c0_112 = arith.constant 0 : index
    %c0_113 = arith.constant 0 : index
    %252 = vector.load %arg5[%c0_112, %c0_113] : memref<2x32xf32, #tpu.memory_space<vmem>>, vector<2x32xf32>
    %253 = arith.mulf %243, %252 : vector<2x32xf32>
    %254 = arith.mulf %237, %245 : vector<2x32xf32>
    %255 = arith.addf %253, %254 : vector<2x32xf32>
    %256 = math.tanh %255 : vector<2x32xf32>
    %257 = arith.mulf %251, %256 : vector<2x32xf32>
    %c0_114 = arith.constant 0 : index
    %c0_115 = arith.constant 0 : index
    %258 = vector.load %arg5[%c0_114, %c0_115] : memref<2x32xf32, #tpu.memory_space<vmem>>, vector<2x32xf32>
    tpu.vector_store %arg5[%c0_114, %c0_115], %255 {strides = array<i32>} : memref<2x32xf32, #tpu.memory_space<vmem>>, vector<2x32xf32>,
    %c0_116 = arith.constant 0 : index
    %c0_117 = arith.constant 0 : index
    %259 = vector.load %arg4[%c0_116, %c0_117] : memref<2x32xf32, #tpu.memory_space<vmem>>, vector<2x32xf32>
    tpu.vector_store %arg4[%c0_116, %c0_117], %257 {strides = array<i32>} : memref<2x32xf32, #tpu.memory_space<vmem>>, vector<2x32xf32>,
    %c0_118 = arith.constant 0 : index
    %c6_119 = arith.constant 6 : index
    %c0_120 = arith.constant 0 : index
    %260 = vector.load %arg3[%c0_118, %c6_119, %c0_120] : memref<2x8x32xf32, #tpu.memory_space<vmem>>, vector<2x1x32xf32>
    %261 = vector.shape_cast %260 : vector<2x1x32xf32> to vector<2x32xf32>
    %262 = vector.shape_cast %257 : vector<2x32xf32> to vector<2x1x32xf32>
    tpu.vector_store %arg3[%c0_118, %c6_119, %c0_120], %262 {strides = array<i32>} : memref<2x8x32xf32, #tpu.memory_space<vmem>>, vector<2x1x32xf32>,
    %c0_121 = arith.constant 0 : index
    %c7 = arith.constant 7 : index
    %c0_122 = arith.constant 0 : index
    %263 = vector.load %arg1[%c0_121, %c7, %c0_122] : memref<2x8x128xf32, #tpu.memory_space<vmem>>, vector<2x1x128xf32>
    %264 = vector.shape_cast %263 : vector<2x1x128xf32> to vector<2x128xf32>
    %c0_123 = arith.constant 0 : index
    %c0_124 = arith.constant 0 : index
    %265 = vector.load %arg4[%c0_123, %c0_124] : memref<2x32xf32, #tpu.memory_space<vmem>>, vector<2x32xf32>
    %266 = arith.truncf %265 : vector<2x32xf32> to vector<2x32xbf16>
    %cst_125 = arith.constant dense<0.000000e+00> : vector<2x128xf32>
    %267 = tpu.matmul %266, %3, %cst_125 {dimension_numbers = #tpu.dot_dimension_numbers<[1], [0], [0], [1], [0, 0, 1, 1], [], []>} : vector<2x32xbf16>, vector<32x128xbf16>, vector<2x128xf32> -> vector<2x128xf32>
    %268 = arith.addf %264, %267 : vector<2x128xf32>
    %269 = vector.extract_strided_slice %268 {offsets = [0, 0], sizes = [2, 32], strides = [1, 1]} : vector<2x128xf32> to vector<2x32xf32>
    %270 = arith.negf %269 : vector<2x32xf32>
    %271 = math.exp %270 : vector<2x32xf32>
    %cst_126 = arith.constant 1.000000e+00 : f32
    %272 = vector.broadcast %cst_126 : f32 to vector<2x32xf32>
    %273 = arith.addf %272, %271 : vector<2x32xf32>
    %274 = arith.divf %272, %273 : vector<2x32xf32>
    %275 = vector.extract_strided_slice %268 {offsets = [0, 32], sizes = [2, 32], strides = [1, 1]} : vector<2x128xf32> to vector<2x32xf32>
    %276 = arith.negf %275 : vector<2x32xf32>
    %277 = math.exp %276 : vector<2x32xf32>
    %cst_127 = arith.constant 1.000000e+00 : f32
    %278 = vector.broadcast %cst_127 : f32 to vector<2x32xf32>
    %279 = arith.addf %278, %277 : vector<2x32xf32>
    %280 = arith.divf %278, %279 : vector<2x32xf32>
    %281 = vector.extract_strided_slice %268 {offsets = [0, 64], sizes = [2, 32], strides = [1, 1]} : vector<2x128xf32> to vector<2x32xf32>
    %282 = math.tanh %281 : vector<2x32xf32>
    %283 = vector.extract_strided_slice %268 {offsets = [0, 96], sizes = [2, 32], strides = [1, 1]} : vector<2x128xf32> to vector<2x32xf32>
    %284 = arith.negf %283 : vector<2x32xf32>
    %285 = math.exp %284 : vector<2x32xf32>
    %cst_128 = arith.constant 1.000000e+00 : f32
    %286 = vector.broadcast %cst_128 : f32 to vector<2x32xf32>
    %287 = arith.addf %286, %285 : vector<2x32xf32>
    %288 = arith.divf %286, %287 : vector<2x32xf32>
    %c0_129 = arith.constant 0 : index
    %c0_130 = arith.constant 0 : index
    %289 = vector.load %arg5[%c0_129, %c0_130] : memref<2x32xf32, #tpu.memory_space<vmem>>, vector<2x32xf32>
    %290 = arith.mulf %280, %289 : vector<2x32xf32>
    %291 = arith.mulf %274, %282 : vector<2x32xf32>
    %292 = arith.addf %290, %291 : vector<2x32xf32>
    %293 = math.tanh %292 : vector<2x32xf32>
    %294 = arith.mulf %288, %293 : vector<2x32xf32>
    %c0_131 = arith.constant 0 : index
    %c0_132 = arith.constant 0 : index
    %295 = vector.load %arg5[%c0_131, %c0_132] : memref<2x32xf32, #tpu.memory_space<vmem>>, vector<2x32xf32>
    tpu.vector_store %arg5[%c0_131, %c0_132], %292 {strides = array<i32>} : memref<2x32xf32, #tpu.memory_space<vmem>>, vector<2x32xf32>,
    %c0_133 = arith.constant 0 : index
    %c0_134 = arith.constant 0 : index
    %296 = vector.load %arg4[%c0_133, %c0_134] : memref<2x32xf32, #tpu.memory_space<vmem>>, vector<2x32xf32>
    tpu.vector_store %arg4[%c0_133, %c0_134], %294 {strides = array<i32>} : memref<2x32xf32, #tpu.memory_space<vmem>>, vector<2x32xf32>,
    %c0_135 = arith.constant 0 : index
    %c7_136 = arith.constant 7 : index
    %c0_137 = arith.constant 0 : index
    %297 = vector.load %arg3[%c0_135, %c7_136, %c0_137] : memref<2x8x32xf32, #tpu.memory_space<vmem>>, vector<2x1x32xf32>
    %298 = vector.shape_cast %297 : vector<2x1x32xf32> to vector<2x32xf32>
    %299 = vector.shape_cast %294 : vector<2x32xf32> to vector<2x1x32xf32>
    tpu.vector_store %arg3[%c0_135, %c7_136, %c0_137], %299 {strides = array<i32>} : memref<2x8x32xf32, #tpu.memory_space<vmem>>, vector<2x1x32xf32>,
    return
  }
  func.func @transform_0(%arg0: i32) -> (i32, i32, i32) {
    %c0_i32 = arith.constant 0 : i32
    %c0_i32_0 = arith.constant 0 : i32
    %c0_i32_1 = arith.constant 0 : i32
    return %c0_i32, %arg0, %c0_i32_0 : i32, i32, i32
  }
  func.func @transform_1(%arg0: i32) -> (i32, i32) {
    %c0_i32 = arith.constant 0 : i32
    %c0_i32_0 = arith.constant 0 : i32
    %c0_i32_1 = arith.constant 0 : i32
    return %c0_i32, %c0_i32_0 : i32, i32
  }
  func.func @transform_2(%arg0: i32) -> (i32, i32, i32) {
    %c0_i32 = arith.constant 0 : i32
    %c0_i32_0 = arith.constant 0 : i32
    %c0_i32_1 = arith.constant 0 : i32
    return %c0_i32, %arg0, %c0_i32_0 : i32, i32, i32
  }
}

module attributes {stable_mosaic.version = 11 : i64} {
  func.func @fc_softmax_kernel(%arg0: i32, %arg1: memref<2x8x32xf32, #tpu.memory_space<vmem>>, %arg2: memref<2x1xi32, #tpu.memory_space<vmem>>, %arg3: memref<32x32xbf16, #tpu.memory_space<vmem>>, %arg4: memref<1x1x32xf32, #tpu.memory_space<vmem>>, %arg5: memref<2x8x32xf32, #tpu.memory_space<vmem>>) attributes {dimension_semantics = [#tpu.dimension_semantics<parallel>], iteration_bounds = array<i64: 1>, scalar_prefetch = 0 : i64, scratch_operands = 0 : i64, tpu.core_type = #tpu.core_type<tc>, window_params = [{transform_indices = @transform_0, window_bounds = array<i64: 2, 8, 32>}, {pipeline_mode = #tpu.pipeline_mode<synchronous>, transform_indices = @transform_1, window_bounds = array<i64: 2, 1>}, {pipeline_mode = #tpu.pipeline_mode<synchronous>, transform_indices = @transform_2, window_bounds = array<i64: 32, 32>}, {pipeline_mode = #tpu.pipeline_mode<synchronous>, transform_indices = @transform_3, window_bounds = array<i64: 1, 1, 32>}, {transform_indices = @transform_4, window_bounds = array<i64: 2, 8, 32>}]} {
    %c0 = arith.constant 0 : index
    %c0_0 = arith.constant 0 : index
    %c0_1 = arith.constant 0 : index
    %0 = vector.load %arg1[%c0, %c0_0, %c0_1] : memref<2x8x32xf32, #tpu.memory_space<vmem>>, vector<2x8x32xf32>
    %c8_i32 = arith.constant 8 : i32
    %1 = arith.muli %arg0, %c8_i32 : i32
    %2 = tpu.iota {dimensions = array<i32: 1>} : vector<2x8xi32>
    %3 = vector.broadcast %1 : i32 to vector<2x8xi32>
    %4 = arith.addi %3, %2 : vector<2x8xi32>
    %c0_2 = arith.constant 0 : index
    %c0_3 = arith.constant 0 : index
    %5 = vector.load %arg2[%c0_2, %c0_3] : memref<2x1xi32, #tpu.memory_space<vmem>>, vector<2x1xi32>
    %6 = vector.broadcast %5 : vector<2x1xi32> to vector<2x8xi32>
    %7 = arith.cmpi slt, %4, %6 : vector<2x8xi32>
    %8 = arith.extui %7 : vector<2x8xi1> to vector<2x8xi32>
    %9 = arith.sitofp %8 : vector<2x8xi32> to vector<2x8xf32>
    %10 = vector.shape_cast %9 : vector<2x8xf32> to vector<2x8x1xf32>
    %11 = vector.broadcast %10 : vector<2x8x1xf32> to vector<2x8x32xf32>
    %12 = arith.mulf %0, %11 : vector<2x8x32xf32>
    %13 = arith.truncf %12 : vector<2x8x32xf32> to vector<2x8x32xbf16>
    %c0_4 = arith.constant 0 : index
    %c0_5 = arith.constant 0 : index
    %14 = vector.load %arg3[%c0_4, %c0_5] : memref<32x32xbf16, #tpu.memory_space<vmem>>, vector<32x32xbf16>
    %cst = arith.constant dense<0.000000e+00> : vector<2x8x32xf32>
    %15 = tpu.matmul %13, %14, %cst {dimension_numbers = #tpu.dot_dimension_numbers<[2], [0], [0, 1], [1], [0, 0, 0, 1, 1, 1], [], []>} : vector<2x8x32xbf16>, vector<32x32xbf16>, vector<2x8x32xf32> -> vector<2x8x32xf32>
    %c0_6 = arith.constant 0 : index
    %c0_7 = arith.constant 0 : index
    %c0_8 = arith.constant 0 : index
    %16 = vector.load %arg4[%c0_6, %c0_7, %c0_8] : memref<1x1x32xf32, #tpu.memory_space<vmem>>, vector<1x1x32xf32>
    %17 = vector.broadcast %16 : vector<1x1x32xf32> to vector<2x8x32xf32>
    %18 = arith.addf %15, %17 : vector<2x8x32xf32>
    %19 = vector.extract_strided_slice %18 {offsets = [0, 0, 0], sizes = [2, 8, 16], strides = [1, 1, 1]} : vector<2x8x32xf32> to vector<2x8x16xf32>
    %20 = vector.extract_strided_slice %18 {offsets = [0, 0, 16], sizes = [2, 8, 16], strides = [1, 1, 1]} : vector<2x8x32xf32> to vector<2x8x16xf32>
    %21 = arith.maximumf %19, %20 : vector<2x8x16xf32>
    %22 = arith.subf %19, %21 : vector<2x8x16xf32>
    %23 = math.exp %22 : vector<2x8x16xf32>
    %24 = arith.subf %20, %21 : vector<2x8x16xf32>
    %25 = math.exp %24 : vector<2x8x16xf32>
    %26 = arith.addf %23, %25 : vector<2x8x16xf32>
    %cst_9 = arith.constant 1.000000e+00 : f32
    %27 = vector.broadcast %cst_9 : f32 to vector<2x8x16xf32>
    %28 = arith.divf %27, %26 : vector<2x8x16xf32>
    %29 = arith.mulf %23, %28 : vector<2x8x16xf32>
    %c0_10 = arith.constant 0 : index
    %c0_11 = arith.constant 0 : index
    %c0_12 = arith.constant 0 : index
    %30 = vector.load %arg5[%c0_10, %c0_11, %c0_12] : memref<2x8x32xf32, #tpu.memory_space<vmem>>, vector<2x8x16xf32>
    tpu.vector_store %arg5[%c0_10, %c0_11, %c0_12], %29 {strides = array<i32>} : memref<2x8x32xf32, #tpu.memory_space<vmem>>, vector<2x8x16xf32>,
    %31 = arith.mulf %25, %28 : vector<2x8x16xf32>
    %c0_13 = arith.constant 0 : index
    %c0_14 = arith.constant 0 : index
    %c16 = arith.constant 16 : index
    %32 = vector.load %arg5[%c0_13, %c0_14, %c16] : memref<2x8x32xf32, #tpu.memory_space<vmem>>, vector<2x8x16xf32>
    tpu.vector_store %arg5[%c0_13, %c0_14, %c16], %31 {strides = array<i32>} : memref<2x8x32xf32, #tpu.memory_space<vmem>>, vector<2x8x16xf32>,
    return
  }
  func.func @transform_0(%arg0: i32) -> (i32, i32, i32) {
    %c0_i32 = arith.constant 0 : i32
    %c0_i32_0 = arith.constant 0 : i32
    %c0_i32_1 = arith.constant 0 : i32
    return %c0_i32, %arg0, %c0_i32_0 : i32, i32, i32
  }
  func.func @transform_1(%arg0: i32) -> (i32, i32) {
    %c0_i32 = arith.constant 0 : i32
    %c0_i32_0 = arith.constant 0 : i32
    %c0_i32_1 = arith.constant 0 : i32
    return %c0_i32, %c0_i32_0 : i32, i32
  }
  func.func @transform_2(%arg0: i32) -> (i32, i32) {
    %c0_i32 = arith.constant 0 : i32
    %c0_i32_0 = arith.constant 0 : i32
    %c0_i32_1 = arith.constant 0 : i32
    return %c0_i32, %c0_i32_0 : i32, i32
  }
  func.func @transform_3(%arg0: i32) -> (i32, i32, i32) {
    %c0_i32 = arith.constant 0 : i32
    %c0_i32_0 = arith.constant 0 : i32
    %c0_i32_1 = arith.constant 0 : i32
    %c0_i32_2 = arith.constant 0 : i32
    return %c0_i32, %c0_i32_0, %c0_i32_1 : i32, i32, i32
  }
  func.func @transform_4(%arg0: i32) -> (i32, i32, i32) {
    %c0_i32 = arith.constant 0 : i32
    %c0_i32_0 = arith.constant 0 : i32
    %c0_i32_1 = arith.constant 0 : i32
    return %c0_i32, %arg0, %c0_i32_0 : i32, i32, i32
  }
}

</mosaic_0001>

<bundles_post_ra>
// kernel: separator_forward.4
= control target key start
LH: loop header
LB: loop body
LE: loop exit
PB: predicated region body
PF: predicated region fallthrough
CT: control target
= control target key end

     0   :  { %vm23_vm0 = vcmask 130048   ;;  %v163_v14 = vmov 0.0   ;;  %vm164_vm1 = vmmov 0   ;;  %s224_s0 = inlined_call_operand.vmem [shape: f32[2,8,16], index: 0, kind: input, shape index: {}]   ;;  %s225_s3 = inlined_call_operand.vmem [shape: bf16[16,128], index: 3, kind: input, shape index: {}]   ;;  %s226_s1 = inlined_call_operand.vmem [shape: f32[1,1,16], index: 1, kind: input, shape index: {}]   ;;  %s227_s2 = inlined_call_operand.vmem [shape: f32[1,1,16], index: 2, kind: input, shape index: {}]   ;;  %s228_s4 = inlined_call_operand.vmem [shape: f32[1,1,128], index: 4, kind: input, shape index: {}]   ;;  %s229_s5 = inlined_call_operand.vmem [shape: f32[2,8,128], index: 5, kind: output, shape index: {}]  }
   0x1   :  { %v21_v0 = vld [vmem:[%s224_s0] sm:$0xff]  ;;  %v22_v1 = vld [vmem:[%s224_s0 + $0x8] sm:$0xff]  ;;  %150 = vmatprep.subr.bf16.mxu0 %v163_v14  ;;  %152 = vmatprep.mubr.msk.bf16.mxu0 %vm164_vm1, %v163_v14 }
   0x2   :  { %v24_v2 = vsel %vm23_vm0, %v21_v0, 0.0  ;;  %v27_v3 = vsel %vm23_vm0, %v22_v1, 0.0  ;;  %v158_v15 = vld [vmem:[%s225_s3] sm:$0xff]  }
   0x3   :  { %25 = vadd.xlane.f32.xlu0 %v24_v2  ;;  %151 = vmatpush3.bf16.msra.mxu0 %v158_v15  ;;  %v141_v24 = vld [vmem:[%s226_s1] ss:$0 sm:$0xff] }
   0x4   :  { %v142_v28 = vld [vmem:[%s227_s2] ss:$0 sm:$0xff] }
   0x5   :  { %v143_v33 = vld [vmem:[%s228_s4] ss:$0 sm:$0xff] }
   0x7   :  { %28 = vadd.xlane.f32.xlu0 %v27_v3 }
  0x90   :  { %v26_v4 = vpop.xlane.xlu0 %25 }
  0x91   :  { %v31_v5 = vmul.f32 0.0625, %v26_v4 }
  0x93   :  { %v33_v6 = vsub.f32 %v21_v0, %v31_v5 }
  0x94   :  { %v29_v7 = vpop.xlane.xlu0 %28 }
  0x95   :  { %v32_v8 = vmul.f32 0.0625, %v29_v7  ;;  %v35_v9 = vmul.f32 %v33_v6, %v33_v6 }
  0x97   :  { %v34_v10 = vsub.f32 %v22_v1, %v32_v8  ;;  %v37_v11 = vsel %vm23_vm0, %v35_v9, 0.0 }
  0x98   :  { %38 = vadd.xlane.f32.xlu1 %v37_v11 }
  0x99   :  { %v36_v12 = vmul.f32 %v34_v10, %v34_v10 }
  0x9b   :  { %v40_v13 = vsel %vm23_vm0, %v36_v12, 0.0 }
  0x9c   :  { %41 = vadd.xlane.f32.xlu1 %v40_v13 }
 0x125   :  { %v39_v16 = vpop.xlane.xlu1 %38 }
 0x126   :  { %v43_v17 = vmul.f32 0.0625, %v39_v16 }
 0x128   :  { %v45_v18 = vadd.f32 1e-05, %v43_v17 }
 0x129   :  { %v42_v19 = vpop.xlane.xlu1 %41 }
 0x12a   :  { %159 = vrsqrt.f32 %v45_v18  ;;  %v44_v20 = vmul.f32 0.0625, %v42_v19 }
 0x12c   :  { %v46_v21 = vadd.f32 1e-05, %v44_v20 }
 0x12e   :  { %161 = vrsqrt.f32 %v46_v21 }
 0x134   :  { %v160_v22 = vpop.eup %159 }
 0x135   :  { %v49_v23 = vmul.f32 %v160_v22, %v33_v6 }
 0x137   :  { %v58_v27 = vmul.f32 %v141_v24, %v49_v23 }
 0x138   :  { %v162_v25 = vpop.eup %161 }
 0x139   :  { %v50_v26 = vmul.f32 %v162_v25, %v34_v10  ;;  %v67_v30 = vadd.f32 %v142_v28, %v58_v27 }
 0x13b   :  { %v59_v29 = vmul.f32 %v141_v24, %v50_v26 }
 0x13d   :  { %v68_v31 = vadd.f32 %v142_v28, %v59_v29 }
 0x13f   :  { %v147_v32 = vpack.c.bf16 %v68_v31, %v67_v30 }
 0x141   :  { %153 = vmatmul.mubr.msk.bf16.vlgmr.msra.gmra.mrb[0].mxu0 %vm23_vm0, %v147_v32 }
 0x214   :  { %v128_v34 = vpop.f32.mrb[0].mxu0 }
 0x215   :  { %v129_v35 = vadd.f32 %v143_v33, %v128_v34  ;;  %v154_v36 = vpop.f32.mrb[1].mxu0 }
 0x216   :  { %v131_v37 = vpop.f32.mrb[2].mxu0 }
 0x217   :  { %135 = vst [vmem:[%s229_s5] sm:$0xff] %v129_v35  ;;  %v132_v38 = vadd.f32 %v143_v33, %v131_v37  ;;  %v155_v39 = vpop.f32.mrb[3].mxu0 }
 0x219   :  { %136 = vst [vmem:[%s229_s5 + $0x8] sm:$0xff] %v132_v38 }

// kernel: separator_forward.5
= control target key start
LH: loop header
LB: loop body
LE: loop exit
PB: predicated region body
PF: predicated region fallthrough
CT: control target
= control target key end

     0   :  { %vm22_vm0 = vcmask 254976   ;;  %v1467_v0 = vmov 0.0   ;;  %vm1468_vm1 = vmmov 0   ;;  %vm45_vm2 = vcmask 261120   ;;  %s1470_s23 = smov 64   ;;  %s1471_s24 = smov 96   ;;  %s1835_s1 = inlined_call_operand.vmem [shape: bf16[32,128], index: 1, kind: input, shape index: {}]   ;;  %s1836_s0 = inlined_call_operand.vmem [shape: f32[2,8,128], index: 0, kind: input, shape index: {}]   ;;  %s1837_s2 = inlined_call_operand.vmem [shape: bf16[32,128], index: 2, kind: input, shape index: {}]   ;;  %s1838_s3 = inlined_call_operand.vmem [shape: f32[1,1,128], index: 3, kind: input, shape index: {}]   ;;  %s1839_s4 = inlined_call_operand.vmem [shape: f32[2,8,128], index: 4, kind: output, shape index: {}]  }
   0x1   :  { %1258 = vmatprep.subr.bf16.mxu0 %v1467_v0  ;;  %v1501_v1 = vld [vmem:[%s1835_s1] sm:$0xff]   ;;  %1262 = vmatprep.mubr.msk.bf16.mxu0 %vm1468_vm1, %v1467_v0  ;;  %23 = vst.msk [vmem:[#allocation3] sm:$0x3] %vm22_vm0, %v1467_v0  ;;  %24 = vst.msk [vmem:[#allocation4] sm:$0x3] %vm22_vm0, %v1467_v0  ;;  %v1516_v2 = vld [vmem:[%s1835_s1 + $0x8] sm:$0xff]  }
   0x2   :  { %1266 = vmatprep.subr.bf16.mxu1 %v1467_v0  ;;  %1270 = vmatprep.mubr.msk.bf16.mxu1 %vm1468_vm1, %v1467_v0  ;;  %s1469_s1 = smov 32   ;;  %v30_v7 = vld [vmem:[%s1836_s0 + $0x8] sm:$0x1]  ;;  %v29_v12 = vld [vmem:[%s1836_s0] sm:$0x1]  ;;  %vm155_vm3 = vcmask 1041409  }
   0x3   :  { %1259 = vmatpush3.bf16.msra.mxu0 %v1501_v1  ;;  %1267 = vmatpush3.bf16.msra.mxu1 %v1501_v1  ;;  %v179_v52 = vld [vmem:[%s1836_s0 + $0x1] sm:$0x1]  ;;  %v180_v53 = vld [vmem:[%s1836_s0 + $0x9] sm:$0x1]  ;;  %vm176_vm4 = vcmask 253952  }
   0x4   :  { %1260 = vmatprep.subr.bf16.mxu0 %v1467_v0  ;;  %1268 = vmatprep.subr.bf16.mxu1 %v1467_v0 }
   0x7   :  { %1261 = vmatpush3.bf16.msra.mxu0 %v1516_v2  ;;  %1269 = vmatpush3.bf16.msra.mxu1 %v1516_v2 }
   0x8   :  { %v31_v3 = vld [vmem:[#allocation3] sm:$0x3]  ;;  %v109_v4 = vld [vmem:[#allocation4] sm:$0x3]  ;;  %1274 = vmatprep.subr.bf16.mxu0 %v1467_v0  ;;  %1282 = vmatprep.subr.bf16.mxu1 %v1467_v0 }
   0x9   :  { %v32_v5 = vpack.c.bf16 %v31_v3, %v31_v3  ;;  %v111_v6 = vrot.slane %v109_v4, 1 }
   0xb   :  { %1263 = vmatmul.mubr.msk.bf16.vlgmr.msra.gmra.mrb[0].mxu0 %vm45_vm2, %v32_v5  ;;  %114 = vrot.lane.b32.xlu1 %v111_v6, %s1469_s1 }
   0xc   :  { %1275 = vmatpush3.bf16.msra.mxu0 %v1501_v1  ;;  %1278 = vmatprep.mubr.msk.bf16.mxu0 %vm1468_vm1, %v1467_v0 }
   0xd   :  { %1276 = vmatprep.subr.bf16.mxu0 %v1467_v0 }
   0xf   :  { %112 = vrot.lane.b32.xlu1 %v109_v4, %s1469_s1 }
  0x10   :  { %1277 = vmatpush3.bf16.msra.mxu0 %v1516_v2 }
  0x11   :  { %1290 = vmatprep.subr.bf16.mxu0 %v1467_v0 }
  0x7d   :  { %v115_v30 = vpop.permute.xlu1 %114 }
  0x81   :  { %v113_v32 = vpop.permute.xlu1 %112 }
  0xde   :  { %v83_v8 = vpop.f32.mrb[0].mxu0 }
  0xdf   :  { %v90_v9 = vrot.slane %v83_v8, 1  ;;  %v1264_v10 = vpop.f32.mrb[1].mxu0  ;;  %v93_v15 = vadd.f32 %v83_v8, %v29_v12 }
  0xe0   :  { %v86_v11 = vpop.f32.mrb[2].mxu0 }
  0xe1   :  { %v94_v13 = vadd.f32 %v90_v9, %v30_v7  ;;  %v1265_v14 = vpop.f32.mrb[3].mxu0  ;;  %v1202_v19 = vmul.f32 -1.442695, %v93_v15 }
  0xe3   :  { %1339 = vtanh.f32 %v94_v13  ;;  %v1203_v18 = vmul.f32 -1.442695, %v94_v13 }
  0xe4   :  { %1341 = vtanh.f32 %v93_v15 }
  0xe5   :  { %1343 = vpow2.f32 %v1203_v18 }
  0xe6   :  { %1345 = vpow2.f32 %v1202_v19 }
  0xed   :  { %v1340_v16 = vpop.eup %1339 }
  0xee   :  { %124 = vrot.lane.b32.xlu0 %v1340_v16, %s1470_s23  ;;  %v1342_v17 = vpop.eup %1341 }
  0xef   :  { %v1344_v20 = vpop.eup %1343 }
  0xf0   :  { %v102_v21 = vadd.f32 1.0, %v1344_v20  ;;  %v1346_v22 = vpop.eup %1345 }
  0xf1   :  { %v101_v23 = vadd.f32 1.0, %v1346_v22 }
  0xf2   :  { %122 = vrot.lane.b32.xlu0 %v1342_v17, %s1470_s23  ;;  %1347 = vrcp.f32 %v102_v21 }
  0xf3   :  { %1349 = vrcp.f32 %v101_v23 }
  0xfc   :  { %v1348_v24 = vpop.eup %1347 }
  0xfd   :  { %v1350_v27 = vpop.eup %1349  ;;  %v119_v31 = vmul.f32 %v1348_v24, %v115_v30 }
  0xfe   :  { %v118_v35 = vmul.f32 %v1350_v27, %v113_v32 }
 0x160   :  { %v125_v25 = vpop.permute.xlu0 %124 }
 0x161   :  { %v129_v26 = vmul.f32 %v1348_v24, %v125_v25 }
 0x163   :  { %134 = vrot.lane.b32.xlu0 %v129_v26, %s1469_s1 }
 0x164   :  { %v123_v28 = vpop.permute.xlu0 %122 }
 0x165   :  { %v128_v29 = vmul.f32 %v1350_v27, %v123_v28 }
 0x167   :  { %132 = vrot.lane.b32.xlu1 %v128_v29, %s1469_s1 }
 0x1d5   :  { %v135_v33 = vpop.permute.xlu0 %134 }
 0x1d6   :  { %v139_v34 = vadd.f32 %v135_v33, %v119_v31 }
 0x1d8   :  { %1351 = vtanh.f32 %v139_v34  ;;  %v154_v40 = vrot.slane %v139_v34, 7 }
 0x1d9   :  { %v133_v36 = vpop.permute.xlu1 %132 }
 0x1da   :  { %v138_v37 = vadd.f32 %v133_v36, %v118_v35 }
 0x1dc   :  { %1353 = vtanh.f32 %v138_v37  ;;  %v156_v41 = vsel %vm155_vm3, %v154_v40, %v138_v37 }
 0x1e2   :  { %v1352_v38 = vpop.eup %1351 }
 0x1e3   :  { %146 = vrot.lane.b32.xlu0 %v1352_v38, %s1470_s23  ;;  %v313_v38 = vld [vmem:[%s1836_s0 + $0x2] sm:$0x1] }
 0x1e6   :  { %v1354_v39 = vpop.eup %1353 }
 0x1e7   :  { %144 = vrot.lane.b32.xlu1 %v1354_v39, %s1470_s23  ;;  %v314_v39 = vld [vmem:[%s1836_s0 + $0xa] sm:$0x1] }
 0x1eb   :  { %157 = vrot.lane.b32.xlu1 %v156_v41, %s1471_s24 }
 0x255   :  { %v147_v42 = vpop.permute.xlu0 %146 }
 0x256   :  { %v1548_v43 = vmul.f32 %v1348_v24, %v147_v42 }
 0x258   :  { %v164_v45 = vrot.slane %v1548_v43, 7 }
 0x259   :  { %v145_v44 = vpop.permute.xlu1 %144 }
 0x25a   :  { %v1551_v46 = vmul.f32 %v1350_v27, %v145_v44 }
 0x25c   :  { %v165_v47 = vsel %vm155_vm3, %v164_v45, %v1551_v46 }
 0x25d   :  { %166 = vrot.lane.b32.xlu0 %v165_v47, %s1469_s1  ;;  %v158_v48 = vpop.permute.xlu1 %157 }
 0x25e   :  { %161 = vst.msk [vmem:[#allocation4] sm:$0x3] %vm22_vm0, %v158_v48 }
 0x265   :  { %v246_v63 = vld [vmem:[#allocation4] sm:$0x3] }
 0x266   :  { %v248_v3 = vrot.slane %v246_v63, 1 }
 0x2cf   :  { %v167_v49 = vpop.permute.xlu0 %166 }
 0x2d0   :  { %169 = vst.msk [vmem:[#allocation3] sm:$0x3] %vm22_vm0, %v167_v49 }
 0x2d7   :  { %v181_v50 = vld [vmem:[#allocation3] sm:$0x3] }
 0x2d8   :  { %v182_v51 = vpack.c.bf16 %v181_v50, %v181_v50 }
 0x2da   :  { %1271 = vmatmul.mubr.msk.bf16.vlgmr.msra.gmra.mrb[0].mxu1 %vm45_vm2, %v182_v51 }
 0x2db   :  { %1283 = vmatpush3.bf16.msra.mxu1 %v1501_v1  ;;  %1286 = vmatprep.mubr.msk.bf16.mxu1 %vm1468_vm1, %v1467_v0 }
 0x2dc   :  { %1284 = vmatprep.subr.bf16.mxu1 %v1467_v0 }
 0x2df   :  { %1285 = vmatpush3.bf16.msra.mxu1 %v1516_v2 }
 0x2e0   :  { %1298 = vmatprep.subr.bf16.mxu1 %v1467_v0 }
 0x3ad   :  { %v220_v54 = vpop.f32.mrb[0].mxu1 }
 0x3ae   :  { %v227_v55 = vrot.slane %v220_v54, 1  ;;  %v230_v56 = vadd.f32 %v220_v54, %v179_v52  ;;  %v1272_v57 = vpop.f32.mrb[1].mxu1 }
 0x3af   :  { %v223_v58 = vpop.f32.mrb[2].mxu1 }
 0x3b0   :  { %v231_v59 = vadd.f32 %v227_v55, %v180_v53  ;;  %1355 = vtanh.f32 %v230_v56  ;;  %v1273_v60 = vpop.f32.mrb[3].mxu1  ;;  %v1205_v4 = vmul.f32 -1.442695, %v230_v56 }
 0x3b2   :  { %1357 = vtanh.f32 %v231_v59  ;;  %v1206_v5 = vmul.f32 -1.442695, %v231_v59 }
 0x3b3   :  { %1359 = vpow2.f32 %v1205_v4 }
 0x3b4   :  { %1361 = vpow2.f32 %v1206_v5 }
 0x3ba   :  { %v1356_v61 = vpop.eup %1355 }
 0x3bb   :  { %259 = vrot.lane.b32.xlu1 %v1356_v61, %s1470_s23 }
 0x3bc   :  { %v1358_v62 = vpop.eup %1357 }
 0x3bd   :  { %261 = vrot.lane.b32.xlu0 %v1358_v62, %s1470_s23  ;;  %v1360_v6 = vpop.eup %1359 }
 0x3be   :  { %v1362_v7 = vpop.eup %1361  ;;  %v238_v8 = vadd.f32 1.0, %v1360_v6 }
 0x3bf   :  { %249 = vrot.lane.b32.xlu1 %v246_v63, %s1469_s1  ;;  %v239_v9 = vadd.f32 1.0, %v1362_v7 }
 0x3c0   :  { %1363 = vrcp.f32 %v238_v8 }
 0x3c1   :  { %251 = vrot.lane.b32.xlu0 %v248_v3, %s1469_s1  ;;  %1365 = vrcp.f32 %v239_v9 }
 0x3ca   :  { %v1364_v10 = vpop.eup %1363 }
 0x3cb   :  { %v1366_v13 = vpop.eup %1365 }
 0x42d   :  { %v260_v11 = vpop.permute.xlu1 %259 }
 0x42e   :  { %v265_v12 = vmul.f32 %v1364_v10, %v260_v11 }
 0x42f   :  { %v262_v14 = vpop.permute.xlu0 %261 }
 0x430   :  { %269 = vrot.lane.b32.xlu1 %v265_v12, %s1469_s1  ;;  %v266_v15 = vmul.f32 %v1366_v13, %v262_v14 }
 0x431   :  { %v250_v16 = vpop.permute.xlu1 %249 }
 0x432   :  { %271 = vrot.lane.b32.xlu0 %v266_v15, %s1469_s1  ;;  %v255_v17 = vmul.f32 %v1364_v10, %v250_v16 }
 0x433   :  { %v252_v18 = vpop.permute.xlu0 %251 }
 0x434   :  { %v256_v21 = vmul.f32 %v1366_v13, %v252_v18 }
 0x4a2   :  { %v270_v19 = vpop.permute.xlu1 %269 }
 0x4a3   :  { %v275_v20 = vadd.f32 %v270_v19, %v255_v17 }
 0x4a4   :  { %v272_v22 = vpop.permute.xlu0 %271 }
 0x4a5   :  { %1367 = vtanh.f32 %v275_v20  ;;  %v276_v23 = vadd.f32 %v272_v22, %v256_v21 }
 0x4a7   :  { %1369 = vtanh.f32 %v276_v23  ;;  %v291_v25 = vrot.slane %v276_v23, 7 }
 0x4a9   :  { %v292_v27 = vsel %vm155_vm3, %v291_v25, %v275_v20 }
 0x4af   :  { %v1368_v24 = vpop.eup %1367 }
 0x4b0   :  { %281 = vrot.lane.b32.xlu1 %v1368_v24, %s1470_s23 }
 0x4b1   :  { %v1370_v26 = vpop.eup %1369 }
 0x4b2   :  { %283 = vrot.lane.b32.xlu0 %v1370_v26, %s1470_s23  ;;  %v447_v26 = vld [vmem:[%s1836_s0 + $0x3] sm:$0x1] }
 0x4b4   :  { %293 = vrot.lane.b32.xlu1 %v292_v27, %s1471_s24  ;;  %v448_v27 = vld [vmem:[%s1836_s0 + $0xb] sm:$0x1] }
 0x522   :  { %v282_v28 = vpop.permute.xlu1 %281 }
 0x523   :  { %v1584_v32 = vmul.f32 %v1364_v10, %v282_v28 }
 0x524   :  { %v284_v29 = vpop.permute.xlu0 %283 }
 0x525   :  { %v1581_v30 = vmul.f32 %v1366_v13, %v284_v29 }
 0x526   :  { %v294_v31 = vpop.permute.xlu1 %293 }
 0x527   :  { %296 = vst.msk [vmem:[#allocation4] sm:$0x3] %vm22_vm0, %v294_v31  ;;  %v299_v33 = vrot.slane %v1581_v30, 7 }
 0x529   :  { %v300_v34 = vsel %vm155_vm3, %v299_v33, %v1584_v32 }
 0x52a   :  { %301 = vrot.lane.b32.xlu0 %v300_v34, %s1469_s1 }
 0x52e   :  { %v380_v51 = vld [vmem:[#allocation4] sm:$0x3] }
 0x52f   :  { %v382_v52 = vrot.slane %v380_v51, 1 }
 0x59c   :  { %v302_v35 = vpop.permute.xlu0 %301 }
 0x59d   :  { %304 = vst.msk [vmem:[#allocation3] sm:$0x3] %vm22_vm0, %v302_v35 }
 0x5a4   :  { %v315_v36 = vld [vmem:[#allocation3] sm:$0x3] }
 0x5a5   :  { %v316_v37 = vpack.c.bf16 %v315_v36, %v315_v36 }
 0x5a7   :  { %1279 = vmatmul.mubr.msk.bf16.vlgmr.msra.gmra.mrb[4].mxu0 %vm45_vm2, %v316_v37 }
 0x5a8   :  { %1291 = vmatpush3.bf16.msra.mxu0 %v1501_v1  ;;  %1294 = vmatprep.mubr.msk.bf16.mxu0 %vm1468_vm1, %v1467_v0 }
 0x5a9   :  { %1292 = vmatprep.subr.bf16.mxu0 %v1467_v0 }
 0x5ac   :  { %1293 = vmatpush3.bf16.msra.mxu0 %v1516_v2 }
 0x5ad   :  { %1306 = vmatprep.subr.bf16.mxu0 %v1467_v0 }
 0x67a   :  { %v354_v40 = vpop.f32.mrb[4].mxu0 }
 0x67b   :  { %v361_v41 = vrot.slane %v354_v40, 1  ;;  %v364_v42 = vadd.f32 %v354_v40, %v313_v38  ;;  %v1280_v44 = vpop.f32.mrb[5].mxu0 }
 0x67c   :  { %v357_v45 = vpop.f32.mrb[6].mxu0 }
 0x67d   :  { %v365_v47 = vadd.f32 %v361_v41, %v314_v39  ;;  %1371 = vtanh.f32 %v364_v42  ;;  %v1281_v48 = vpop.f32.mrb[7].mxu0  ;;  %v1208_v53 = vmul.f32 -1.442695, %v364_v42 }
 0x67f   :  { %1373 = vtanh.f32 %v365_v47  ;;  %v1209_v54 = vmul.f32 -1.442695, %v365_v47 }
 0x680   :  { %1375 = vpow2.f32 %v1208_v53 }
 0x681   :  { %1377 = vpow2.f32 %v1209_v54 }
 0x687   :  { %v1372_v49 = vpop.eup %1371 }
 0x688   :  { %393 = vrot.lane.b32.xlu1 %v1372_v49, %s1470_s23 }
 0x689   :  { %v1374_v50 = vpop.eup %1373 }
 0x68a   :  { %395 = vrot.lane.b32.xlu0 %v1374_v50, %s1470_s23  ;;  %v1376_v55 = vpop.eup %1375 }
 0x68b   :  { %v1378_v56 = vpop.eup %1377  ;;  %v372_v57 = vadd.f32 1.0, %v1376_v55 }
 0x68c   :  { %383 = vrot.lane.b32.xlu1 %v380_v51, %s1469_s1  ;;  %v373_v58 = vadd.f32 1.0, %v1378_v56 }
 0x68d   :  { %1379 = vrcp.f32 %v372_v57 }
 0x68e   :  { %385 = vrot.lane.b32.xlu0 %v382_v52, %s1469_s1  ;;  %1381 = vrcp.f32 %v373_v58 }
 0x697   :  { %v1380_v59 = vpop.eup %1379 }
 0x698   :  { %v1382_v62 = vpop.eup %1381 }
 0x6fa   :  { %v394_v60 = vpop.permute.xlu1 %393 }
 0x6fb   :  { %v399_v61 = vmul.f32 %v1380_v59, %v394_v60 }
 0x6fc   :  { %v396_v63 = vpop.permute.xlu0 %395 }
 0x6fd   :  { %403 = vrot.lane.b32.xlu1 %v399_v61, %s1469_s1  ;;  %v400_v3 = vmul.f32 %v1382_v62, %v396_v63 }
 0x6fe   :  { %v384_v4 = vpop.permute.xlu1 %383 }
 0x6ff   :  { %405 = vrot.lane.b32.xlu0 %v400_v3, %s1469_s1  ;;  %v389_v5 = vmul.f32 %v1380_v59, %v384_v4 }
 0x700   :  { %v386_v6 = vpop.permute.xlu0 %385 }
 0x701   :  { %v390_v9 = vmul.f32 %v1382_v62, %v386_v6 }
 0x76f   :  { %v404_v7 = vpop.permute.xlu1 %403 }
 0x770   :  { %v409_v8 = vadd.f32 %v404_v7, %v389_v5 }
 0x771   :  { %v406_v10 = vpop.permute.xlu0 %405 }
 0x772   :  { %1383 = vtanh.f32 %v409_v8  ;;  %v410_v11 = vadd.f32 %v406_v10, %v390_v9 }
 0x774   :  { %1385 = vtanh.f32 %v410_v11  ;;  %v425_v13 = vrot.slane %v410_v11, 7 }
 0x776   :  { %v426_v15 = vsel %vm155_vm3, %v425_v13, %v409_v8 }
 0x77c   :  { %v1384_v12 = vpop.eup %1383 }
 0x77d   :  { %415 = vrot.lane.b32.xlu1 %v1384_v12, %s1470_s23 }
 0x77e   :  { %v1386_v14 = vpop.eup %1385 }
 0x77f   :  { %417 = vrot.lane.b32.xlu0 %v1386_v14, %s1470_s23 }
 0x781   :  { %427 = vrot.lane.b32.xlu1 %v426_v15, %s1471_s24 }
 0x7ef   :  { %v416_v16 = vpop.permute.xlu1 %415 }
 0x7f0   :  { %v1617_v20 = vmul.f32 %v1380_v59, %v416_v16  ;;  %v581_v16 = vld [vmem:[%s1836_s0 + $0x4] sm:$0x1] }
 0x7f1   :  { %v418_v17 = vpop.permute.xlu0 %417 }
 0x7f2   :  { %v1614_v18 = vmul.f32 %v1382_v62, %v418_v17  ;;  %v582_v17 = vld [vmem:[%s1836_s0 + $0xc] sm:$0x1] }
 0x7f3   :  { %v428_v19 = vpop.permute.xlu1 %427 }
 0x7f4   :  { %430 = vst.msk [vmem:[#allocation4] sm:$0x3] %vm22_vm0, %v428_v19  ;;  %v433_v21 = vrot.slane %v1614_v18, 7 }
 0x7f6   :  { %v434_v22 = vsel %vm155_vm3, %v433_v21, %v1617_v20 }
 0x7f7   :  { %435 = vrot.lane.b32.xlu0 %v434_v22, %s1469_s1 }
 0x7fb   :  { %v514_v39 = vld [vmem:[#allocation4] sm:$0x3] }
 0x7fc   :  { %v516_v40 = vrot.slane %v514_v39, 1 }
 0x869   :  { %v436_v23 = vpop.permute.xlu0 %435 }
 0x86a   :  { %438 = vst.msk [vmem:[#allocation3] sm:$0x3] %vm22_vm0, %v436_v23 }
 0x871   :  { %v449_v24 = vld [vmem:[#allocation3] sm:$0x3] }
 0x872   :  { %v450_v25 = vpack.c.bf16 %v449_v24, %v449_v24 }
 0x874   :  { %1287 = vmatmul.mubr.msk.bf16.vlgmr.msra.gmra.mrb[4].mxu1 %vm45_vm2, %v450_v25 }
 0x875   :  { %1299 = vmatpush3.bf16.msra.mxu1 %v1501_v1  ;;  %1302 = vmatprep.mubr.msk.bf16.mxu1 %vm1468_vm1, %v1467_v0 }
 0x876   :  { %1300 = vmatprep.subr.bf16.mxu1 %v1467_v0 }
 0x879   :  { %1301 = vmatpush3.bf16.msra.mxu1 %v1516_v2 }
 0x87a   :  { %1314 = vmatprep.subr.bf16.mxu1 %v1467_v0 }
 0x947   :  { %v488_v28 = vpop.f32.mrb[4].mxu1 }
 0x948   :  { %v495_v29 = vrot.slane %v488_v28, 1  ;;  %v498_v31 = vadd.f32 %v488_v28, %v447_v26  ;;  %v1288_v33 = vpop.f32.mrb[5].mxu1 }
 0x949   :  { %v491_v34 = vpop.f32.mrb[6].mxu1 }
 0x94a   :  { %v499_v35 = vadd.f32 %v495_v29, %v448_v27  ;;  %1387 = vtanh.f32 %v498_v31  ;;  %v1289_v36 = vpop.f32.mrb[7].mxu1  ;;  %v1211_v41 = vmul.f32 -1.442695, %v498_v31 }
 0x94c   :  { %1389 = vtanh.f32 %v499_v35  ;;  %v1212_v42 = vmul.f32 -1.442695, %v499_v35 }
 0x94d   :  { %1391 = vpow2.f32 %v1211_v41 }
 0x94e   :  { %1393 = vpow2.f32 %v1212_v42 }
 0x954   :  { %v1388_v37 = vpop.eup %1387 }
 0x955   :  { %527 = vrot.lane.b32.xlu1 %v1388_v37, %s1470_s23 }
 0x956   :  { %v1390_v38 = vpop.eup %1389 }
 0x957   :  { %529 = vrot.lane.b32.xlu0 %v1390_v38, %s1470_s23  ;;  %v1392_v44 = vpop.eup %1391 }
 0x958   :  { %v1394_v45 = vpop.eup %1393  ;;  %v506_v47 = vadd.f32 1.0, %v1392_v44 }
 0x959   :  { %517 = vrot.lane.b32.xlu1 %v514_v39, %s1469_s1  ;;  %v507_v48 = vadd.f32 1.0, %v1394_v45 }
 0x95a   :  { %1395 = vrcp.f32 %v506_v47 }
 0x95b   :  { %519 = vrot.lane.b32.xlu0 %v516_v40, %s1469_s1  ;;  %1397 = vrcp.f32 %v507_v48 }
 0x964   :  { %v1396_v49 = vpop.eup %1395 }
 0x965   :  { %v1398_v52 = vpop.eup %1397 }
 0x9c7   :  { %v528_v50 = vpop.permute.xlu1 %527 }
 0x9c8   :  { %v533_v51 = vmul.f32 %v1396_v49, %v528_v50 }
 0x9c9   :  { %v530_v53 = vpop.permute.xlu0 %529 }
 0x9ca   :  { %537 = vrot.lane.b32.xlu1 %v533_v51, %s1469_s1  ;;  %v534_v54 = vmul.f32 %v1398_v52, %v530_v53 }
 0x9cb   :  { %v518_v55 = vpop.permute.xlu1 %517 }
 0x9cc   :  { %539 = vrot.lane.b32.xlu0 %v534_v54, %s1469_s1  ;;  %v523_v56 = vmul.f32 %v1396_v49, %v518_v55 }
 0x9cd   :  { %v520_v57 = vpop.permute.xlu0 %519 }
 0x9ce   :  { %v524_v60 = vmul.f32 %v1398_v52, %v520_v57 }
 0xa3c   :  { %v538_v58 = vpop.permute.xlu1 %537 }
 0xa3d   :  { %v543_v59 = vadd.f32 %v538_v58, %v523_v56 }
 0xa3e   :  { %v540_v61 = vpop.permute.xlu0 %539 }
 0xa3f   :  { %1399 = vtanh.f32 %v543_v59  ;;  %v544_v62 = vadd.f32 %v540_v61, %v524_v60 }
 0xa41   :  { %1401 = vtanh.f32 %v544_v62  ;;  %v559_v3 = vrot.slane %v544_v62, 7 }
 0xa43   :  { %v560_v5 = vsel %vm155_vm3, %v559_v3, %v543_v59 }
 0xa49   :  { %v1400_v63 = vpop.eup %1399 }
 0xa4a   :  { %549 = vrot.lane.b32.xlu1 %v1400_v63, %s1470_s23 }
 0xa4b   :  { %v1402_v4 = vpop.eup %1401 }
 0xa4c   :  { %551 = vrot.lane.b32.xlu0 %v1402_v4, %s1470_s23 }
 0xa4e   :  { %561 = vrot.lane.b32.xlu1 %v560_v5, %s1471_s24 }
 0xabc   :  { %v550_v6 = vpop.permute.xlu1 %549 }
 0xabd   :  { %v1650_v10 = vmul.f32 %v1396_v49, %v550_v6 }
 0xabe   :  { %v552_v7 = vpop.permute.xlu0 %551 }
 0xabf   :  { %v1647_v8 = vmul.f32 %v1398_v52, %v552_v7 }
 0xac0   :  { %v562_v9 = vpop.permute.xlu1 %561 }
 0xac1   :  { %564 = vst.msk [vmem:[#allocation4] sm:$0x3] %vm22_vm0, %v562_v9  ;;  %v567_v11 = vrot.slane %v1647_v8, 7  ;;  %v715_v9 = vld [vmem:[%s1836_s0 + $0x5] sm:$0x1] }
 0xac3   :  { %v568_v12 = vsel %vm155_vm3, %v567_v11, %v1650_v10  ;;  %v716_v11 = vld [vmem:[%s1836_s0 + $0xd] sm:$0x1] }
 0xac4   :  { %569 = vrot.lane.b32.xlu0 %v568_v12, %s1469_s1 }
 0xac8   :  { %v648_v29 = vld [vmem:[#allocation4] sm:$0x3] }
 0xac9   :  { %v650_v31 = vrot.slane %v648_v29, 1 }
 0xb36   :  { %v570_v13 = vpop.permute.xlu0 %569 }
 0xb37   :  { %572 = vst.msk [vmem:[#allocation3] sm:$0x3] %vm22_vm0, %v570_v13 }
 0xb3e   :  { %v583_v14 = vld [vmem:[#allocation3] sm:$0x3] }
 0xb3f   :  { %v584_v15 = vpack.c.bf16 %v583_v14, %v583_v14 }
 0xb41   :  { %1295 = vmatmul.mubr.msk.bf16.vlgmr.msra.gmra.mrb[8].mxu0 %vm45_vm2, %v584_v15 }
 0xb42   :  { %1307 = vmatpush3.bf16.msra.mxu0 %v1501_v1  ;;  %1310 = vmatprep.mubr.msk.bf16.mxu0 %vm1468_vm1, %v1467_v0 }
 0xb43   :  { %1308 = vmatprep.subr.bf16.mxu0 %v1467_v0 }
 0xb46   :  { %1309 = vmatpush3.bf16.msra.mxu0 %v1516_v2 }
 0xb47   :  { %1322 = vmatprep.subr.bf16.mxu0 %v1467_v0 }
 0xc14   :  { %v622_v19 = vpop.f32.mrb[8].mxu0 }
 0xc15   :  { %v629_v21 = vrot.slane %v622_v19, 1  ;;  %v632_v22 = vadd.f32 %v622_v19, %v581_v16  ;;  %v1296_v23 = vpop.f32.mrb[9].mxu0 }
 0xc16   :  { %v625_v24 = vpop.f32.mrb[10].mxu0 }
 0xc17   :  { %v633_v25 = vadd.f32 %v629_v21, %v582_v17  ;;  %1403 = vtanh.f32 %v632_v22  ;;  %v1297_v26 = vpop.f32.mrb[11].mxu0  ;;  %v1214_v33 = vmul.f32 -1.442695, %v632_v22 }
 0xc19   :  { %1405 = vtanh.f32 %v633_v25  ;;  %v1215_v34 = vmul.f32 -1.442695, %v633_v25 }
 0xc1a   :  { %1407 = vpow2.f32 %v1214_v33 }
 0xc1b   :  { %1409 = vpow2.f32 %v1215_v34 }
 0xc21   :  { %v1404_v27 = vpop.eup %1403 }
 0xc22   :  { %661 = vrot.lane.b32.xlu1 %v1404_v27, %s1470_s23 }
 0xc23   :  { %v1406_v28 = vpop.eup %1405 }
 0xc24   :  { %663 = vrot.lane.b32.xlu0 %v1406_v28, %s1470_s23  ;;  %v1408_v35 = vpop.eup %1407 }
 0xc25   :  { %v1410_v36 = vpop.eup %1409  ;;  %v640_v37 = vadd.f32 1.0, %v1408_v35 }
 0xc26   :  { %651 = vrot.lane.b32.xlu1 %v648_v29, %s1469_s1  ;;  %v641_v38 = vadd.f32 1.0, %v1410_v36 }
 0xc27   :  { %1411 = vrcp.f32 %v640_v37 }
 0xc28   :  { %653 = vrot.lane.b32.xlu0 %v650_v31, %s1469_s1  ;;  %1413 = vrcp.f32 %v641_v38 }
 0xc31   :  { %v1412_v39 = vpop.eup %1411 }
 0xc32   :  { %v1414_v42 = vpop.eup %1413 }
 0xc94   :  { %v662_v40 = vpop.permute.xlu1 %661 }
 0xc95   :  { %v667_v41 = vmul.f32 %v1412_v39, %v662_v40 }
 0xc96   :  { %v664_v44 = vpop.permute.xlu0 %663 }
 0xc97   :  { %671 = vrot.lane.b32.xlu1 %v667_v41, %s1469_s1  ;;  %v668_v45 = vmul.f32 %v1414_v42, %v664_v44 }
 0xc98   :  { %v652_v47 = vpop.permute.xlu1 %651 }
 0xc99   :  { %673 = vrot.lane.b32.xlu0 %v668_v45, %s1469_s1  ;;  %v657_v48 = vmul.f32 %v1412_v39, %v652_v47 }
 0xc9a   :  { %v654_v49 = vpop.permute.xlu0 %653 }
 0xc9b   :  { %v658_v52 = vmul.f32 %v1414_v42, %v654_v49 }
 0xd09   :  { %v672_v50 = vpop.permute.xlu1 %671 }
 0xd0a   :  { %v677_v51 = vadd.f32 %v672_v50, %v657_v48 }
 0xd0b   :  { %v674_v53 = vpop.permute.xlu0 %673 }
 0xd0c   :  { %1415 = vtanh.f32 %v677_v51  ;;  %v678_v54 = vadd.f32 %v674_v53, %v658_v52 }
 0xd0e   :  { %1417 = vtanh.f32 %v678_v54  ;;  %v693_v56 = vrot.slane %v678_v54, 7 }
 0xd10   :  { %v694_v58 = vsel %vm155_vm3, %v693_v56, %v677_v51 }
 0xd16   :  { %v1416_v55 = vpop.eup %1415 }
 0xd17   :  { %683 = vrot.lane.b32.xlu1 %v1416_v55, %s1470_s23 }
 0xd18   :  { %v1418_v57 = vpop.eup %1417 }
 0xd19   :  { %685 = vrot.lane.b32.xlu0 %v1418_v57, %s1470_s23 }
 0xd1b   :  { %695 = vrot.lane.b32.xlu1 %v694_v58, %s1471_s24 }
 0xd89   :  { %v684_v59 = vpop.permute.xlu1 %683 }
 0xd8a   :  { %v1683_v63 = vmul.f32 %v1412_v39, %v684_v59 }
 0xd8b   :  { %v686_v60 = vpop.permute.xlu0 %685 }
 0xd8c   :  { %v1680_v61 = vmul.f32 %v1414_v42, %v686_v60 }
 0xd8d   :  { %v696_v62 = vpop.permute.xlu1 %695 }
 0xd8e   :  { %698 = vst.msk [vmem:[#allocation4] sm:$0x3] %vm22_vm0, %v696_v62  ;;  %v701_v3 = vrot.slane %v1680_v61, 7  ;;  %v849_v62 = vld [vmem:[%s1836_s0 + $0x6] sm:$0x1] }
 0xd90   :  { %v702_v4 = vsel %vm155_vm3, %v701_v3, %v1683_v63  ;;  %v850_v3 = vld [vmem:[%s1836_s0 + $0xe] sm:$0x1] }
 0xd91   :  { %703 = vrot.lane.b32.xlu0 %v702_v4, %s1469_s1 }
 0xd95   :  { %v782_v21 = vld [vmem:[#allocation4] sm:$0x3] }
 0xd96   :  { %v784_v22 = vrot.slane %v782_v21, 1 }
 0xe03   :  { %v704_v5 = vpop.permute.xlu0 %703 }
 0xe04   :  { %706 = vst.msk [vmem:[#allocation3] sm:$0x3] %vm22_vm0, %v704_v5 }
 0xe0b   :  { %v717_v6 = vld [vmem:[#allocation3] sm:$0x3] }
 0xe0c   :  { %v718_v7 = vpack.c.bf16 %v717_v6, %v717_v6 }
 0xe0e   :  { %1303 = vmatmul.mubr.msk.bf16.vlgmr.msra.gmra.mrb[8].mxu1 %vm45_vm2, %v718_v7 }
 0xe0f   :  { %1315 = vmatpush3.bf16.msra.mxu1 %v1501_v1  ;;  %1318 = vmatprep.mubr.msk.bf16.mxu1 %vm1468_vm1, %v1467_v0 }
 0xe10   :  { %1316 = vmatprep.subr.bf16.mxu1 %v1467_v0 }
 0xe13   :  { %1317 = vmatpush3.bf16.msra.mxu1 %v1516_v2 }
 0xee1   :  { %v756_v12 = vpop.f32.mrb[8].mxu1 }
 0xee2   :  { %v763_v13 = vrot.slane %v756_v12, 1  ;;  %v766_v14 = vadd.f32 %v756_v12, %v715_v9  ;;  %v1304_v15 = vpop.f32.mrb[9].mxu1 }
 0xee3   :  { %v759_v1 = vpop.f32.mrb[10].mxu1 }
 0xee4   :  { %v767_v16 = vadd.f32 %v763_v13, %v716_v11  ;;  %1419 = vtanh.f32 %v766_v14  ;;  %v1305_v17 = vpop.f32.mrb[11].mxu1  ;;  %v1217_v23 = vmul.f32 -1.442695, %v766_v14 }
 0xee6   :  { %1421 = vtanh.f32 %v767_v16  ;;  %v1218_v24 = vmul.f32 -1.442695, %v767_v16 }
 0xee7   :  { %1423 = vpow2.f32 %v1217_v23 }
 0xee8   :  { %1425 = vpow2.f32 %v1218_v24 }
 0xeee   :  { %v1420_v19 = vpop.eup %1419 }
 0xeef   :  { %795 = vrot.lane.b32.xlu1 %v1420_v19, %s1470_s23 }
 0xef0   :  { %v1422_v2 = vpop.eup %1421 }
 0xef1   :  { %797 = vrot.lane.b32.xlu0 %v1422_v2, %s1470_s23  ;;  %v1424_v25 = vpop.eup %1423 }
 0xef2   :  { %v1426_v26 = vpop.eup %1425  ;;  %v774_v27 = vadd.f32 1.0, %v1424_v25 }
 0xef3   :  { %785 = vrot.lane.b32.xlu1 %v782_v21, %s1469_s1  ;;  %v775_v28 = vadd.f32 1.0, %v1426_v26 }
 0xef4   :  { %1427 = vrcp.f32 %v774_v27 }
 0xef5   :  { %787 = vrot.lane.b32.xlu0 %v784_v22, %s1469_s1  ;;  %1429 = vrcp.f32 %v775_v28 }
 0xefe   :  { %v1428_v29 = vpop.eup %1427 }
 0xeff   :  { %v1430_v34 = vpop.eup %1429 }
 0xf61   :  { %v796_v31 = vpop.permute.xlu1 %795 }
 0xf62   :  { %v801_v33 = vmul.f32 %v1428_v29, %v796_v31 }
 0xf63   :  { %v798_v35 = vpop.permute.xlu0 %797 }
 0xf64   :  { %805 = vrot.lane.b32.xlu1 %v801_v33, %s1469_s1  ;;  %v802_v36 = vmul.f32 %v1430_v34, %v798_v35 }
 0xf65   :  { %v786_v37 = vpop.permute.xlu1 %785 }
 0xf66   :  { %807 = vrot.lane.b32.xlu0 %v802_v36, %s1469_s1  ;;  %v791_v38 = vmul.f32 %v1428_v29, %v786_v37 }
 0xf67   :  { %v788_v39 = vpop.permute.xlu0 %787 }
 0xf68   :  { %v792_v42 = vmul.f32 %v1430_v34, %v788_v39 }
 0xfd6   :  { %v806_v40 = vpop.permute.xlu1 %805 }
 0xfd7   :  { %v811_v41 = vadd.f32 %v806_v40, %v791_v38 }
 0xfd8   :  { %v808_v44 = vpop.permute.xlu0 %807 }
 0xfd9   :  { %1431 = vtanh.f32 %v811_v41  ;;  %v812_v45 = vadd.f32 %v808_v44, %v792_v42 }
 0xfdb   :  { %1433 = vtanh.f32 %v812_v45  ;;  %v827_v48 = vrot.slane %v812_v45, 7 }
 0xfdd   :  { %v828_v50 = vsel %vm155_vm3, %v827_v48, %v811_v41 }
 0xfe3   :  { %v1432_v47 = vpop.eup %1431 }
 0xfe4   :  { %817 = vrot.lane.b32.xlu1 %v1432_v47, %s1470_s23 }
 0xfe5   :  { %v1434_v49 = vpop.eup %1433 }
 0xfe6   :  { %819 = vrot.lane.b32.xlu0 %v1434_v49, %s1470_s23 }
 0xfe8   :  { %829 = vrot.lane.b32.xlu1 %v828_v50, %s1471_s24 }
0x1056   :  { %v818_v51 = vpop.permute.xlu1 %817 }
0x1057   :  { %v1715_v55 = vmul.f32 %v1428_v29, %v818_v51 }
0x1058   :  { %v820_v52 = vpop.permute.xlu0 %819 }
0x1059   :  { %v1712_v53 = vmul.f32 %v1430_v34, %v820_v52 }
0x105a   :  { %v830_v54 = vpop.permute.xlu1 %829 }
0x105b   :  { %832 = vst.msk [vmem:[#allocation4] sm:$0x3] %vm22_vm0, %v830_v54  ;;  %v835_v56 = vrot.slane %v1712_v53, 7 }
0x105d   :  { %v836_v57 = vsel %vm155_vm3, %v835_v56, %v1715_v55 }
0x105e   :  { %837 = vrot.lane.b32.xlu0 %v836_v57, %s1469_s1  ;;  %v983_v57 = vld [vmem:[%s1836_s0 + $0x7] sm:$0x1] }
0x1062   :  { %v916_v15 = vld [vmem:[#allocation4] sm:$0x3] }
0x1063   :  { %v918_v1 = vrot.slane %v916_v15, 1 }
0x10d0   :  { %v838_v58 = vpop.permute.xlu0 %837 }
0x10d1   :  { %840 = vst.msk [vmem:[#allocation3] sm:$0x3] %vm22_vm0, %v838_v58  ;;  %v984_v58 = vld [vmem:[%s1836_s0 + $0xf] sm:$0x1] }
0x10d8   :  { %v851_v59 = vld [vmem:[#allocation3] sm:$0x3] }
0x10d9   :  { %v852_v60 = vpack.c.bf16 %v851_v59, %v851_v59 }
0x10db   :  { %1311 = vmatmul.mubr.msk.bf16.vlgmr.msra.gmra.mrb[12].mxu0 %vm45_vm2, %v852_v60 }
0x10dc   :  { %1326 = vmatprep.mubr.msk.bf16.mxu0 %vm1468_vm1, %v1467_v0 }
0x11ae   :  { %v890_v4 = vpop.f32.mrb[12].mxu0 }
0x11af   :  { %v897_v5 = vrot.slane %v890_v4, 1  ;;  %v900_v6 = vadd.f32 %v890_v4, %v849_v62  ;;  %v1312_v7 = vpop.f32.mrb[13].mxu0 }
0x11b0   :  { %v893_v9 = vpop.f32.mrb[14].mxu0 }
0x11b1   :  { %v901_v11 = vadd.f32 %v897_v5, %v850_v3  ;;  %1435 = vtanh.f32 %v900_v6  ;;  %v1313_v12 = vpop.f32.mrb[15].mxu0  ;;  %v1220_v16 = vmul.f32 -1.442695, %v900_v6 }
0x11b3   :  { %1437 = vtanh.f32 %v901_v11  ;;  %v1221_v17 = vmul.f32 -1.442695, %v901_v11 }
0x11b4   :  { %1439 = vpow2.f32 %v1220_v16 }
0x11b5   :  { %1441 = vpow2.f32 %v1221_v17 }
0x11bb   :  { %v1436_v13 = vpop.eup %1435 }
0x11bc   :  { %929 = vrot.lane.b32.xlu1 %v1436_v13, %s1470_s23 }
0x11bd   :  { %v1438_v14 = vpop.eup %1437 }
0x11be   :  { %931 = vrot.lane.b32.xlu0 %v1438_v14, %s1470_s23  ;;  %v1440_v19 = vpop.eup %1439 }
0x11bf   :  { %v1442_v2 = vpop.eup %1441  ;;  %v908_v21 = vadd.f32 1.0, %v1440_v19 }
0x11c0   :  { %919 = vrot.lane.b32.xlu1 %v916_v15, %s1469_s1  ;;  %v909_v22 = vadd.f32 1.0, %v1442_v2 }
0x11c1   :  { %1443 = vrcp.f32 %v908_v21 }
0x11c2   :  { %921 = vrot.lane.b32.xlu0 %v918_v1, %s1469_s1  ;;  %1445 = vrcp.f32 %v909_v22 }
0x11cb   :  { %v1444_v23 = vpop.eup %1443 }
0x11cc   :  { %v1446_v26 = vpop.eup %1445 }
0x122e   :  { %v930_v24 = vpop.permute.xlu1 %929 }
0x122f   :  { %v935_v25 = vmul.f32 %v1444_v23, %v930_v24 }
0x1230   :  { %v932_v27 = vpop.permute.xlu0 %931 }
0x1231   :  { %939 = vrot.lane.b32.xlu1 %v935_v25, %s1469_s1  ;;  %v936_v28 = vmul.f32 %v1446_v26, %v932_v27 }
0x1232   :  { %v920_v29 = vpop.permute.xlu1 %919 }
0x1233   :  { %941 = vrot.lane.b32.xlu0 %v936_v28, %s1469_s1  ;;  %v925_v31 = vmul.f32 %v1444_v23, %v920_v29 }
0x1234   :  { %v922_v33 = vpop.permute.xlu0 %921 }
0x1235   :  { %v926_v36 = vmul.f32 %v1446_v26, %v922_v33 }
0x12a3   :  { %v940_v34 = vpop.permute.xlu1 %939 }
0x12a4   :  { %v945_v35 = vadd.f32 %v940_v34, %v925_v31 }
0x12a5   :  { %v942_v37 = vpop.permute.xlu0 %941 }
0x12a6   :  { %1447 = vtanh.f32 %v945_v35  ;;  %v946_v38 = vadd.f32 %v942_v37, %v926_v36 }
0x12a8   :  { %1449 = vtanh.f32 %v946_v38  ;;  %v961_v40 = vrot.slane %v946_v38, 7 }
0x12aa   :  { %v962_v42 = vsel %vm155_vm3, %v961_v40, %v945_v35 }
0x12b0   :  { %v1448_v39 = vpop.eup %1447 }
0x12b1   :  { %951 = vrot.lane.b32.xlu1 %v1448_v39, %s1470_s23 }
0x12b2   :  { %v1450_v41 = vpop.eup %1449 }
0x12b3   :  { %953 = vrot.lane.b32.xlu0 %v1450_v41, %s1470_s23 }
0x12b5   :  { %963 = vrot.lane.b32.xlu1 %v962_v42, %s1471_s24 }
0x1323   :  { %v952_v44 = vpop.permute.xlu1 %951 }
0x1324   :  { %v1744_v49 = vmul.f32 %v1444_v23, %v952_v44 }
0x1325   :  { %v954_v45 = vpop.permute.xlu0 %953 }
0x1326   :  { %v1741_v47 = vmul.f32 %v1446_v26, %v954_v45 }
0x1327   :  { %v964_v48 = vpop.permute.xlu1 %963 }
0x1328   :  { %966 = vst.msk [vmem:[#allocation4] sm:$0x3] %vm22_vm0, %v964_v48  ;;  %v969_v50 = vrot.slane %v1741_v47, 7 }
0x132a   :  { %v970_v51 = vsel %vm155_vm3, %v969_v50, %v1744_v49 }
0x132b   :  { %971 = vrot.lane.b32.xlu0 %v970_v51, %s1469_s1 }
0x132f   :  { %v1050_v11 = vld [vmem:[#allocation4] sm:$0x3] }
0x1330   :  { %v1052_v12 = vrot.slane %v1050_v11, 1 }
0x139d   :  { %v972_v52 = vpop.permute.xlu0 %971 }
0x139e   :  { %974 = vst.msk [vmem:[#allocation3] sm:$0x3] %vm22_vm0, %v972_v52 }
0x13a5   :  { %v985_v54 = vld [vmem:[#allocation3] sm:$0x3] }
0x13a6   :  { %v986_v56 = vpack.c.bf16 %v985_v54, %v985_v54 }
0x13a8   :  { %1319 = vmatmul.mubr.msk.bf16.vlgmr.msra.gmra.mrb[12].mxu1 %vm45_vm2, %v986_v56 }
0x147b   :  { %v1024_v59 = vpop.f32.mrb[12].mxu1 }
0x147c   :  { %v1031_v60 = vrot.slane %v1024_v59, 1  ;;  %v1034_v62 = vadd.f32 %v1024_v59, %v983_v57  ;;  %v1320_v3 = vpop.f32.mrb[13].mxu1  ;;  %v1225_v59 = vld [vmem:[%s1838_s3] ss:$0 sm:$0xff] }
0x147d   :  { %v1027_v4 = vpop.f32.mrb[14].mxu1 }
0x147e   :  { %v1035_v5 = vadd.f32 %v1031_v60, %v984_v58  ;;  %1451 = vtanh.f32 %v1034_v62  ;;  %v1321_v6 = vpop.f32.mrb[15].mxu1  ;;  %v1223_v13 = vmul.f32 -1.442695, %v1034_v62 }
0x1480   :  { %1453 = vtanh.f32 %v1035_v5  ;;  %v1224_v14 = vmul.f32 -1.442695, %v1035_v5 }
0x1481   :  { %1455 = vpow2.f32 %v1223_v13 }
0x1482   :  { %1457 = vpow2.f32 %v1224_v14 }
0x1488   :  { %v1452_v7 = vpop.eup %1451 }
0x1489   :  { %1063 = vrot.lane.b32.xlu0 %v1452_v7, %s1470_s23 }
0x148a   :  { %v1454_v9 = vpop.eup %1453 }
0x148b   :  { %1065 = vrot.lane.b32.xlu1 %v1454_v9, %s1470_s23  ;;  %v1456_v15 = vpop.eup %1455 }
0x148c   :  { %v1458_v1 = vpop.eup %1457  ;;  %v1042_v16 = vadd.f32 1.0, %v1456_v15 }
0x148d   :  { %1053 = vrot.lane.b32.xlu0 %v1050_v11, %s1469_s1  ;;  %v1043_v17 = vadd.f32 1.0, %v1458_v1 }
0x148e   :  { %1459 = vrcp.f32 %v1042_v16 }
0x148f   :  { %1055 = vrot.lane.b32.xlu1 %v1052_v12, %s1469_s1  ;;  %1461 = vrcp.f32 %v1043_v17 }
0x1498   :  { %v1460_v19 = vpop.eup %1459 }
0x1499   :  { %v1462_v22 = vpop.eup %1461 }
0x14fb   :  { %v1064_v2 = vpop.permute.xlu0 %1063 }
0x14fc   :  { %v1069_v21 = vmul.f32 %v1460_v19, %v1064_v2 }
0x14fd   :  { %v1066_v23 = vpop.permute.xlu1 %1065 }
0x14fe   :  { %1073 = vrot.lane.b32.xlu0 %v1069_v21, %s1469_s1  ;;  %v1070_v24 = vmul.f32 %v1462_v22, %v1066_v23 }
0x14ff   :  { %v1054_v25 = vpop.permute.xlu0 %1053 }
0x1500   :  { %1075 = vrot.lane.b32.xlu1 %v1070_v24, %s1469_s1  ;;  %v1059_v26 = vmul.f32 %v1460_v19, %v1054_v25 }
0x1501   :  { %v1056_v27 = vpop.permute.xlu1 %1055 }
0x1502   :  { %v1060_v31 = vmul.f32 %v1462_v22, %v1056_v27 }
0x1570   :  { %v1074_v28 = vpop.permute.xlu0 %1073 }
0x1571   :  { %v1079_v29 = vadd.f32 %v1074_v28, %v1059_v26 }
0x1572   :  { %v1076_v33 = vpop.permute.xlu1 %1075 }
0x1573   :  { %1463 = vtanh.f32 %v1079_v29  ;;  %v1080_v34 = vadd.f32 %v1076_v33, %v1060_v31 }
0x1575   :  { %1465 = vtanh.f32 %v1080_v34  ;;  %v1095_v35 = vrot.slane %v1080_v34, 7 }
0x1577   :  { %v1096_v36 = vsel %vm155_vm3, %v1095_v35, %v1079_v29 }
0x157d   :  { %v1464_v37 = vpop.eup %1463 }
0x157e   :  { %1085 = vrot.lane.b32.xlu0 %v1464_v37, %s1470_s23 }
0x157f   :  { %v1466_v38 = vpop.eup %1465 }
0x1580   :  { %1087 = vrot.lane.b32.xlu1 %v1466_v38, %s1470_s23 }
0x1582   :  { %170 = vrot.lane.b32.xlu0 %v1551_v46, %s1469_s1  ;;  %v1338_v46 = vld [vmem:[%s1837_s2 + $0x8] sm:$0xff]  }
0x1584   :  { %172 = vrot.lane.b32.xlu1 %v1548_v43, %s1469_s1  ;;  %v1337_v43 = vld [vmem:[%s1837_s2] sm:$0xff]  }
0x1585   :  { %1323 = vmatpush3.bf16.msra.mxu0 %v1337_v43 }
0x1586   :  { %305 = vrot.lane.b32.xlu0 %v1584_v32, %s1469_s1  ;;  %1324 = vmatprep.subr.bf16.mxu0 %v1467_v0 }
0x1588   :  { %307 = vrot.lane.b32.xlu1 %v1581_v30, %s1469_s1 }
0x1589   :  { %1325 = vmatpush3.bf16.msra.mxu0 %v1338_v46 }
0x158a   :  { %439 = vrot.lane.b32.xlu0 %v1617_v20, %s1469_s1 }
0x158c   :  { %441 = vrot.lane.b32.xlu1 %v1614_v18, %s1469_s1 }
0x158e   :  { %573 = vrot.lane.b32.xlu0 %v1650_v10, %s1469_s1 }
0x1590   :  { %575 = vrot.lane.b32.xlu1 %v1647_v8, %s1469_s1 }
0x1592   :  { %707 = vrot.lane.b32.xlu0 %v1683_v63, %s1469_s1 }
0x1594   :  { %709 = vrot.lane.b32.xlu1 %v1680_v61, %s1469_s1 }
0x1596   :  { %841 = vrot.lane.b32.xlu0 %v1715_v55, %s1469_s1 }
0x1598   :  { %843 = vrot.lane.b32.xlu1 %v1712_v53, %s1469_s1 }
0x159a   :  { %975 = vrot.lane.b32.xlu0 %v1744_v49, %s1469_s1 }
0x159c   :  { %977 = vrot.lane.b32.xlu1 %v1741_v47, %s1469_s1 }
0x15f0   :  { %v1086_v30 = vpop.permute.xlu0 %1085 }
0x15f1   :  { %v1091_v32 = vmul.f32 %v1460_v19, %v1086_v30 }
0x15f2   :  { %v1088_v18 = vpop.permute.xlu1 %1087 }
0x15f3   :  { %1109 = vrot.lane.b32.xlu0 %v1091_v32, %s1469_s1  ;;  %v1092_v20 = vmul.f32 %v1462_v22, %v1088_v18 }
0x15f4   :  { %v171_v8 = vpop.permute.xlu0 %170 }
0x15f5   :  { %177 = vst.msk [vmem:[#allocation2] sm:$0x1] %vm176_vm4, %v171_v8  ;;  %v1103_v10 = vrot.slane %v1092_v20, 7  ;;  %1111 = vrot.lane.b32.xlu1 %v1092_v20, %s1469_s1 }
0x15f6   :  { %v173_v61 = vpop.permute.xlu1 %172 }
0x15f7   :  { %1097 = vrot.lane.b32.xlu0 %v1096_v36, %s1471_s24  ;;  %178 = vst.msk [vmem:[#allocation2 + $0x8] sm:$0x1] %vm176_vm4, %v173_v61  ;;  %v1104_v63 = vsel %vm155_vm3, %v1103_v10, %v1091_v32 }
0x15f8   :  { %v306_v0 = vpop.permute.xlu0 %305 }
0x15f9   :  { %311 = vst.msk [vmem:[#allocation2 + $0x1] sm:$0x1] %vm176_vm4, %v306_v0  ;;  %1105 = vrot.lane.b32.xlu1 %v1104_v63, %s1469_s1 }
0x15fa   :  { %v308_v53 = vpop.permute.xlu1 %307 }
0x15fb   :  { %312 = vst.msk [vmem:[#allocation2 + $0x9] sm:$0x1] %vm176_vm4, %v308_v53 }
0x15fc   :  { %v440_v55 = vpop.permute.xlu0 %439 }
0x15fd   :  { %445 = vst.msk [vmem:[#allocation2 + $0x2] sm:$0x1] %vm176_vm4, %v440_v55 }
0x15fe   :  { %v442_v39 = vpop.permute.xlu1 %441 }
0x15ff   :  { %446 = vst.msk [vmem:[#allocation2 + $0xa] sm:$0x1] %vm176_vm4, %v442_v39 }
0x1600   :  { %v574_v40 = vpop.permute.xlu0 %573 }
0x1601   :  { %579 = vst.msk [vmem:[#allocation2 + $0x3] sm:$0x1] %vm176_vm4, %v574_v40 }
0x1602   :  { %v576_v41 = vpop.permute.xlu1 %575 }
0x1603   :  { %580 = vst.msk [vmem:[#allocation2 + $0xb] sm:$0x1] %vm176_vm4, %v576_v41 }
0x1604   :  { %v708_v42 = vpop.permute.xlu0 %707 }
0x1605   :  { %713 = vst.msk [vmem:[#allocation2 + $0x4] sm:$0x1] %vm176_vm4, %v708_v42 }
0x1606   :  { %v710_v44 = vpop.permute.xlu1 %709 }
0x1607   :  { %714 = vst.msk [vmem:[#allocation2 + $0xc] sm:$0x1] %vm176_vm4, %v710_v44 }
0x1608   :  { %v842_v45 = vpop.permute.xlu0 %841 }
0x1609   :  { %847 = vst.msk [vmem:[#allocation2 + $0x5] sm:$0x1] %vm176_vm4, %v842_v45 }
0x160a   :  { %v844_v47 = vpop.permute.xlu1 %843 }
0x160b   :  { %848 = vst.msk [vmem:[#allocation2 + $0xd] sm:$0x1] %vm176_vm4, %v844_v47 }
0x160c   :  { %v976_v48 = vpop.permute.xlu0 %975 }
0x160d   :  { %981 = vst.msk [vmem:[#allocation2 + $0x6] sm:$0x1] %vm176_vm4, %v976_v48 }
0x160e   :  { %v978_v49 = vpop.permute.xlu1 %977 }
0x160f   :  { %982 = vst.msk [vmem:[#allocation2 + $0xe] sm:$0x1] %vm176_vm4, %v978_v49 }
0x1665   :  { %v1110_v50 = vpop.permute.xlu0 %1109 }
0x1666   :  { %1115 = vst.msk [vmem:[#allocation2 + $0x7] sm:$0x1] %vm176_vm4, %v1110_v50 }
0x1667   :  { %v1112_v51 = vpop.permute.xlu1 %1111 }
0x1668   :  { %1116 = vst.msk [vmem:[#allocation2 + $0xf] sm:$0x1] %vm176_vm4, %v1112_v51 }
0x1669   :  { %v1098_v52 = vpop.permute.xlu0 %1097 }
0x166a   :  { %1100 = vst.msk [vmem:[#allocation4] sm:$0x3] %vm22_vm0, %v1098_v52 }
0x166b   :  { %v1106_v54 = vpop.permute.xlu1 %1105 }
0x166c   :  { %1108 = vst.msk [vmem:[#allocation3] sm:$0x3] %vm22_vm0, %v1106_v54 }
0x166d   :  { %v1117_v56 = vld [vmem:[#allocation2] sm:$0xff] }
0x166f   :  { %v1118_v57 = vld [vmem:[#allocation2 + $0x8] sm:$0xff] }
0x1670   :  { %v1230_v58 = vpack.c.bf16 %v1118_v57, %v1117_v56 }
0x1672   :  { %1327 = vmatmul.mubr.msk.bf16.vlgmr.msra.gmra.mrb[16].mxu0 %vm45_vm2, %v1230_v58 }
0x1745   :  { %v1186_v60 = vpop.f32.mrb[16].mxu0 }
0x1746   :  { %v1187_v62 = vadd.f32 %v1225_v59, %v1186_v60  ;;  %v1328_v3 = vpop.f32.mrb[17].mxu0 }
0x1747   :  { %v1189_v4 = vpop.f32.mrb[18].mxu0 }
0x1748   :  { %1193 = vst [vmem:[%s1839_s4] sm:$0xff] %v1187_v62  ;;  %v1190_v5 = vadd.f32 %v1225_v59, %v1189_v4  ;;  %v1329_v6 = vpop.f32.mrb[19].mxu0 }
0x174a   :  { %1194 = vst [vmem:[%s1839_s4 + $0x8] sm:$0xff] %v1190_v5 }

// kernel: separator_forward.7
= control target key start
LH: loop header
LB: loop body
LE: loop exit
PB: predicated region body
PF: predicated region fallthrough
CT: control target
= control target key end

     0   :  { %v227_v0 = vmov 0   ;;  %v228_v2 = vmov 0.0   ;;  %v21_v4 = vlaneseq  ;;  %vm229_vm0 = vmmov 0   ;;  %s230_s25 = smov 112   ;;  %s291_s1 = inlined_call_operand.vmem [shape: s32[2,1], index: 1, kind: input, shape index: {}]   ;;  %s292_s2 = inlined_call_operand.vmem [shape: bf16[32,32], index: 2, kind: input, shape index: {}]   ;;  %s293_s0 = inlined_call_operand.vmem [shape: f32[2,8,32], index: 0, kind: input, shape index: {}]   ;;  %s294_s3 = inlined_call_operand.vmem [shape: f32[1,1,32], index: 3, kind: input, shape index: {}]   ;;  %s295_s4 = inlined_call_operand.vmem [shape: f32[2,8,32], index: 4, kind: output, shape index: {}]  }
   0x1   :  { %212 = vset.pattern.permute.xlu0 %v227_v0  ;;  %v25_v1 = vld [vmem:[%s291_s1] sm:$0x3]  ;;  %199 = vmatprep.subr.bf16.mxu0 %v228_v2  ;;  %v214_v5 = vld [vmem:[%s292_s2 + $0x8] sm:$0xff]   ;;  %vm78_vm2 = vcmask 261120   ;;  %vm169_vm3 = vcmask 130048   ;;  %vm182_vm4 = vcmask 261248  }
   0x2   :  { %27 = vperm.xlu0 %212, %v25_v1   ;;  %v213_v3 = vld [vmem:[%s292_s2] sm:$0xff]   ;;  %v33_v6 = vshrl.u32 %v21_v4, 7  ;;  %203 = vmatprep.mubr.msk.bf16.mxu0 %vm229_vm0, %v228_v2  ;;  %v22_v7 = vand.u32 127, %v21_v4  ;;  %v19_v14 = vld [vmem:[%s293_s0 + $0x8] sm:$0xff] }
   0x3   :  { %200 = vmatpush3.bf16.msra.mxu0 %v213_v3  ;;  %v18_v15 = vld [vmem:[%s293_s0] sm:$0xff]  ;;  %s231_s0 = smov 16  }
   0x4   :  { %201 = vmatprep.subr.bf16.mxu0 %v228_v2  ;;  %v41_v8 = vsub.s32 1, %v33_v6  ;;  %v34_v9 = vsub.s32 0, %v33_v6  ;;  %v190_v21 = vld [vmem:[%s294_s3] ss:$0 sm:$0xff] }
   0x7   :  { %202 = vmatpush3.bf16.msra.mxu0 %v214_v5 }
  0x81   :  { %v28_v10 = vpop.permute.xlu0 %27 }
  0x82   :  { %vm29_vm1 = vcmp.lt.s32.totalorder %v22_v7, %v28_v10 }
  0x83   :  { %v189_v11 = vsel %vm29_vm1, 1.0, %v228_v2 }
  0x84   :  { %v42_v12 = vrot.slane %v189_v11, %v41_v8  ;;  %v35_v13 = vrot.slane %v189_v11, %v34_v9 }
  0x86   :  { %44 = vbcast.lane.b32.xlu1 %v42_v12, 256  ;;  %37 = vbcast.lane.b32.xlu0 %v35_v13, 256 }
  0xf8   :  { %v45_v16 = vpop.permute.xlu1 %44  ;;  %v38_v17 = vpop.permute.xlu0 %37 }
  0xf9   :  { %v47_v18 = vmul.f32 %v45_v16, %v19_v14  ;;  %v46_v19 = vmul.f32 %v38_v17, %v18_v15 }
  0xfb   :  { %v195_v20 = vpack.c.bf16 %v47_v18, %v46_v19 }
  0xfd   :  { %204 = vmatmul.mubr.msk.bf16.vlgmr.msra.gmra.mrb[0].mxu0 %vm78_vm2, %v195_v20 }
 0x1d0   :  { %v116_v22 = vpop.f32.mrb[0].mxu0 }
 0x1d1   :  { %v117_v23 = vadd.f32 %v190_v21, %v116_v22  ;;  %v205_v24 = vpop.f32.mrb[1].mxu0 }
 0x1d2   :  { %v119_v25 = vpop.f32.mrb[2].mxu0 }
 0x1d3   :  { %v120_v26 = vadd.f32 %v190_v21, %v119_v25  ;;  %125 = vrot.lane.b32.xlu1 %v117_v23, %s230_s25  ;;  %v206_v27 = vpop.f32.mrb[3].mxu0 }
 0x1d5   :  { %127 = vrot.lane.b32.xlu0 %v120_v26, %s230_s25 }
 0x245   :  { %v126_v28 = vpop.permute.xlu1 %125 }
 0x246   :  { %v131_v29 = vmax.f32 %v117_v23, %v126_v28 }
 0x247   :  { %v128_v30 = vpop.permute.xlu0 %127 }
 0x248   :  { %v132_v31 = vmax.f32 %v120_v26, %v128_v30  ;;  %141 = vrot.lane.b32.xlu1 %v131_v29, %s231_s0  ;;  %v133_v40 = vsub.f32 %v117_v23, %v131_v29 }
 0x24a   :  { %143 = vrot.lane.b32.xlu0 %v132_v31, %s231_s0  ;;  %v134_v41 = vsub.f32 %v120_v26, %v132_v31  ;;  %v135_v42 = vmul.f32 1.442695, %v133_v40 }
 0x24c   :  { %v137_v43 = vmul.f32 1.442695, %v134_v41 }
 0x2ba   :  { %v142_v32 = vpop.permute.xlu1 %141 }
 0x2bb   :  { %v147_v33 = vsub.f32 %v117_v23, %v142_v32 }
 0x2bc   :  { %v144_v34 = vpop.permute.xlu0 %143 }
 0x2bd   :  { %v149_v35 = vmul.f32 1.442695, %v147_v33  ;;  %v148_v36 = vsub.f32 %v120_v26, %v144_v34 }
 0x2bf   :  { %215 = vpow2.f32 %v149_v35  ;;  %v151_v37 = vmul.f32 1.442695, %v148_v36 }
 0x2c1   :  { %217 = vpow2.f32 %v151_v37 }
 0x2c2   :  { %219 = vpow2.f32 %v135_v42 }
 0x2c3   :  { %221 = vpow2.f32 %v137_v43 }
 0x2c9   :  { %v216_v38 = vpop.eup %215 }
 0x2ca   :  { %155 = vrot.lane.b32.xlu1 %v216_v38, %s230_s25 }
 0x2cb   :  { %v218_v39 = vpop.eup %217 }
 0x2cc   :  { %157 = vrot.lane.b32.xlu0 %v218_v39, %s230_s25  ;;  %v220_v44 = vpop.eup %219 }
 0x2cd   :  { %v222_v47 = vpop.eup %221 }
 0x33c   :  { %v156_v45 = vpop.permute.xlu1 %155 }
 0x33d   :  { %v161_v46 = vadd.f32 %v220_v44, %v156_v45 }
 0x33e   :  { %v158_v48 = vpop.permute.xlu0 %157 }
 0x33f   :  { %223 = vrcp.f32 %v161_v46  ;;  %v162_v49 = vadd.f32 %v222_v47, %v158_v48 }
 0x341   :  { %225 = vrcp.f32 %v162_v49 }
 0x349   :  { %v224_v50 = vpop.eup %223 }
 0x34a   :  { %v167_v51 = vmul.f32 %v224_v50, %v220_v44  ;;  %174 = vrot.lane.b32.xlu1 %v224_v50, %s231_s0 }
 0x34b   :  { %v226_v52 = vpop.eup %225 }
 0x34c   :  { %v168_v53 = vmul.f32 %v226_v52, %v222_v47  ;;  %176 = vrot.lane.b32.xlu0 %v226_v52, %s231_s0  ;;  %170 = vst.msk [vmem:[%s295_s4] sm:$0xff] %vm169_vm3, %v167_v51 }
 0x34e   :  { %171 = vst.msk [vmem:[%s295_s4 + $0x8] sm:$0xff] %vm169_vm3, %v168_v53 }
 0x3bc   :  { %v175_v54 = vpop.permute.xlu1 %174 }
 0x3bd   :  { %v180_v55 = vmul.f32 %v216_v38, %v175_v54 }
 0x3be   :  { %v177_v56 = vpop.permute.xlu0 %176 }
 0x3bf   :  { %183 = vst.msk [vmem:[%s295_s4] sm:$0xff] %vm182_vm4, %v180_v55  ;;  %v181_v57 = vmul.f32 %v218_v39, %v177_v56 }
 0x3c1   :  { %184 = vst.msk [vmem:[%s295_s4 + $0x8] sm:$0xff] %vm182_vm4, %v181_v57 }

// kernel: separator_forward.6
= control target key start
LH: loop header
LB: loop body
LE: loop exit
PB: predicated region body
PF: predicated region fallthrough
CT: control target
= control target key end

     0   :  { %vm16_vm0 = vcmask 254976   ;;  %v1364_v0 = vmov 0.0   ;;  %vm1365_vm1 = vmmov 0   ;;  %vm39_vm2 = vcmask 261120   ;;  %s1367_s17 = smov 64   ;;  %s1368_s18 = smov 96   ;;  %s1750_s1 = inlined_call_operand.vmem [shape: bf16[32,128], index: 1, kind: input, shape index: {}]   ;;  %s1751_s0 = inlined_call_operand.vmem [shape: f32[2,8,128], index: 0, kind: input, shape index: {}]   ;;  %s1752_s2 = inlined_call_operand.vmem [shape: f32[2,8,32], index: 2, kind: output, shape index: {}]  }
   0x1   :  { %1165 = vmatprep.subr.bf16.mxu0 %v1364_v0  ;;  %v1388_v1 = vld [vmem:[%s1750_s1] sm:$0xff]   ;;  %1169 = vmatprep.mubr.msk.bf16.mxu0 %vm1365_vm1, %v1364_v0  ;;  %17 = vst.msk [vmem:[#allocation2] sm:$0x3] %vm16_vm0, %v1364_v0  ;;  %18 = vst.msk [vmem:[#allocation3] sm:$0x3] %vm16_vm0, %v1364_v0  ;;  %v1403_v2 = vld [vmem:[%s1750_s1 + $0x8] sm:$0xff]  }
   0x2   :  { %1173 = vmatprep.subr.bf16.mxu1 %v1364_v0  ;;  %1177 = vmatprep.mubr.msk.bf16.mxu1 %vm1365_vm1, %v1364_v0  ;;  %s1366_s1 = smov 32   ;;  %v24_v7 = vld [vmem:[%s1751_s0 + $0x8] sm:$0x1]  ;;  %v23_v12 = vld [vmem:[%s1751_s0] sm:$0x1]  ;;  %vm149_vm3 = vcmask 1041409  }
   0x3   :  { %1166 = vmatpush3.bf16.msra.mxu0 %v1388_v1  ;;  %1174 = vmatpush3.bf16.msra.mxu1 %v1388_v1  ;;  %v173_v52 = vld [vmem:[%s1751_s0 + $0x1] sm:$0x1]  ;;  %v174_v53 = vld [vmem:[%s1751_s0 + $0x9] sm:$0x1]  ;;  %vm170_vm4 = vcmask 253952  }
   0x4   :  { %1167 = vmatprep.subr.bf16.mxu0 %v1364_v0  ;;  %1175 = vmatprep.subr.bf16.mxu1 %v1364_v0 }
   0x7   :  { %1168 = vmatpush3.bf16.msra.mxu0 %v1403_v2  ;;  %1176 = vmatpush3.bf16.msra.mxu1 %v1403_v2 }
   0x8   :  { %v25_v3 = vld [vmem:[#allocation2] sm:$0x3]  ;;  %v103_v4 = vld [vmem:[#allocation3] sm:$0x3]  ;;  %1181 = vmatprep.subr.bf16.mxu0 %v1364_v0  ;;  %1189 = vmatprep.subr.bf16.mxu1 %v1364_v0 }
   0x9   :  { %v26_v5 = vpack.c.bf16 %v25_v3, %v25_v3  ;;  %v105_v6 = vrot.slane %v103_v4, 1 }
   0xb   :  { %1170 = vmatmul.mubr.msk.bf16.vlgmr.msra.gmra.mrb[0].mxu0 %vm39_vm2, %v26_v5  ;;  %108 = vrot.lane.b32.xlu1 %v105_v6, %s1366_s1 }
   0xc   :  { %1182 = vmatpush3.bf16.msra.mxu0 %v1388_v1  ;;  %1185 = vmatprep.mubr.msk.bf16.mxu0 %vm1365_vm1, %v1364_v0 }
   0xd   :  { %1183 = vmatprep.subr.bf16.mxu0 %v1364_v0 }
   0xf   :  { %106 = vrot.lane.b32.xlu1 %v103_v4, %s1366_s1 }
  0x10   :  { %1184 = vmatpush3.bf16.msra.mxu0 %v1403_v2 }
  0x11   :  { %1197 = vmatprep.subr.bf16.mxu0 %v1364_v0 }
  0x7d   :  { %v109_v30 = vpop.permute.xlu1 %108 }
  0x81   :  { %v107_v32 = vpop.permute.xlu1 %106 }
  0xde   :  { %v77_v8 = vpop.f32.mrb[0].mxu0 }
  0xdf   :  { %v84_v9 = vrot.slane %v77_v8, 1  ;;  %v1171_v10 = vpop.f32.mrb[1].mxu0  ;;  %v87_v15 = vadd.f32 %v77_v8, %v23_v12 }
  0xe0   :  { %v80_v11 = vpop.f32.mrb[2].mxu0 }
  0xe1   :  { %v88_v13 = vadd.f32 %v84_v9, %v24_v7  ;;  %v1172_v14 = vpop.f32.mrb[3].mxu0  ;;  %v1118_v19 = vmul.f32 -1.442695, %v87_v15 }
  0xe3   :  { %1236 = vtanh.f32 %v88_v13  ;;  %v1119_v18 = vmul.f32 -1.442695, %v88_v13 }
  0xe4   :  { %1238 = vtanh.f32 %v87_v15 }
  0xe5   :  { %1240 = vpow2.f32 %v1119_v18 }
  0xe6   :  { %1242 = vpow2.f32 %v1118_v19 }
  0xed   :  { %v1237_v16 = vpop.eup %1236 }
  0xee   :  { %118 = vrot.lane.b32.xlu0 %v1237_v16, %s1367_s17  ;;  %v1239_v17 = vpop.eup %1238 }
  0xef   :  { %v1241_v20 = vpop.eup %1240 }
  0xf0   :  { %v96_v21 = vadd.f32 1.0, %v1241_v20  ;;  %v1243_v22 = vpop.eup %1242 }
  0xf1   :  { %v95_v23 = vadd.f32 1.0, %v1243_v22 }
  0xf2   :  { %116 = vrot.lane.b32.xlu0 %v1239_v17, %s1367_s17  ;;  %1244 = vrcp.f32 %v96_v21 }
  0xf3   :  { %1246 = vrcp.f32 %v95_v23 }
  0xfc   :  { %v1245_v24 = vpop.eup %1244 }
  0xfd   :  { %v1247_v27 = vpop.eup %1246  ;;  %v113_v31 = vmul.f32 %v1245_v24, %v109_v30 }
  0xfe   :  { %v112_v35 = vmul.f32 %v1247_v27, %v107_v32 }
 0x160   :  { %v119_v25 = vpop.permute.xlu0 %118 }
 0x161   :  { %v123_v26 = vmul.f32 %v1245_v24, %v119_v25 }
 0x163   :  { %128 = vrot.lane.b32.xlu0 %v123_v26, %s1366_s1 }
 0x164   :  { %v117_v28 = vpop.permute.xlu0 %116 }
 0x165   :  { %v122_v29 = vmul.f32 %v1247_v27, %v117_v28 }
 0x167   :  { %126 = vrot.lane.b32.xlu1 %v122_v29, %s1366_s1 }
 0x1d5   :  { %v129_v33 = vpop.permute.xlu0 %128 }
 0x1d6   :  { %v133_v34 = vadd.f32 %v129_v33, %v113_v31 }
 0x1d8   :  { %1248 = vtanh.f32 %v133_v34  ;;  %v148_v40 = vrot.slane %v133_v34, 7 }
 0x1d9   :  { %v127_v36 = vpop.permute.xlu1 %126 }
 0x1da   :  { %v132_v37 = vadd.f32 %v127_v36, %v112_v35 }
 0x1dc   :  { %1250 = vtanh.f32 %v132_v37  ;;  %v150_v41 = vsel %vm149_vm3, %v148_v40, %v132_v37 }
 0x1e2   :  { %v1249_v38 = vpop.eup %1248 }
 0x1e3   :  { %140 = vrot.lane.b32.xlu0 %v1249_v38, %s1367_s17  ;;  %v307_v38 = vld [vmem:[%s1751_s0 + $0x2] sm:$0x1] }
 0x1e6   :  { %v1251_v39 = vpop.eup %1250 }
 0x1e7   :  { %138 = vrot.lane.b32.xlu1 %v1251_v39, %s1367_s17  ;;  %v308_v39 = vld [vmem:[%s1751_s0 + $0xa] sm:$0x1] }
 0x1eb   :  { %151 = vrot.lane.b32.xlu1 %v150_v41, %s1368_s18 }
 0x255   :  { %v141_v42 = vpop.permute.xlu0 %140 }
 0x256   :  { %v1435_v43 = vmul.f32 %v1245_v24, %v141_v42 }
 0x258   :  { %v158_v45 = vrot.slane %v1435_v43, 7 }
 0x259   :  { %v139_v44 = vpop.permute.xlu1 %138 }
 0x25a   :  { %v1438_v46 = vmul.f32 %v1247_v27, %v139_v44 }
 0x25c   :  { %v159_v47 = vsel %vm149_vm3, %v158_v45, %v1438_v46 }
 0x25d   :  { %160 = vrot.lane.b32.xlu0 %v159_v47, %s1366_s1  ;;  %v152_v48 = vpop.permute.xlu1 %151 }
 0x25e   :  { %155 = vst.msk [vmem:[#allocation3] sm:$0x3] %vm16_vm0, %v152_v48 }
 0x265   :  { %v240_v63 = vld [vmem:[#allocation3] sm:$0x3] }
 0x266   :  { %v242_v3 = vrot.slane %v240_v63, 1 }
 0x2cf   :  { %v161_v49 = vpop.permute.xlu0 %160 }
 0x2d0   :  { %163 = vst.msk [vmem:[#allocation2] sm:$0x3] %vm16_vm0, %v161_v49 }
 0x2d7   :  { %v175_v50 = vld [vmem:[#allocation2] sm:$0x3] }
 0x2d8   :  { %v176_v51 = vpack.c.bf16 %v175_v50, %v175_v50 }
 0x2da   :  { %1178 = vmatmul.mubr.msk.bf16.vlgmr.msra.gmra.mrb[0].mxu1 %vm39_vm2, %v176_v51 }
 0x2db   :  { %1190 = vmatpush3.bf16.msra.mxu1 %v1388_v1  ;;  %1193 = vmatprep.mubr.msk.bf16.mxu1 %vm1365_vm1, %v1364_v0 }
 0x2dc   :  { %1191 = vmatprep.subr.bf16.mxu1 %v1364_v0 }
 0x2df   :  { %1192 = vmatpush3.bf16.msra.mxu1 %v1403_v2 }
 0x2e0   :  { %1205 = vmatprep.subr.bf16.mxu1 %v1364_v0 }
 0x3ad   :  { %v214_v54 = vpop.f32.mrb[0].mxu1 }
 0x3ae   :  { %v221_v55 = vrot.slane %v214_v54, 1  ;;  %v224_v56 = vadd.f32 %v214_v54, %v173_v52  ;;  %v1179_v57 = vpop.f32.mrb[1].mxu1 }
 0x3af   :  { %v217_v58 = vpop.f32.mrb[2].mxu1 }
 0x3b0   :  { %v225_v59 = vadd.f32 %v221_v55, %v174_v53  ;;  %1252 = vtanh.f32 %v224_v56  ;;  %v1180_v60 = vpop.f32.mrb[3].mxu1  ;;  %v1121_v4 = vmul.f32 -1.442695, %v224_v56 }
 0x3b2   :  { %1254 = vtanh.f32 %v225_v59  ;;  %v1122_v5 = vmul.f32 -1.442695, %v225_v59 }
 0x3b3   :  { %1256 = vpow2.f32 %v1121_v4 }
 0x3b4   :  { %1258 = vpow2.f32 %v1122_v5 }
 0x3ba   :  { %v1253_v61 = vpop.eup %1252 }
 0x3bb   :  { %253 = vrot.lane.b32.xlu1 %v1253_v61, %s1367_s17 }
 0x3bc   :  { %v1255_v62 = vpop.eup %1254 }
 0x3bd   :  { %255 = vrot.lane.b32.xlu0 %v1255_v62, %s1367_s17  ;;  %v1257_v6 = vpop.eup %1256 }
 0x3be   :  { %v1259_v7 = vpop.eup %1258  ;;  %v232_v8 = vadd.f32 1.0, %v1257_v6 }
 0x3bf   :  { %243 = vrot.lane.b32.xlu1 %v240_v63, %s1366_s1  ;;  %v233_v9 = vadd.f32 1.0, %v1259_v7 }
 0x3c0   :  { %1260 = vrcp.f32 %v232_v8 }
 0x3c1   :  { %245 = vrot.lane.b32.xlu0 %v242_v3, %s1366_s1  ;;  %1262 = vrcp.f32 %v233_v9 }
 0x3ca   :  { %v1261_v10 = vpop.eup %1260 }
 0x3cb   :  { %v1263_v13 = vpop.eup %1262 }
 0x42d   :  { %v254_v11 = vpop.permute.xlu1 %253 }
 0x42e   :  { %v259_v12 = vmul.f32 %v1261_v10, %v254_v11 }
 0x42f   :  { %v256_v14 = vpop.permute.xlu0 %255 }
 0x430   :  { %263 = vrot.lane.b32.xlu1 %v259_v12, %s1366_s1  ;;  %v260_v15 = vmul.f32 %v1263_v13, %v256_v14 }
 0x431   :  { %v244_v16 = vpop.permute.xlu1 %243 }
 0x432   :  { %265 = vrot.lane.b32.xlu0 %v260_v15, %s1366_s1  ;;  %v249_v17 = vmul.f32 %v1261_v10, %v244_v16 }
 0x433   :  { %v246_v18 = vpop.permute.xlu0 %245 }
 0x434   :  { %v250_v21 = vmul.f32 %v1263_v13, %v246_v18 }
 0x4a2   :  { %v264_v19 = vpop.permute.xlu1 %263 }
 0x4a3   :  { %v269_v20 = vadd.f32 %v264_v19, %v249_v17 }
 0x4a4   :  { %v266_v22 = vpop.permute.xlu0 %265 }
 0x4a5   :  { %1264 = vtanh.f32 %v269_v20  ;;  %v270_v23 = vadd.f32 %v266_v22, %v250_v21 }
 0x4a7   :  { %1266 = vtanh.f32 %v270_v23  ;;  %v285_v25 = vrot.slane %v270_v23, 7 }
 0x4a9   :  { %v286_v27 = vsel %vm149_vm3, %v285_v25, %v269_v20 }
 0x4af   :  { %v1265_v24 = vpop.eup %1264 }
 0x4b0   :  { %275 = vrot.lane.b32.xlu1 %v1265_v24, %s1367_s17 }
 0x4b1   :  { %v1267_v26 = vpop.eup %1266 }
 0x4b2   :  { %277 = vrot.lane.b32.xlu0 %v1267_v26, %s1367_s17  ;;  %v441_v26 = vld [vmem:[%s1751_s0 + $0x3] sm:$0x1] }
 0x4b4   :  { %287 = vrot.lane.b32.xlu1 %v286_v27, %s1368_s18  ;;  %v442_v27 = vld [vmem:[%s1751_s0 + $0xb] sm:$0x1] }
 0x522   :  { %v276_v28 = vpop.permute.xlu1 %275 }
 0x523   :  { %v1471_v32 = vmul.f32 %v1261_v10, %v276_v28 }
 0x524   :  { %v278_v29 = vpop.permute.xlu0 %277 }
 0x525   :  { %v1468_v30 = vmul.f32 %v1263_v13, %v278_v29 }
 0x526   :  { %v288_v31 = vpop.permute.xlu1 %287 }
 0x527   :  { %290 = vst.msk [vmem:[#allocation3] sm:$0x3] %vm16_vm0, %v288_v31  ;;  %v293_v33 = vrot.slane %v1468_v30, 7 }
 0x529   :  { %v294_v34 = vsel %vm149_vm3, %v293_v33, %v1471_v32 }
 0x52a   :  { %295 = vrot.lane.b32.xlu0 %v294_v34, %s1366_s1 }
 0x52e   :  { %v374_v51 = vld [vmem:[#allocation3] sm:$0x3] }
 0x52f   :  { %v376_v52 = vrot.slane %v374_v51, 1 }
 0x59c   :  { %v296_v35 = vpop.permute.xlu0 %295 }
 0x59d   :  { %298 = vst.msk [vmem:[#allocation2] sm:$0x3] %vm16_vm0, %v296_v35 }
 0x5a4   :  { %v309_v36 = vld [vmem:[#allocation2] sm:$0x3] }
 0x5a5   :  { %v310_v37 = vpack.c.bf16 %v309_v36, %v309_v36 }
 0x5a7   :  { %1186 = vmatmul.mubr.msk.bf16.vlgmr.msra.gmra.mrb[4].mxu0 %vm39_vm2, %v310_v37 }
 0x5a8   :  { %1198 = vmatpush3.bf16.msra.mxu0 %v1388_v1  ;;  %1201 = vmatprep.mubr.msk.bf16.mxu0 %vm1365_vm1, %v1364_v0 }
 0x5a9   :  { %1199 = vmatprep.subr.bf16.mxu0 %v1364_v0 }
 0x5ac   :  { %1200 = vmatpush3.bf16.msra.mxu0 %v1403_v2 }
 0x5ad   :  { %1213 = vmatprep.subr.bf16.mxu0 %v1364_v0 }
 0x67a   :  { %v348_v40 = vpop.f32.mrb[4].mxu0 }
 0x67b   :  { %v355_v41 = vrot.slane %v348_v40, 1  ;;  %v358_v42 = vadd.f32 %v348_v40, %v307_v38  ;;  %v1187_v44 = vpop.f32.mrb[5].mxu0 }
 0x67c   :  { %v351_v45 = vpop.f32.mrb[6].mxu0 }
 0x67d   :  { %v359_v47 = vadd.f32 %v355_v41, %v308_v39  ;;  %1268 = vtanh.f32 %v358_v42  ;;  %v1188_v48 = vpop.f32.mrb[7].mxu0  ;;  %v1124_v53 = vmul.f32 -1.442695, %v358_v42 }
 0x67f   :  { %1270 = vtanh.f32 %v359_v47  ;;  %v1125_v54 = vmul.f32 -1.442695, %v359_v47 }
 0x680   :  { %1272 = vpow2.f32 %v1124_v53 }
 0x681   :  { %1274 = vpow2.f32 %v1125_v54 }
 0x687   :  { %v1269_v49 = vpop.eup %1268 }
 0x688   :  { %387 = vrot.lane.b32.xlu1 %v1269_v49, %s1367_s17 }
 0x689   :  { %v1271_v50 = vpop.eup %1270 }
 0x68a   :  { %389 = vrot.lane.b32.xlu0 %v1271_v50, %s1367_s17  ;;  %v1273_v55 = vpop.eup %1272 }
 0x68b   :  { %v1275_v56 = vpop.eup %1274  ;;  %v366_v57 = vadd.f32 1.0, %v1273_v55 }
 0x68c   :  { %377 = vrot.lane.b32.xlu1 %v374_v51, %s1366_s1  ;;  %v367_v58 = vadd.f32 1.0, %v1275_v56 }
 0x68d   :  { %1276 = vrcp.f32 %v366_v57 }
 0x68e   :  { %379 = vrot.lane.b32.xlu0 %v376_v52, %s1366_s1  ;;  %1278 = vrcp.f32 %v367_v58 }
 0x697   :  { %v1277_v59 = vpop.eup %1276 }
 0x698   :  { %v1279_v62 = vpop.eup %1278 }
 0x6fa   :  { %v388_v60 = vpop.permute.xlu1 %387 }
 0x6fb   :  { %v393_v61 = vmul.f32 %v1277_v59, %v388_v60 }
 0x6fc   :  { %v390_v63 = vpop.permute.xlu0 %389 }
 0x6fd   :  { %397 = vrot.lane.b32.xlu1 %v393_v61, %s1366_s1  ;;  %v394_v3 = vmul.f32 %v1279_v62, %v390_v63 }
 0x6fe   :  { %v378_v4 = vpop.permute.xlu1 %377 }
 0x6ff   :  { %399 = vrot.lane.b32.xlu0 %v394_v3, %s1366_s1  ;;  %v383_v5 = vmul.f32 %v1277_v59, %v378_v4 }
 0x700   :  { %v380_v6 = vpop.permute.xlu0 %379 }
 0x701   :  { %v384_v9 = vmul.f32 %v1279_v62, %v380_v6 }
 0x76f   :  { %v398_v7 = vpop.permute.xlu1 %397 }
 0x770   :  { %v403_v8 = vadd.f32 %v398_v7, %v383_v5 }
 0x771   :  { %v400_v10 = vpop.permute.xlu0 %399 }
 0x772   :  { %1280 = vtanh.f32 %v403_v8  ;;  %v404_v11 = vadd.f32 %v400_v10, %v384_v9 }
 0x774   :  { %1282 = vtanh.f32 %v404_v11  ;;  %v419_v13 = vrot.slane %v404_v11, 7 }
 0x776   :  { %v420_v15 = vsel %vm149_vm3, %v419_v13, %v403_v8 }
 0x77c   :  { %v1281_v12 = vpop.eup %1280 }
 0x77d   :  { %409 = vrot.lane.b32.xlu1 %v1281_v12, %s1367_s17 }
 0x77e   :  { %v1283_v14 = vpop.eup %1282 }
 0x77f   :  { %411 = vrot.lane.b32.xlu0 %v1283_v14, %s1367_s17 }
 0x781   :  { %421 = vrot.lane.b32.xlu1 %v420_v15, %s1368_s18 }
 0x7ef   :  { %v410_v16 = vpop.permute.xlu1 %409 }
 0x7f0   :  { %v1504_v20 = vmul.f32 %v1277_v59, %v410_v16  ;;  %v575_v16 = vld [vmem:[%s1751_s0 + $0x4] sm:$0x1] }
 0x7f1   :  { %v412_v17 = vpop.permute.xlu0 %411 }
 0x7f2   :  { %v1501_v18 = vmul.f32 %v1279_v62, %v412_v17  ;;  %v576_v17 = vld [vmem:[%s1751_s0 + $0xc] sm:$0x1] }
 0x7f3   :  { %v422_v19 = vpop.permute.xlu1 %421 }
 0x7f4   :  { %424 = vst.msk [vmem:[#allocation3] sm:$0x3] %vm16_vm0, %v422_v19  ;;  %v427_v21 = vrot.slane %v1501_v18, 7 }
 0x7f6   :  { %v428_v22 = vsel %vm149_vm3, %v427_v21, %v1504_v20 }
 0x7f7   :  { %429 = vrot.lane.b32.xlu0 %v428_v22, %s1366_s1 }
 0x7fb   :  { %v508_v39 = vld [vmem:[#allocation3] sm:$0x3] }
 0x7fc   :  { %v510_v40 = vrot.slane %v508_v39, 1 }
 0x869   :  { %v430_v23 = vpop.permute.xlu0 %429 }
 0x86a   :  { %432 = vst.msk [vmem:[#allocation2] sm:$0x3] %vm16_vm0, %v430_v23 }
 0x871   :  { %v443_v24 = vld [vmem:[#allocation2] sm:$0x3] }
 0x872   :  { %v444_v25 = vpack.c.bf16 %v443_v24, %v443_v24 }
 0x874   :  { %1194 = vmatmul.mubr.msk.bf16.vlgmr.msra.gmra.mrb[4].mxu1 %vm39_vm2, %v444_v25 }
 0x875   :  { %1206 = vmatpush3.bf16.msra.mxu1 %v1388_v1  ;;  %1209 = vmatprep.mubr.msk.bf16.mxu1 %vm1365_vm1, %v1364_v0 }
 0x876   :  { %1207 = vmatprep.subr.bf16.mxu1 %v1364_v0 }
 0x879   :  { %1208 = vmatpush3.bf16.msra.mxu1 %v1403_v2 }
 0x87a   :  { %1221 = vmatprep.subr.bf16.mxu1 %v1364_v0 }
 0x947   :  { %v482_v28 = vpop.f32.mrb[4].mxu1 }
 0x948   :  { %v489_v29 = vrot.slane %v482_v28, 1  ;;  %v492_v31 = vadd.f32 %v482_v28, %v441_v26  ;;  %v1195_v33 = vpop.f32.mrb[5].mxu1 }
 0x949   :  { %v485_v34 = vpop.f32.mrb[6].mxu1 }
 0x94a   :  { %v493_v35 = vadd.f32 %v489_v29, %v442_v27  ;;  %1284 = vtanh.f32 %v492_v31  ;;  %v1196_v36 = vpop.f32.mrb[7].mxu1  ;;  %v1127_v41 = vmul.f32 -1.442695, %v492_v31 }
 0x94c   :  { %1286 = vtanh.f32 %v493_v35  ;;  %v1128_v42 = vmul.f32 -1.442695, %v493_v35 }
 0x94d   :  { %1288 = vpow2.f32 %v1127_v41 }
 0x94e   :  { %1290 = vpow2.f32 %v1128_v42 }
 0x954   :  { %v1285_v37 = vpop.eup %1284 }
 0x955   :  { %521 = vrot.lane.b32.xlu1 %v1285_v37, %s1367_s17 }
 0x956   :  { %v1287_v38 = vpop.eup %1286 }
 0x957   :  { %523 = vrot.lane.b32.xlu0 %v1287_v38, %s1367_s17  ;;  %v1289_v44 = vpop.eup %1288 }
 0x958   :  { %v1291_v45 = vpop.eup %1290  ;;  %v500_v47 = vadd.f32 1.0, %v1289_v44 }
 0x959   :  { %511 = vrot.lane.b32.xlu1 %v508_v39, %s1366_s1  ;;  %v501_v48 = vadd.f32 1.0, %v1291_v45 }
 0x95a   :  { %1292 = vrcp.f32 %v500_v47 }
 0x95b   :  { %513 = vrot.lane.b32.xlu0 %v510_v40, %s1366_s1  ;;  %1294 = vrcp.f32 %v501_v48 }
 0x964   :  { %v1293_v49 = vpop.eup %1292 }
 0x965   :  { %v1295_v52 = vpop.eup %1294 }
 0x9c7   :  { %v522_v50 = vpop.permute.xlu1 %521 }
 0x9c8   :  { %v527_v51 = vmul.f32 %v1293_v49, %v522_v50 }
 0x9c9   :  { %v524_v53 = vpop.permute.xlu0 %523 }
 0x9ca   :  { %531 = vrot.lane.b32.xlu1 %v527_v51, %s1366_s1  ;;  %v528_v54 = vmul.f32 %v1295_v52, %v524_v53 }
 0x9cb   :  { %v512_v55 = vpop.permute.xlu1 %511 }
 0x9cc   :  { %533 = vrot.lane.b32.xlu0 %v528_v54, %s1366_s1  ;;  %v517_v56 = vmul.f32 %v1293_v49, %v512_v55 }
 0x9cd   :  { %v514_v57 = vpop.permute.xlu0 %513 }
 0x9ce   :  { %v518_v60 = vmul.f32 %v1295_v52, %v514_v57 }
 0xa3c   :  { %v532_v58 = vpop.permute.xlu1 %531 }
 0xa3d   :  { %v537_v59 = vadd.f32 %v532_v58, %v517_v56 }
 0xa3e   :  { %v534_v61 = vpop.permute.xlu0 %533 }
 0xa3f   :  { %1296 = vtanh.f32 %v537_v59  ;;  %v538_v62 = vadd.f32 %v534_v61, %v518_v60 }
 0xa41   :  { %1298 = vtanh.f32 %v538_v62  ;;  %v553_v3 = vrot.slane %v538_v62, 7 }
 0xa43   :  { %v554_v5 = vsel %vm149_vm3, %v553_v3, %v537_v59 }
 0xa49   :  { %v1297_v63 = vpop.eup %1296 }
 0xa4a   :  { %543 = vrot.lane.b32.xlu1 %v1297_v63, %s1367_s17 }
 0xa4b   :  { %v1299_v4 = vpop.eup %1298 }
 0xa4c   :  { %545 = vrot.lane.b32.xlu0 %v1299_v4, %s1367_s17 }
 0xa4e   :  { %555 = vrot.lane.b32.xlu1 %v554_v5, %s1368_s18 }
 0xabc   :  { %v544_v6 = vpop.permute.xlu1 %543 }
 0xabd   :  { %v1537_v10 = vmul.f32 %v1293_v49, %v544_v6 }
 0xabe   :  { %v546_v7 = vpop.permute.xlu0 %545 }
 0xabf   :  { %v1534_v8 = vmul.f32 %v1295_v52, %v546_v7 }
 0xac0   :  { %v556_v9 = vpop.permute.xlu1 %555 }
 0xac1   :  { %558 = vst.msk [vmem:[#allocation3] sm:$0x3] %vm16_vm0, %v556_v9  ;;  %v561_v11 = vrot.slane %v1534_v8, 7  ;;  %v709_v9 = vld [vmem:[%s1751_s0 + $0x5] sm:$0x1] }
 0xac3   :  { %v562_v12 = vsel %vm149_vm3, %v561_v11, %v1537_v10  ;;  %v710_v11 = vld [vmem:[%s1751_s0 + $0xd] sm:$0x1] }
 0xac4   :  { %563 = vrot.lane.b32.xlu0 %v562_v12, %s1366_s1 }
 0xac8   :  { %v642_v29 = vld [vmem:[#allocation3] sm:$0x3] }
 0xac9   :  { %v644_v31 = vrot.slane %v642_v29, 1 }
 0xb36   :  { %v564_v13 = vpop.permute.xlu0 %563 }
 0xb37   :  { %566 = vst.msk [vmem:[#allocation2] sm:$0x3] %vm16_vm0, %v564_v13 }
 0xb3e   :  { %v577_v14 = vld [vmem:[#allocation2] sm:$0x3] }
 0xb3f   :  { %v578_v15 = vpack.c.bf16 %v577_v14, %v577_v14 }
 0xb41   :  { %1202 = vmatmul.mubr.msk.bf16.vlgmr.msra.gmra.mrb[8].mxu0 %vm39_vm2, %v578_v15 }
 0xb42   :  { %1214 = vmatpush3.bf16.msra.mxu0 %v1388_v1  ;;  %1217 = vmatprep.mubr.msk.bf16.mxu0 %vm1365_vm1, %v1364_v0 }
 0xb43   :  { %1215 = vmatprep.subr.bf16.mxu0 %v1364_v0 }
 0xb46   :  { %1216 = vmatpush3.bf16.msra.mxu0 %v1403_v2 }
 0xc14   :  { %v616_v19 = vpop.f32.mrb[8].mxu0 }
 0xc15   :  { %v623_v21 = vrot.slane %v616_v19, 1  ;;  %v626_v22 = vadd.f32 %v616_v19, %v575_v16  ;;  %v1203_v23 = vpop.f32.mrb[9].mxu0 }
 0xc16   :  { %v619_v24 = vpop.f32.mrb[10].mxu0 }
 0xc17   :  { %v627_v25 = vadd.f32 %v623_v21, %v576_v17  ;;  %1300 = vtanh.f32 %v626_v22  ;;  %v1204_v26 = vpop.f32.mrb[11].mxu0  ;;  %v1130_v33 = vmul.f32 -1.442695, %v626_v22 }
 0xc19   :  { %1302 = vtanh.f32 %v627_v25  ;;  %v1131_v34 = vmul.f32 -1.442695, %v627_v25 }
 0xc1a   :  { %1304 = vpow2.f32 %v1130_v33 }
 0xc1b   :  { %1306 = vpow2.f32 %v1131_v34 }
 0xc21   :  { %v1301_v27 = vpop.eup %1300 }
 0xc22   :  { %655 = vrot.lane.b32.xlu1 %v1301_v27, %s1367_s17 }
 0xc23   :  { %v1303_v28 = vpop.eup %1302 }
 0xc24   :  { %657 = vrot.lane.b32.xlu0 %v1303_v28, %s1367_s17  ;;  %v1305_v35 = vpop.eup %1304 }
 0xc25   :  { %v1307_v36 = vpop.eup %1306  ;;  %v634_v37 = vadd.f32 1.0, %v1305_v35 }
 0xc26   :  { %645 = vrot.lane.b32.xlu1 %v642_v29, %s1366_s1  ;;  %v635_v38 = vadd.f32 1.0, %v1307_v36 }
 0xc27   :  { %1308 = vrcp.f32 %v634_v37 }
 0xc28   :  { %647 = vrot.lane.b32.xlu0 %v644_v31, %s1366_s1  ;;  %1310 = vrcp.f32 %v635_v38 }
 0xc31   :  { %v1309_v39 = vpop.eup %1308 }
 0xc32   :  { %v1311_v42 = vpop.eup %1310 }
 0xc94   :  { %v656_v40 = vpop.permute.xlu1 %655 }
 0xc95   :  { %v661_v41 = vmul.f32 %v1309_v39, %v656_v40 }
 0xc96   :  { %v658_v44 = vpop.permute.xlu0 %657 }
 0xc97   :  { %665 = vrot.lane.b32.xlu1 %v661_v41, %s1366_s1  ;;  %v662_v45 = vmul.f32 %v1311_v42, %v658_v44 }
 0xc98   :  { %v646_v47 = vpop.permute.xlu1 %645 }
 0xc99   :  { %667 = vrot.lane.b32.xlu0 %v662_v45, %s1366_s1  ;;  %v651_v48 = vmul.f32 %v1309_v39, %v646_v47 }
 0xc9a   :  { %v648_v49 = vpop.permute.xlu0 %647 }
 0xc9b   :  { %v652_v52 = vmul.f32 %v1311_v42, %v648_v49 }
 0xd09   :  { %v666_v50 = vpop.permute.xlu1 %665 }
 0xd0a   :  { %v671_v51 = vadd.f32 %v666_v50, %v651_v48 }
 0xd0b   :  { %v668_v53 = vpop.permute.xlu0 %667 }
 0xd0c   :  { %1312 = vtanh.f32 %v671_v51  ;;  %v672_v54 = vadd.f32 %v668_v53, %v652_v52 }
 0xd0e   :  { %1314 = vtanh.f32 %v672_v54  ;;  %v687_v56 = vrot.slane %v672_v54, 7 }
 0xd10   :  { %v688_v58 = vsel %vm149_vm3, %v687_v56, %v671_v51 }
 0xd16   :  { %v1313_v55 = vpop.eup %1312 }
 0xd17   :  { %677 = vrot.lane.b32.xlu1 %v1313_v55, %s1367_s17 }
 0xd18   :  { %v1315_v57 = vpop.eup %1314 }
 0xd19   :  { %679 = vrot.lane.b32.xlu0 %v1315_v57, %s1367_s17 }
 0xd1b   :  { %689 = vrot.lane.b32.xlu1 %v688_v58, %s1368_s18 }
 0xd89   :  { %v678_v59 = vpop.permute.xlu1 %677 }
 0xd8a   :  { %v1569_v63 = vmul.f32 %v1309_v39, %v678_v59 }
 0xd8b   :  { %v680_v60 = vpop.permute.xlu0 %679 }
 0xd8c   :  { %v1566_v61 = vmul.f32 %v1311_v42, %v680_v60  ;;  %v843_v60 = vld [vmem:[%s1751_s0 + $0x6] sm:$0x1] }
 0xd8d   :  { %v690_v62 = vpop.permute.xlu1 %689 }
 0xd8e   :  { %692 = vst.msk [vmem:[#allocation3] sm:$0x3] %vm16_vm0, %v690_v62  ;;  %v695_v3 = vrot.slane %v1566_v61, 7  ;;  %v844_v62 = vld [vmem:[%s1751_s0 + $0xe] sm:$0x1] }
 0xd90   :  { %v696_v4 = vsel %vm149_vm3, %v695_v3, %v1569_v63 }
 0xd91   :  { %697 = vrot.lane.b32.xlu0 %v696_v4, %s1366_s1 }
 0xd95   :  { %v776_v19 = vld [vmem:[#allocation3] sm:$0x3] }
 0xd96   :  { %v778_v21 = vrot.slane %v776_v19, 1 }
 0xe03   :  { %v698_v5 = vpop.permute.xlu0 %697 }
 0xe04   :  { %700 = vst.msk [vmem:[#allocation2] sm:$0x3] %vm16_vm0, %v698_v5 }
 0xe0b   :  { %v711_v6 = vld [vmem:[#allocation2] sm:$0x3] }
 0xe0c   :  { %v712_v7 = vpack.c.bf16 %v711_v6, %v711_v6 }
 0xe0e   :  { %1210 = vmatmul.mubr.msk.bf16.vlgmr.msra.gmra.mrb[8].mxu1 %vm39_vm2, %v712_v7 }
 0xe0f   :  { %1222 = vmatpush3.bf16.msra.mxu1 %v1388_v1  ;;  %1225 = vmatprep.mubr.msk.bf16.mxu1 %vm1365_vm1, %v1364_v0 }
 0xe10   :  { %1223 = vmatprep.subr.bf16.mxu1 %v1364_v0 }
 0xe13   :  { %1224 = vmatpush3.bf16.msra.mxu1 %v1403_v2 }
 0xee1   :  { %v750_v12 = vpop.f32.mrb[8].mxu1 }
 0xee2   :  { %v757_v13 = vrot.slane %v750_v12, 1  ;;  %v760_v14 = vadd.f32 %v750_v12, %v709_v9  ;;  %v1211_v15 = vpop.f32.mrb[9].mxu1 }
 0xee3   :  { %v753_v1 = vpop.f32.mrb[10].mxu1 }
 0xee4   :  { %v761_v16 = vadd.f32 %v757_v13, %v710_v11  ;;  %1316 = vtanh.f32 %v760_v14  ;;  %v1212_v17 = vpop.f32.mrb[11].mxu1  ;;  %v1133_v22 = vmul.f32 -1.442695, %v760_v14 }
 0xee6   :  { %1318 = vtanh.f32 %v761_v16  ;;  %v1134_v23 = vmul.f32 -1.442695, %v761_v16 }
 0xee7   :  { %1320 = vpow2.f32 %v1133_v22 }
 0xee8   :  { %1322 = vpow2.f32 %v1134_v23 }
 0xeee   :  { %v1317_v0 = vpop.eup %1316 }
 0xeef   :  { %789 = vrot.lane.b32.xlu1 %v1317_v0, %s1367_s17 }
 0xef0   :  { %v1319_v2 = vpop.eup %1318 }
 0xef1   :  { %791 = vrot.lane.b32.xlu0 %v1319_v2, %s1367_s17  ;;  %v1321_v24 = vpop.eup %1320 }
 0xef2   :  { %v1323_v25 = vpop.eup %1322  ;;  %v768_v26 = vadd.f32 1.0, %v1321_v24 }
 0xef3   :  { %779 = vrot.lane.b32.xlu1 %v776_v19, %s1366_s1  ;;  %v769_v27 = vadd.f32 1.0, %v1323_v25 }
 0xef4   :  { %1324 = vrcp.f32 %v768_v26 }
 0xef5   :  { %781 = vrot.lane.b32.xlu0 %v778_v21, %s1366_s1  ;;  %1326 = vrcp.f32 %v769_v27 }
 0xefe   :  { %v1325_v28 = vpop.eup %1324 }
 0xeff   :  { %v1327_v33 = vpop.eup %1326 }
 0xf61   :  { %v790_v29 = vpop.permute.xlu1 %789 }
 0xf62   :  { %v795_v31 = vmul.f32 %v1325_v28, %v790_v29 }
 0xf63   :  { %v792_v34 = vpop.permute.xlu0 %791 }
 0xf64   :  { %799 = vrot.lane.b32.xlu1 %v795_v31, %s1366_s1  ;;  %v796_v35 = vmul.f32 %v1327_v33, %v792_v34 }
 0xf65   :  { %v780_v36 = vpop.permute.xlu1 %779 }
 0xf66   :  { %801 = vrot.lane.b32.xlu0 %v796_v35, %s1366_s1  ;;  %v785_v37 = vmul.f32 %v1325_v28, %v780_v36 }
 0xf67   :  { %v782_v38 = vpop.permute.xlu0 %781 }
 0xf68   :  { %v786_v41 = vmul.f32 %v1327_v33, %v782_v38 }
 0xfd6   :  { %v800_v39 = vpop.permute.xlu1 %799 }
 0xfd7   :  { %v805_v40 = vadd.f32 %v800_v39, %v785_v37 }
 0xfd8   :  { %v802_v42 = vpop.permute.xlu0 %801 }
 0xfd9   :  { %1328 = vtanh.f32 %v805_v40  ;;  %v806_v44 = vadd.f32 %v802_v42, %v786_v41 }
 0xfdb   :  { %1330 = vtanh.f32 %v806_v44  ;;  %v821_v47 = vrot.slane %v806_v44, 7 }
 0xfdd   :  { %v822_v49 = vsel %vm149_vm3, %v821_v47, %v805_v40 }
 0xfe3   :  { %v1329_v45 = vpop.eup %1328 }
 0xfe4   :  { %811 = vrot.lane.b32.xlu1 %v1329_v45, %s1367_s17 }
 0xfe5   :  { %v1331_v48 = vpop.eup %1330 }
 0xfe6   :  { %813 = vrot.lane.b32.xlu0 %v1331_v48, %s1367_s17 }
 0xfe8   :  { %823 = vrot.lane.b32.xlu1 %v822_v49, %s1368_s18 }
0x1056   :  { %v812_v50 = vpop.permute.xlu1 %811 }
0x1057   :  { %v1601_v54 = vmul.f32 %v1325_v28, %v812_v50 }
0x1058   :  { %v814_v51 = vpop.permute.xlu0 %813 }
0x1059   :  { %v1598_v52 = vmul.f32 %v1327_v33, %v814_v51 }
0x105a   :  { %v824_v53 = vpop.permute.xlu1 %823 }
0x105b   :  { %826 = vst.msk [vmem:[#allocation3] sm:$0x3] %vm16_vm0, %v824_v53  ;;  %v829_v55 = vrot.slane %v1598_v52, 7 }
0x105d   :  { %v830_v56 = vsel %vm149_vm3, %v829_v55, %v1601_v54  ;;  %v977_v55 = vld [vmem:[%s1751_s0 + $0x7] sm:$0x1] }
0x105e   :  { %831 = vrot.lane.b32.xlu0 %v830_v56, %s1366_s1  ;;  %v978_v56 = vld [vmem:[%s1751_s0 + $0xf] sm:$0x1] }
0x1062   :  { %v910_v14 = vld [vmem:[#allocation3] sm:$0x3] }
0x1063   :  { %v912_v15 = vrot.slane %v910_v14, 1 }
0x10d0   :  { %v832_v57 = vpop.permute.xlu0 %831 }
0x10d1   :  { %834 = vst.msk [vmem:[#allocation2] sm:$0x3] %vm16_vm0, %v832_v57 }
0x10d8   :  { %v845_v58 = vld [vmem:[#allocation2] sm:$0x3] }
0x10d9   :  { %v846_v59 = vpack.c.bf16 %v845_v58, %v845_v58 }
0x10db   :  { %1218 = vmatmul.mubr.msk.bf16.vlgmr.msra.gmra.mrb[12].mxu0 %vm39_vm2, %v846_v59 }
0x11ae   :  { %v884_v3 = vpop.f32.mrb[12].mxu0 }
0x11af   :  { %v891_v4 = vrot.slane %v884_v3, 1  ;;  %v894_v5 = vadd.f32 %v884_v3, %v843_v60  ;;  %v1219_v6 = vpop.f32.mrb[13].mxu0 }
0x11b0   :  { %v887_v7 = vpop.f32.mrb[14].mxu0 }
0x11b1   :  { %v895_v9 = vadd.f32 %v891_v4, %v844_v62  ;;  %1332 = vtanh.f32 %v894_v5  ;;  %v1220_v11 = vpop.f32.mrb[15].mxu0  ;;  %v1136_v1 = vmul.f32 -1.442695, %v894_v5 }
0x11b3   :  { %1334 = vtanh.f32 %v895_v9  ;;  %v1137_v16 = vmul.f32 -1.442695, %v895_v9 }
0x11b4   :  { %1336 = vpow2.f32 %v1136_v1 }
0x11b5   :  { %1338 = vpow2.f32 %v1137_v16 }
0x11bb   :  { %v1333_v12 = vpop.eup %1332 }
0x11bc   :  { %923 = vrot.lane.b32.xlu1 %v1333_v12, %s1367_s17 }
0x11bd   :  { %v1335_v13 = vpop.eup %1334 }
0x11be   :  { %925 = vrot.lane.b32.xlu0 %v1335_v13, %s1367_s17  ;;  %v1337_v17 = vpop.eup %1336 }
0x11bf   :  { %v1339_v0 = vpop.eup %1338  ;;  %v902_v2 = vadd.f32 1.0, %v1337_v17 }
0x11c0   :  { %913 = vrot.lane.b32.xlu1 %v910_v14, %s1366_s1  ;;  %v903_v19 = vadd.f32 1.0, %v1339_v0 }
0x11c1   :  { %1340 = vrcp.f32 %v902_v2 }
0x11c2   :  { %915 = vrot.lane.b32.xlu0 %v912_v15, %s1366_s1  ;;  %1342 = vrcp.f32 %v903_v19 }
0x11cb   :  { %v1341_v21 = vpop.eup %1340 }
0x11cc   :  { %v1343_v24 = vpop.eup %1342 }
0x122e   :  { %v924_v22 = vpop.permute.xlu1 %923 }
0x122f   :  { %v929_v23 = vmul.f32 %v1341_v21, %v924_v22 }
0x1230   :  { %v926_v25 = vpop.permute.xlu0 %925 }
0x1231   :  { %933 = vrot.lane.b32.xlu1 %v929_v23, %s1366_s1  ;;  %v930_v26 = vmul.f32 %v1343_v24, %v926_v25 }
0x1232   :  { %v914_v27 = vpop.permute.xlu1 %913 }
0x1233   :  { %935 = vrot.lane.b32.xlu0 %v930_v26, %s1366_s1  ;;  %v919_v28 = vmul.f32 %v1341_v21, %v914_v27 }
0x1234   :  { %v916_v29 = vpop.permute.xlu0 %915 }
0x1235   :  { %v920_v34 = vmul.f32 %v1343_v24, %v916_v29 }
0x12a3   :  { %v934_v31 = vpop.permute.xlu1 %933 }
0x12a4   :  { %v939_v33 = vadd.f32 %v934_v31, %v919_v28 }
0x12a5   :  { %v936_v35 = vpop.permute.xlu0 %935 }
0x12a6   :  { %1344 = vtanh.f32 %v939_v33  ;;  %v940_v36 = vadd.f32 %v936_v35, %v920_v34 }
0x12a8   :  { %1346 = vtanh.f32 %v940_v36  ;;  %v955_v38 = vrot.slane %v940_v36, 7 }
0x12aa   :  { %v956_v40 = vsel %vm149_vm3, %v955_v38, %v939_v33 }
0x12b0   :  { %v1345_v37 = vpop.eup %1344 }
0x12b1   :  { %945 = vrot.lane.b32.xlu1 %v1345_v37, %s1367_s17 }
0x12b2   :  { %v1347_v39 = vpop.eup %1346 }
0x12b3   :  { %947 = vrot.lane.b32.xlu0 %v1347_v39, %s1367_s17 }
0x12b5   :  { %957 = vrot.lane.b32.xlu1 %v956_v40, %s1368_s18 }
0x1323   :  { %v946_v41 = vpop.permute.xlu1 %945 }
0x1324   :  { %v1628_v47 = vmul.f32 %v1341_v21, %v946_v41 }
0x1325   :  { %v948_v42 = vpop.permute.xlu0 %947 }
0x1326   :  { %v1625_v44 = vmul.f32 %v1343_v24, %v948_v42 }
0x1327   :  { %v958_v45 = vpop.permute.xlu1 %957 }
0x1328   :  { %960 = vst.msk [vmem:[#allocation3] sm:$0x3] %vm16_vm0, %v958_v45  ;;  %v963_v48 = vrot.slane %v1625_v44, 7 }
0x132a   :  { %v964_v49 = vsel %vm149_vm3, %v963_v48, %v1628_v47 }
0x132b   :  { %965 = vrot.lane.b32.xlu0 %v964_v49, %s1366_s1 }
0x132f   :  { %v1044_v7 = vld [vmem:[#allocation3] sm:$0x3] }
0x1330   :  { %v1046_v9 = vrot.slane %v1044_v7, 1 }
0x139d   :  { %v966_v50 = vpop.permute.xlu0 %965 }
0x139e   :  { %968 = vst.msk [vmem:[#allocation2] sm:$0x3] %vm16_vm0, %v966_v50 }
0x13a5   :  { %v979_v51 = vld [vmem:[#allocation2] sm:$0x3] }
0x13a6   :  { %v980_v53 = vpack.c.bf16 %v979_v51, %v979_v51 }
0x13a8   :  { %1226 = vmatmul.mubr.msk.bf16.vlgmr.msra.gmra.mrb[12].mxu1 %vm39_vm2, %v980_v53 }
0x147b   :  { %v1018_v57 = vpop.f32.mrb[12].mxu1 }
0x147c   :  { %v1025_v58 = vrot.slane %v1018_v57, 1  ;;  %v1028_v59 = vadd.f32 %v1018_v57, %v977_v55  ;;  %v1227_v60 = vpop.f32.mrb[13].mxu1 }
0x147d   :  { %v1021_v62 = vpop.f32.mrb[14].mxu1 }
0x147e   :  { %v1029_v3 = vadd.f32 %v1025_v58, %v978_v56  ;;  %1348 = vtanh.f32 %v1028_v59  ;;  %v1228_v4 = vpop.f32.mrb[15].mxu1  ;;  %v1139_v11 = vmul.f32 -1.442695, %v1028_v59 }
0x1480   :  { %1350 = vtanh.f32 %v1029_v3  ;;  %v1140_v12 = vmul.f32 -1.442695, %v1029_v3 }
0x1481   :  { %1352 = vpow2.f32 %v1139_v11 }
0x1482   :  { %1354 = vpow2.f32 %v1140_v12 }
0x1488   :  { %v1349_v5 = vpop.eup %1348 }
0x1489   :  { %1057 = vrot.lane.b32.xlu1 %v1349_v5, %s1367_s17 }
0x148a   :  { %v1351_v6 = vpop.eup %1350 }
0x148b   :  { %1059 = vrot.lane.b32.xlu0 %v1351_v6, %s1367_s17  ;;  %v1353_v13 = vpop.eup %1352 }
0x148c   :  { %v1355_v14 = vpop.eup %1354  ;;  %v1036_v15 = vadd.f32 1.0, %v1353_v13 }
0x148d   :  { %1047 = vrot.lane.b32.xlu1 %v1044_v7, %s1366_s1  ;;  %v1037_v1 = vadd.f32 1.0, %v1355_v14 }
0x148e   :  { %1356 = vrcp.f32 %v1036_v15 }
0x148f   :  { %1049 = vrot.lane.b32.xlu0 %v1046_v9, %s1366_s1  ;;  %1358 = vrcp.f32 %v1037_v1 }
0x1498   :  { %v1357_v16 = vpop.eup %1356 }
0x1499   :  { %v1359_v2 = vpop.eup %1358 }
0x14fb   :  { %v1058_v17 = vpop.permute.xlu1 %1057 }
0x14fc   :  { %v1063_v0 = vmul.f32 %v1357_v16, %v1058_v17 }
0x14fd   :  { %v1060_v19 = vpop.permute.xlu0 %1059 }
0x14fe   :  { %1067 = vrot.lane.b32.xlu1 %v1063_v0, %s1366_s1  ;;  %v1064_v21 = vmul.f32 %v1359_v2, %v1060_v19 }
0x14ff   :  { %v1048_v22 = vpop.permute.xlu1 %1047 }
0x1500   :  { %1069 = vrot.lane.b32.xlu0 %v1064_v21, %s1366_s1  ;;  %v1053_v23 = vmul.f32 %v1357_v16, %v1048_v22 }
0x1501   :  { %v1050_v24 = vpop.permute.xlu0 %1049 }
0x1502   :  { %v1054_v27 = vmul.f32 %v1359_v2, %v1050_v24 }
0x1570   :  { %v1068_v25 = vpop.permute.xlu1 %1067 }
0x1571   :  { %v1073_v26 = vadd.f32 %v1068_v25, %v1053_v23 }
0x1572   :  { %v1070_v28 = vpop.permute.xlu0 %1069 }
0x1573   :  { %1360 = vtanh.f32 %v1073_v26  ;;  %v1074_v29 = vadd.f32 %v1070_v28, %v1054_v27 }
0x1575   :  { %1362 = vtanh.f32 %v1074_v29 }
0x157d   :  { %v1361_v31 = vpop.eup %1360 }
0x157e   :  { %1079 = vrot.lane.b32.xlu1 %v1361_v31, %s1367_s17 }
0x157f   :  { %v1363_v33 = vpop.eup %1362 }
0x1580   :  { %1081 = vrot.lane.b32.xlu0 %v1363_v33, %s1367_s17 }
0x1582   :  { %166 = vrot.lane.b32.xlu1 %v1435_v43, %s1366_s1  ;;  %v1089_v43 = vrot.slane %v1074_v29, 7 }
0x1584   :  { %164 = vrot.lane.b32.xlu0 %v1438_v46, %s1366_s1  ;;  %v1090_v46 = vsel %vm149_vm3, %v1089_v43, %v1073_v26 }
0x1586   :  { %301 = vrot.lane.b32.xlu1 %v1468_v30, %s1366_s1 }
0x1588   :  { %299 = vrot.lane.b32.xlu0 %v1471_v32, %s1366_s1 }
0x158a   :  { %435 = vrot.lane.b32.xlu1 %v1501_v18, %s1366_s1 }
0x158c   :  { %433 = vrot.lane.b32.xlu0 %v1504_v20, %s1366_s1 }
0x158e   :  { %569 = vrot.lane.b32.xlu1 %v1534_v8, %s1366_s1 }
0x1590   :  { %567 = vrot.lane.b32.xlu0 %v1537_v10, %s1366_s1 }
0x1592   :  { %703 = vrot.lane.b32.xlu1 %v1566_v61, %s1366_s1 }
0x1594   :  { %701 = vrot.lane.b32.xlu0 %v1569_v63, %s1366_s1 }
0x1596   :  { %837 = vrot.lane.b32.xlu1 %v1598_v52, %s1366_s1 }
0x1598   :  { %835 = vrot.lane.b32.xlu0 %v1601_v54, %s1366_s1 }
0x159a   :  { %971 = vrot.lane.b32.xlu1 %v1625_v44, %s1366_s1 }
0x159c   :  { %969 = vrot.lane.b32.xlu0 %v1628_v47, %s1366_s1 }
0x15a0   :  { %1091 = vrot.lane.b32.xlu0 %v1090_v46, %s1368_s18 }
0x15f0   :  { %v1080_v30 = vpop.permute.xlu1 %1079 }
0x15f1   :  { %v1085_v32 = vmul.f32 %v1357_v16, %v1080_v30 }
0x15f2   :  { %v1082_v18 = vpop.permute.xlu0 %1081 }
0x15f3   :  { %1103 = vrot.lane.b32.xlu0 %v1085_v32, %s1366_s1  ;;  %v1086_v20 = vmul.f32 %v1359_v2, %v1082_v18 }
0x15f4   :  { %v167_v8 = vpop.permute.xlu1 %166 }
0x15f5   :  { %172 = vst.msk [vmem:[%s1752_s2 + $0x8] sm:$0x1] %vm170_vm4, %v167_v8  ;;  %v1097_v10 = vrot.slane %v1086_v20, 7 }
0x15f6   :  { %v165_v61 = vpop.permute.xlu0 %164 }
0x15f7   :  { %171 = vst.msk [vmem:[%s1752_s2] sm:$0x1] %vm170_vm4, %v165_v61  ;;  %v1098_v63 = vsel %vm149_vm3, %v1097_v10, %v1085_v32 }
0x15f8   :  { %v302_v52 = vpop.permute.xlu1 %301  ;;  %1099 = vrot.lane.b32.xlu1 %v1098_v63, %s1366_s1 }
0x15f9   :  { %306 = vst.msk [vmem:[%s1752_s2 + $0x9] sm:$0x1] %vm170_vm4, %v302_v52 }
0x15fa   :  { %v300_v54 = vpop.permute.xlu0 %299 }
0x15fb   :  { %305 = vst.msk [vmem:[%s1752_s2 + $0x1] sm:$0x1] %vm170_vm4, %v300_v54 }
0x15fc   :  { %v436_v34 = vpop.permute.xlu1 %435  ;;  %1105 = vrot.lane.b32.xlu1 %v1086_v20, %s1366_s1 }
0x15fd   :  { %440 = vst.msk [vmem:[%s1752_s2 + $0xa] sm:$0x1] %vm170_vm4, %v436_v34 }
0x15fe   :  { %v434_v35 = vpop.permute.xlu0 %433 }
0x15ff   :  { %439 = vst.msk [vmem:[%s1752_s2 + $0x2] sm:$0x1] %vm170_vm4, %v434_v35 }
0x1600   :  { %v570_v36 = vpop.permute.xlu1 %569 }
0x1601   :  { %574 = vst.msk [vmem:[%s1752_s2 + $0xb] sm:$0x1] %vm170_vm4, %v570_v36 }
0x1602   :  { %v568_v37 = vpop.permute.xlu0 %567 }
0x1603   :  { %573 = vst.msk [vmem:[%s1752_s2 + $0x3] sm:$0x1] %vm170_vm4, %v568_v37 }
0x1604   :  { %v704_v38 = vpop.permute.xlu1 %703 }
0x1605   :  { %708 = vst.msk [vmem:[%s1752_s2 + $0xc] sm:$0x1] %vm170_vm4, %v704_v38 }
0x1606   :  { %v702_v39 = vpop.permute.xlu0 %701 }
0x1607   :  { %707 = vst.msk [vmem:[%s1752_s2 + $0x4] sm:$0x1] %vm170_vm4, %v702_v39 }
0x1608   :  { %v838_v40 = vpop.permute.xlu1 %837 }
0x1609   :  { %842 = vst.msk [vmem:[%s1752_s2 + $0xd] sm:$0x1] %vm170_vm4, %v838_v40 }
0x160a   :  { %v836_v41 = vpop.permute.xlu0 %835 }
0x160b   :  { %841 = vst.msk [vmem:[%s1752_s2 + $0x5] sm:$0x1] %vm170_vm4, %v836_v41 }
0x160c   :  { %v972_v42 = vpop.permute.xlu1 %971 }
0x160d   :  { %976 = vst.msk [vmem:[%s1752_s2 + $0xe] sm:$0x1] %vm170_vm4, %v972_v42 }
0x160e   :  { %v970_v44 = vpop.permute.xlu0 %969 }
0x160f   :  { %975 = vst.msk [vmem:[%s1752_s2 + $0x6] sm:$0x1] %vm170_vm4, %v970_v44 }
0x1612   :  { %v1092_v45 = vpop.permute.xlu0 %1091 }
0x1613   :  { %1094 = vst.msk [vmem:[#allocation3] sm:$0x3] %vm16_vm0, %v1092_v45 }
0x1665   :  { %v1104_v47 = vpop.permute.xlu0 %1103 }
0x1666   :  { %1109 = vst.msk [vmem:[%s1752_s2 + $0x7] sm:$0x1] %vm170_vm4, %v1104_v47 }
0x166a   :  { %v1100_v48 = vpop.permute.xlu1 %1099 }
0x166b   :  { %1102 = vst.msk [vmem:[#allocation2] sm:$0x3] %vm16_vm0, %v1100_v48 }
0x166e   :  { %v1106_v49 = vpop.permute.xlu1 %1105 }
0x166f   :  { %1110 = vst.msk [vmem:[%s1752_s2 + $0xf] sm:$0x1] %vm170_vm4, %v1106_v49 }

</bundles_post_ra>
